<compile_context>
chip_gen: v7x
topology: tpu7x:2x2x1
jax: 0.10.0
libtpu: 0.0.40
codegen_flags: <defaults>
</compile_context>

<pallas_src>
import functools

import jax
import jax.numpy as jnp
from jax import lax
from jax.experimental import pallas as pl
from jax.experimental.pallas import tpu as pltpu


def _cwfa_kernel(alpha_ref, a_ref, omega_ref, x_ref, out_ref, *, L, D, R, OUT):
    """One grid step = one batch tile (batch on lanes); full sequence in-kernel.

    alpha_ref : (R,)        SMEM (scalar prefetch)
    a_ref     : (R*D*R,)    SMEM, a_ref[(i*D + j)*R + k] = A[i, j, k]
    omega_ref : (R*OUT,)    SMEM, omega_ref[i*OUT + m]   = Omega[i, m]
    x_ref     : (L, D, TNS, 128) VMEM, batch tile with batch on (sublane, lane)
    out_ref   : (OUT, TNS, 128)  VMEM, lane-dense output tile
    """
    TNS = x_ref.shape[2]
    LANE = x_ref.shape[3]
    shape = (TNS, LANE)

    # Hoist all parameter scalars out of the time loop (SMEM -> scalar regs).
    A = [[[a_ref[(i * D + j) * R + k] for k in range(R)]
          for j in range(D)] for i in range(R)]
    Om = [[omega_ref[i * OUT + m] for m in range(OUT)] for i in range(R)]

    # h[i][n] = alpha[i]  (broadcast over the batch tile)
    h = [jnp.full(shape, alpha_ref[i], dtype=jnp.float32) for i in range(R)]

    def step(h, xs):
        # h_new[k] = sum_{i,j} A[i,j,k] * h[i] * x_t[j]   (all full-tile VPU ops)
        new_h = [jnp.zeros(shape, jnp.float32) for _ in range(R)]
        for i in range(R):
            for j in range(D):
                p = h[i] * xs[j]                      # (TNS, 128) product, reused over k
                for k in range(R):
                    new_h[k] = new_h[k] + A[i][j][k] * p
        return new_h

    if L <= 16:
        # Short sequences: fully unrolled; x_ref[t, j] are tile-aligned views.
        for t in range(L):
            h = step(h, [x_ref[t, j] for j in range(D)])
    else:
        # Longer sequences: bounded instruction footprint / live ranges.
        def body(t, carry):
            xt = x_ref[t]                             # (D, TNS, 128) view at dynamic t
            return tuple(step(list(carry), [xt[j] for j in range(D)]))
        h = list(lax.fori_loop(0, L, body, tuple(h), unroll=8))

    # out[m] = sum_i Omega[i, m] * h[i]   -> lane-dense store per output channel.
    for m in range(OUT):
        acc = jnp.zeros(shape, jnp.float32)
        for i in range(R):
            acc = acc + Om[i][m] * h[i]
        out_ref[m] = acc


def cwfa_forward(x, alpha, A, Omega):
    """x: (N, L, D) float32 -> squeezed (N, out_dim), matching the PyTorch module."""
    N, L, D = x.shape
    R = A.shape[0]
    OUT = Omega.shape[1]
    assert L >= 1, "CWFA forward requires at least one timestep (x[:, 0, :])."

    # ---- batch tiling: batch mapped onto (sublane, lane) = (TNS, 128) tiles ----
    NB = pl.cdiv(N, 128)                 # number of 128-lane batch columns
    if NB <= 8:
        TNS = NB                         # single block spanning the full extent
    else:
        # Multiple of 8 (layout rule); small enough to avoid vreg spills and to
        # give >= 2 grid programs (v7x megacore) whenever N > 1024.
        TNS = 8 if NB <= 64 else 16
    NB_pad = pl.cdiv(NB, TNS) * TNS
    N_pad = NB_pad * 128
    grid = (NB_pad // TNS,)

    # ---- lane-dense, time-major x layout: (L, D, NB_pad, 128) ----
    xT = jnp.transpose(x.astype(jnp.float32), (1, 2, 0))        # (L, D, N)
    xT = jnp.pad(xT, ((0, 0), (0, 0), (0, N_pad - N)))          # zero-pad batch
    xT = xT.reshape(L, D, NB_pad, 128)

    # ---- tiny parameters, flattened for SMEM scalar access ----
    alpha_f = alpha.astype(jnp.float32).reshape(R)
    a_flat = A.astype(jnp.float32).reshape(R * D * R)            # [(i*D+j)*R+k] = A[i,j,k]
    omega_flat = Omega.astype(jnp.float32).reshape(R * OUT)      # [i*OUT+m]     = Omega[i,m]

    kernel = functools.partial(_cwfa_kernel, L=L, D=D, R=R, OUT=OUT)

    # VMEM budget: x block double-buffered; only matters for very long L.
    x_block_bytes = L * D * TNS * 128 * 4
    compiler_kwargs = dict(dimension_semantics=("parallel",))
    if 2 * x_block_bytes > (14 << 20):   # stay under the 16 MiB v5e scoped default
        compiler_kwargs["vmem_limit_bytes"] = min(2 * x_block_bytes + (4 << 20), 64 << 20)
    # TODO(synk): for extremely long L, chunk L onto a trailing "arbitrary" grid
    # axis with h carried in VMEM scratch instead of one (L, D, TNS, 128) block.

    out = pl.pallas_call(
        kernel,
        out_shape=jax.ShapeDtypeStruct((OUT, NB_pad, 128), jnp.float32),
        grid_spec=pltpu.PrefetchScalarGridSpec(
            num_scalar_prefetch=3,                    # alpha, A_flat, Omega_flat -> SMEM
            grid=grid,
            in_specs=[
                pl.BlockSpec((L, D, TNS, 128),
                             lambda n, alpha, a, om: (0, 0, n, 0)),
            ],
            out_specs=pl.BlockSpec((OUT, TNS, 128),
                                   lambda n, alpha, a, om: (0, n, 0)),
        ),
        compiler_params=pltpu.CompilerParams(**compiler_kwargs),
    )(alpha_f, a_flat, omega_flat, xT)

    out = out.reshape(OUT, N_pad)[:, :N]              # (OUT, N), drop batch padding
    # Match PyTorch's .squeeze() (drops out_dim==1; also drops N==1 — same
    # foot-gun as the reference module).
    return jnp.squeeze(out.T)


def cwfa_reference(x, alpha, A, Omega):
    """Plain-JAX reference matching the PyTorch forward exactly."""
    h = jnp.einsum('i,ijk,nj->nk', alpha, A, x[:, 0, :])
    for i in range(1, x.shape[1]):
        h = jnp.einsum('ni,ijk,nj->nk', h, A, x[:, i, :])
    return jnp.squeeze(jnp.einsum('ni,im->nm', h, Omega))


if __name__ == "__main__":
    # Module hyperparameters (defaults of CWFA).
    rank = 5          # self.rank
    input_dim = 3     # self.input_dim
    out_dim = 1       # self.output_dim
    init_std = 0.1

    # Small input consistent with forward(): x of shape (N, L, D).
    N, L, D = 4, 8, input_dim

    key = jax.random.PRNGKey(0)
    k_a, k_alpha, k_omega, k_x = jax.random.split(key, 4)

    # Deterministic parameter init mirroring torch.normal(0, init_std, shape).
    A = init_std * jax.random.normal(k_a, (rank, input_dim, rank), jnp.float32)
    alpha = init_std * jax.random.normal(k_alpha, (rank,), jnp.float32)
    Omega = init_std * jax.random.normal(k_omega, (rank, out_dim), jnp.float32)
    x = jax.random.normal(k_x, (N, L, D), jnp.float32)

    out = cwfa_forward(x, alpha, A, Omega)
    out = jax.block_until_ready(out)

    ref = cwfa_reference(x, alpha, A, Omega)
    assert out.shape == ref.shape, (out.shape, ref.shape)
    assert jnp.allclose(out, ref, atol=1e-5, rtol=1e-5), (out, ref)

    print("KERNEL_OK")
</pallas_src>

<mosaic_0001>
module attributes {stable_mosaic.version = 11 : i64} {
  func.func @_cwfa_kernel(%arg0: i32, %arg1: memref<5xf32, #tpu.memory_space<smem>>, %arg2: memref<75xf32, #tpu.memory_space<smem>>, %arg3: memref<5xf32, #tpu.memory_space<smem>>, %arg4: memref<8x3x1x128xf32, #tpu.memory_space<vmem>>, %arg5: memref<1x1x128xf32, #tpu.memory_space<vmem>>) attributes {dimension_semantics = [#tpu.dimension_semantics<parallel>], iteration_bounds = array<i64: 1>, scalar_prefetch = 3 : i64, scratch_operands = 0 : i64, tpu.core_type = #tpu.core_type<tc>, window_params = [{transform_indices = @transform_0, window_bounds = array<i64: 8, 3, 1, 128>}, {transform_indices = @transform_1, window_bounds = array<i64: 1, 1, 128>}]} {
    %c0 = arith.constant 0 : index
    %0 = memref.load %arg2[%c0] : memref<75xf32, #tpu.memory_space<smem>>
    %c1 = arith.constant 1 : index
    %1 = memref.load %arg2[%c1] : memref<75xf32, #tpu.memory_space<smem>>
    %c2 = arith.constant 2 : index
    %2 = memref.load %arg2[%c2] : memref<75xf32, #tpu.memory_space<smem>>
    %c3 = arith.constant 3 : index
    %3 = memref.load %arg2[%c3] : memref<75xf32, #tpu.memory_space<smem>>
    %c4 = arith.constant 4 : index
    %4 = memref.load %arg2[%c4] : memref<75xf32, #tpu.memory_space<smem>>
    %c5 = arith.constant 5 : index
    %5 = memref.load %arg2[%c5] : memref<75xf32, #tpu.memory_space<smem>>
    %c6 = arith.constant 6 : index
    %6 = memref.load %arg2[%c6] : memref<75xf32, #tpu.memory_space<smem>>
    %c7 = arith.constant 7 : index
    %7 = memref.load %arg2[%c7] : memref<75xf32, #tpu.memory_space<smem>>
    %c8 = arith.constant 8 : index
    %8 = memref.load %arg2[%c8] : memref<75xf32, #tpu.memory_space<smem>>
    %c9 = arith.constant 9 : index
    %9 = memref.load %arg2[%c9] : memref<75xf32, #tpu.memory_space<smem>>
    %c10 = arith.constant 10 : index
    %10 = memref.load %arg2[%c10] : memref<75xf32, #tpu.memory_space<smem>>
    %c11 = arith.constant 11 : index
    %11 = memref.load %arg2[%c11] : memref<75xf32, #tpu.memory_space<smem>>
    %c12 = arith.constant 12 : index
    %12 = memref.load %arg2[%c12] : memref<75xf32, #tpu.memory_space<smem>>
    %c13 = arith.constant 13 : index
    %13 = memref.load %arg2[%c13] : memref<75xf32, #tpu.memory_space<smem>>
    %c14 = arith.constant 14 : index
    %14 = memref.load %arg2[%c14] : memref<75xf32, #tpu.memory_space<smem>>
    %c15 = arith.constant 15 : index
    %15 = memref.load %arg2[%c15] : memref<75xf32, #tpu.memory_space<smem>>
    %c16 = arith.constant 16 : index
    %16 = memref.load %arg2[%c16] : memref<75xf32, #tpu.memory_space<smem>>
    %c17 = arith.constant 17 : index
    %17 = memref.load %arg2[%c17] : memref<75xf32, #tpu.memory_space<smem>>
    %c18 = arith.constant 18 : index
    %18 = memref.load %arg2[%c18] : memref<75xf32, #tpu.memory_space<smem>>
    %c19 = arith.constant 19 : index
    %19 = memref.load %arg2[%c19] : memref<75xf32, #tpu.memory_space<smem>>
    %c20 = arith.constant 20 : index
    %20 = memref.load %arg2[%c20] : memref<75xf32, #tpu.memory_space<smem>>
    %c21 = arith.constant 21 : index
    %21 = memref.load %arg2[%c21] : memref<75xf32, #tpu.memory_space<smem>>
    %c22 = arith.constant 22 : index
    %22 = memref.load %arg2[%c22] : memref<75xf32, #tpu.memory_space<smem>>
    %c23 = arith.constant 23 : index
    %23 = memref.load %arg2[%c23] : memref<75xf32, #tpu.memory_space<smem>>
    %c24 = arith.constant 24 : index
    %24 = memref.load %arg2[%c24] : memref<75xf32, #tpu.memory_space<smem>>
    %c25 = arith.constant 25 : index
    %25 = memref.load %arg2[%c25] : memref<75xf32, #tpu.memory_space<smem>>
    %c26 = arith.constant 26 : index
    %26 = memref.load %arg2[%c26] : memref<75xf32, #tpu.memory_space<smem>>
    %c27 = arith.constant 27 : index
    %27 = memref.load %arg2[%c27] : memref<75xf32, #tpu.memory_space<smem>>
    %c28 = arith.constant 28 : index
    %28 = memref.load %arg2[%c28] : memref<75xf32, #tpu.memory_space<smem>>
    %c29 = arith.constant 29 : index
    %29 = memref.load %arg2[%c29] : memref<75xf32, #tpu.memory_space<smem>>
    %c30 = arith.constant 30 : index
    %30 = memref.load %arg2[%c30] : memref<75xf32, #tpu.memory_space<smem>>
    %c31 = arith.constant 31 : index
    %31 = memref.load %arg2[%c31] : memref<75xf32, #tpu.memory_space<smem>>
    %c32 = arith.constant 32 : index
    %32 = memref.load %arg2[%c32] : memref<75xf32, #tpu.memory_space<smem>>
    %c33 = arith.constant 33 : index
    %33 = memref.load %arg2[%c33] : memref<75xf32, #tpu.memory_space<smem>>
    %c34 = arith.constant 34 : index
    %34 = memref.load %arg2[%c34] : memref<75xf32, #tpu.memory_space<smem>>
    %c35 = arith.constant 35 : index
    %35 = memref.load %arg2[%c35] : memref<75xf32, #tpu.memory_space<smem>>
    %c36 = arith.constant 36 : index
    %36 = memref.load %arg2[%c36] : memref<75xf32, #tpu.memory_space<smem>>
    %c37 = arith.constant 37 : index
    %37 = memref.load %arg2[%c37] : memref<75xf32, #tpu.memory_space<smem>>
    %c38 = arith.constant 38 : index
    %38 = memref.load %arg2[%c38] : memref<75xf32, #tpu.memory_space<smem>>
    %c39 = arith.constant 39 : index
    %39 = memref.load %arg2[%c39] : memref<75xf32, #tpu.memory_space<smem>>
    %c40 = arith.constant 40 : index
    %40 = memref.load %arg2[%c40] : memref<75xf32, #tpu.memory_space<smem>>
    %c41 = arith.constant 41 : index
    %41 = memref.load %arg2[%c41] : memref<75xf32, #tpu.memory_space<smem>>
    %c42 = arith.constant 42 : index
    %42 = memref.load %arg2[%c42] : memref<75xf32, #tpu.memory_space<smem>>
    %c43 = arith.constant 43 : index
    %43 = memref.load %arg2[%c43] : memref<75xf32, #tpu.memory_space<smem>>
    %c44 = arith.constant 44 : index
    %44 = memref.load %arg2[%c44] : memref<75xf32, #tpu.memory_space<smem>>
    %c45 = arith.constant 45 : index
    %45 = memref.load %arg2[%c45] : memref<75xf32, #tpu.memory_space<smem>>
    %c46 = arith.constant 46 : index
    %46 = memref.load %arg2[%c46] : memref<75xf32, #tpu.memory_space<smem>>
    %c47 = arith.constant 47 : index
    %47 = memref.load %arg2[%c47] : memref<75xf32, #tpu.memory_space<smem>>
    %c48 = arith.constant 48 : index
    %48 = memref.load %arg2[%c48] : memref<75xf32, #tpu.memory_space<smem>>
    %c49 = arith.constant 49 : index
    %49 = memref.load %arg2[%c49] : memref<75xf32, #tpu.memory_space<smem>>
    %c50 = arith.constant 50 : index
    %50 = memref.load %arg2[%c50] : memref<75xf32, #tpu.memory_space<smem>>
    %c51 = arith.constant 51 : index
    %51 = memref.load %arg2[%c51] : memref<75xf32, #tpu.memory_space<smem>>
    %c52 = arith.constant 52 : index
    %52 = memref.load %arg2[%c52] : memref<75xf32, #tpu.memory_space<smem>>
    %c53 = arith.constant 53 : index
    %53 = memref.load %arg2[%c53] : memref<75xf32, #tpu.memory_space<smem>>
    %c54 = arith.constant 54 : index
    %54 = memref.load %arg2[%c54] : memref<75xf32, #tpu.memory_space<smem>>
    %c55 = arith.constant 55 : index
    %55 = memref.load %arg2[%c55] : memref<75xf32, #tpu.memory_space<smem>>
    %c56 = arith.constant 56 : index
    %56 = memref.load %arg2[%c56] : memref<75xf32, #tpu.memory_space<smem>>
    %c57 = arith.constant 57 : index
    %57 = memref.load %arg2[%c57] : memref<75xf32, #tpu.memory_space<smem>>
    %c58 = arith.constant 58 : index
    %58 = memref.load %arg2[%c58] : memref<75xf32, #tpu.memory_space<smem>>
    %c59 = arith.constant 59 : index
    %59 = memref.load %arg2[%c59] : memref<75xf32, #tpu.memory_space<smem>>
    %c60 = arith.constant 60 : index
    %60 = memref.load %arg2[%c60] : memref<75xf32, #tpu.memory_space<smem>>
    %c61 = arith.constant 61 : index
    %61 = memref.load %arg2[%c61] : memref<75xf32, #tpu.memory_space<smem>>
    %c62 = arith.constant 62 : index
    %62 = memref.load %arg2[%c62] : memref<75xf32, #tpu.memory_space<smem>>
    %c63 = arith.constant 63 : index
    %63 = memref.load %arg2[%c63] : memref<75xf32, #tpu.memory_space<smem>>
    %c64 = arith.constant 64 : index
    %64 = memref.load %arg2[%c64] : memref<75xf32, #tpu.memory_space<smem>>
    %c65 = arith.constant 65 : index
    %65 = memref.load %arg2[%c65] : memref<75xf32, #tpu.memory_space<smem>>
    %c66 = arith.constant 66 : index
    %66 = memref.load %arg2[%c66] : memref<75xf32, #tpu.memory_space<smem>>
    %c67 = arith.constant 67 : index
    %67 = memref.load %arg2[%c67] : memref<75xf32, #tpu.memory_space<smem>>
    %c68 = arith.constant 68 : index
    %68 = memref.load %arg2[%c68] : memref<75xf32, #tpu.memory_space<smem>>
    %c69 = arith.constant 69 : index
    %69 = memref.load %arg2[%c69] : memref<75xf32, #tpu.memory_space<smem>>
    %c70 = arith.constant 70 : index
    %70 = memref.load %arg2[%c70] : memref<75xf32, #tpu.memory_space<smem>>
    %c71 = arith.constant 71 : index
    %71 = memref.load %arg2[%c71] : memref<75xf32, #tpu.memory_space<smem>>
    %c72 = arith.constant 72 : index
    %72 = memref.load %arg2[%c72] : memref<75xf32, #tpu.memory_space<smem>>
    %c73 = arith.constant 73 : index
    %73 = memref.load %arg2[%c73] : memref<75xf32, #tpu.memory_space<smem>>
    %c74 = arith.constant 74 : index
    %74 = memref.load %arg2[%c74] : memref<75xf32, #tpu.memory_space<smem>>
    %c0_0 = arith.constant 0 : index
    %75 = memref.load %arg3[%c0_0] : memref<5xf32, #tpu.memory_space<smem>>
    %c1_1 = arith.constant 1 : index
    %76 = memref.load %arg3[%c1_1] : memref<5xf32, #tpu.memory_space<smem>>
    %c2_2 = arith.constant 2 : index
    %77 = memref.load %arg3[%c2_2] : memref<5xf32, #tpu.memory_space<smem>>
    %c3_3 = arith.constant 3 : index
    %78 = memref.load %arg3[%c3_3] : memref<5xf32, #tpu.memory_space<smem>>
    %c4_4 = arith.constant 4 : index
    %79 = memref.load %arg3[%c4_4] : memref<5xf32, #tpu.memory_space<smem>>
    %c0_5 = arith.constant 0 : index
    %80 = memref.load %arg1[%c0_5] : memref<5xf32, #tpu.memory_space<smem>>
    %81 = vector.broadcast %80 : f32 to vector<1x128xf32>
    %c1_6 = arith.constant 1 : index
    %82 = memref.load %arg1[%c1_6] : memref<5xf32, #tpu.memory_space<smem>>
    %83 = vector.broadcast %82 : f32 to vector<1x128xf32>
    %c2_7 = arith.constant 2 : index
    %84 = memref.load %arg1[%c2_7] : memref<5xf32, #tpu.memory_space<smem>>
    %85 = vector.broadcast %84 : f32 to vector<1x128xf32>
    %c3_8 = arith.constant 3 : index
    %86 = memref.load %arg1[%c3_8] : memref<5xf32, #tpu.memory_space<smem>>
    %87 = vector.broadcast %86 : f32 to vector<1x128xf32>
    %c4_9 = arith.constant 4 : index
    %88 = memref.load %arg1[%c4_9] : memref<5xf32, #tpu.memory_space<smem>>
    %89 = vector.broadcast %88 : f32 to vector<1x128xf32>
    %c0_10 = arith.constant 0 : index
    %c0_11 = arith.constant 0 : index
    %c0_12 = arith.constant 0 : index
    %c0_13 = arith.constant 0 : index
    %90 = vector.load %arg4[%c0_10, %c0_11, %c0_12, %c0_13] : memref<8x3x1x128xf32, #tpu.memory_space<vmem>>, vector<1x1x1x128xf32>
    %91 = vector.shape_cast %90 : vector<1x1x1x128xf32> to vector<1x128xf32>
    %c0_14 = arith.constant 0 : index
    %c1_15 = arith.constant 1 : index
    %c0_16 = arith.constant 0 : index
    %c0_17 = arith.constant 0 : index
    %92 = vector.load %arg4[%c0_14, %c1_15, %c0_16, %c0_17] : memref<8x3x1x128xf32, #tpu.memory_space<vmem>>, vector<1x1x1x128xf32>
    %93 = vector.shape_cast %92 : vector<1x1x1x128xf32> to vector<1x128xf32>
    %c0_18 = arith.constant 0 : index
    %c2_19 = arith.constant 2 : index
    %c0_20 = arith.constant 0 : index
    %c0_21 = arith.constant 0 : index
    %94 = vector.load %arg4[%c0_18, %c2_19, %c0_20, %c0_21] : memref<8x3x1x128xf32, #tpu.memory_space<vmem>>, vector<1x1x1x128xf32>
    %95 = vector.shape_cast %94 : vector<1x1x1x128xf32> to vector<1x128xf32>
    %cst = arith.constant 0.000000e+00 : f32
    %96 = vector.broadcast %cst : f32 to vector<1x128xf32>
    %cst_22 = arith.constant 0.000000e+00 : f32
    %97 = vector.broadcast %cst_22 : f32 to vector<1x128xf32>
    %cst_23 = arith.constant 0.000000e+00 : f32
    %98 = vector.broadcast %cst_23 : f32 to vector<1x128xf32>
    %cst_24 = arith.constant 0.000000e+00 : f32
    %99 = vector.broadcast %cst_24 : f32 to vector<1x128xf32>
    %cst_25 = arith.constant 0.000000e+00 : f32
    %100 = vector.broadcast %cst_25 : f32 to vector<1x128xf32>
    %101 = arith.mulf %81, %91 : vector<1x128xf32>
    %102 = vector.broadcast %0 : f32 to vector<1x128xf32>
    %103 = arith.mulf %102, %101 : vector<1x128xf32>
    %104 = arith.addf %96, %103 : vector<1x128xf32>
    %105 = vector.broadcast %1 : f32 to vector<1x128xf32>
    %106 = arith.mulf %105, %101 : vector<1x128xf32>
    %107 = arith.addf %97, %106 : vector<1x128xf32>
    %108 = vector.broadcast %2 : f32 to vector<1x128xf32>
    %109 = arith.mulf %108, %101 : vector<1x128xf32>
    %110 = arith.addf %98, %109 : vector<1x128xf32>
    %111 = vector.broadcast %3 : f32 to vector<1x128xf32>
    %112 = arith.mulf %111, %101 : vector<1x128xf32>
    %113 = arith.addf %99, %112 : vector<1x128xf32>
    %114 = vector.broadcast %4 : f32 to vector<1x128xf32>
    %115 = arith.mulf %114, %101 : vector<1x128xf32>
    %116 = arith.addf %100, %115 : vector<1x128xf32>
    %117 = arith.mulf %81, %93 : vector<1x128xf32>
    %118 = vector.broadcast %5 : f32 to vector<1x128xf32>
    %119 = arith.mulf %118, %117 : vector<1x128xf32>
    %120 = arith.addf %104, %119 : vector<1x128xf32>
    %121 = vector.broadcast %6 : f32 to vector<1x128xf32>
    %122 = arith.mulf %121, %117 : vector<1x128xf32>
    %123 = arith.addf %107, %122 : vector<1x128xf32>
    %124 = vector.broadcast %7 : f32 to vector<1x128xf32>
    %125 = arith.mulf %124, %117 : vector<1x128xf32>
    %126 = arith.addf %110, %125 : vector<1x128xf32>
    %127 = vector.broadcast %8 : f32 to vector<1x128xf32>
    %128 = arith.mulf %127, %117 : vector<1x128xf32>
    %129 = arith.addf %113, %128 : vector<1x128xf32>
    %130 = vector.broadcast %9 : f32 to vector<1x128xf32>
    %131 = arith.mulf %130, %117 : vector<1x128xf32>
    %132 = arith.addf %116, %131 : vector<1x128xf32>
    %133 = arith.mulf %81, %95 : vector<1x128xf32>
    %134 = vector.broadcast %10 : f32 to vector<1x128xf32>
    %135 = arith.mulf %134, %133 : vector<1x128xf32>
    %136 = arith.addf %120, %135 : vector<1x128xf32>
    %137 = vector.broadcast %11 : f32 to vector<1x128xf32>
    %138 = arith.mulf %137, %133 : vector<1x128xf32>
    %139 = arith.addf %123, %138 : vector<1x128xf32>
    %140 = vector.broadcast %12 : f32 to vector<1x128xf32>
    %141 = arith.mulf %140, %133 : vector<1x128xf32>
    %142 = arith.addf %126, %141 : vector<1x128xf32>
    %143 = vector.broadcast %13 : f32 to vector<1x128xf32>
    %144 = arith.mulf %143, %133 : vector<1x128xf32>
    %145 = arith.addf %129, %144 : vector<1x128xf32>
    %146 = vector.broadcast %14 : f32 to vector<1x128xf32>
    %147 = arith.mulf %146, %133 : vector<1x128xf32>
    %148 = arith.addf %132, %147 : vector<1x128xf32>
    %149 = arith.mulf %83, %91 : vector<1x128xf32>
    %150 = vector.broadcast %15 : f32 to vector<1x128xf32>
    %151 = arith.mulf %150, %149 : vector<1x128xf32>
    %152 = arith.addf %136, %151 : vector<1x128xf32>
    %153 = vector.broadcast %16 : f32 to vector<1x128xf32>
    %154 = arith.mulf %153, %149 : vector<1x128xf32>
    %155 = arith.addf %139, %154 : vector<1x128xf32>
    %156 = vector.broadcast %17 : f32 to vector<1x128xf32>
    %157 = arith.mulf %156, %149 : vector<1x128xf32>
    %158 = arith.addf %142, %157 : vector<1x128xf32>
    %159 = vector.broadcast %18 : f32 to vector<1x128xf32>
    %160 = arith.mulf %159, %149 : vector<1x128xf32>
    %161 = arith.addf %145, %160 : vector<1x128xf32>
    %162 = vector.broadcast %19 : f32 to vector<1x128xf32>
    %163 = arith.mulf %162, %149 : vector<1x128xf32>
    %164 = arith.addf %148, %163 : vector<1x128xf32>
    %165 = arith.mulf %83, %93 : vector<1x128xf32>
    %166 = vector.broadcast %20 : f32 to vector<1x128xf32>
    %167 = arith.mulf %166, %165 : vector<1x128xf32>
    %168 = arith.addf %152, %167 : vector<1x128xf32>
    %169 = vector.broadcast %21 : f32 to vector<1x128xf32>
    %170 = arith.mulf %169, %165 : vector<1x128xf32>
    %171 = arith.addf %155, %170 : vector<1x128xf32>
    %172 = vector.broadcast %22 : f32 to vector<1x128xf32>
    %173 = arith.mulf %172, %165 : vector<1x128xf32>
    %174 = arith.addf %158, %173 : vector<1x128xf32>
    %175 = vector.broadcast %23 : f32 to vector<1x128xf32>
    %176 = arith.mulf %175, %165 : vector<1x128xf32>
    %177 = arith.addf %161, %176 : vector<1x128xf32>
    %178 = vector.broadcast %24 : f32 to vector<1x128xf32>
    %179 = arith.mulf %178, %165 : vector<1x128xf32>
    %180 = arith.addf %164, %179 : vector<1x128xf32>
    %181 = arith.mulf %83, %95 : vector<1x128xf32>
    %182 = vector.broadcast %25 : f32 to vector<1x128xf32>
    %183 = arith.mulf %182, %181 : vector<1x128xf32>
    %184 = arith.addf %168, %183 : vector<1x128xf32>
    %185 = vector.broadcast %26 : f32 to vector<1x128xf32>
    %186 = arith.mulf %185, %181 : vector<1x128xf32>
    %187 = arith.addf %171, %186 : vector<1x128xf32>
    %188 = vector.broadcast %27 : f32 to vector<1x128xf32>
    %189 = arith.mulf %188, %181 : vector<1x128xf32>
    %190 = arith.addf %174, %189 : vector<1x128xf32>
    %191 = vector.broadcast %28 : f32 to vector<1x128xf32>
    %192 = arith.mulf %191, %181 : vector<1x128xf32>
    %193 = arith.addf %177, %192 : vector<1x128xf32>
    %194 = vector.broadcast %29 : f32 to vector<1x128xf32>
    %195 = arith.mulf %194, %181 : vector<1x128xf32>
    %196 = arith.addf %180, %195 : vector<1x128xf32>
    %197 = arith.mulf %85, %91 : vector<1x128xf32>
    %198 = vector.broadcast %30 : f32 to vector<1x128xf32>
    %199 = arith.mulf %198, %197 : vector<1x128xf32>
    %200 = arith.addf %184, %199 : vector<1x128xf32>
    %201 = vector.broadcast %31 : f32 to vector<1x128xf32>
    %202 = arith.mulf %201, %197 : vector<1x128xf32>
    %203 = arith.addf %187, %202 : vector<1x128xf32>
    %204 = vector.broadcast %32 : f32 to vector<1x128xf32>
    %205 = arith.mulf %204, %197 : vector<1x128xf32>
    %206 = arith.addf %190, %205 : vector<1x128xf32>
    %207 = vector.broadcast %33 : f32 to vector<1x128xf32>
    %208 = arith.mulf %207, %197 : vector<1x128xf32>
    %209 = arith.addf %193, %208 : vector<1x128xf32>
    %210 = vector.broadcast %34 : f32 to vector<1x128xf32>
    %211 = arith.mulf %210, %197 : vector<1x128xf32>
    %212 = arith.addf %196, %211 : vector<1x128xf32>
    %213 = arith.mulf %85, %93 : vector<1x128xf32>
    %214 = vector.broadcast %35 : f32 to vector<1x128xf32>
    %215 = arith.mulf %214, %213 : vector<1x128xf32>
    %216 = arith.addf %200, %215 : vector<1x128xf32>
    %217 = vector.broadcast %36 : f32 to vector<1x128xf32>
    %218 = arith.mulf %217, %213 : vector<1x128xf32>
    %219 = arith.addf %203, %218 : vector<1x128xf32>
    %220 = vector.broadcast %37 : f32 to vector<1x128xf32>
    %221 = arith.mulf %220, %213 : vector<1x128xf32>
    %222 = arith.addf %206, %221 : vector<1x128xf32>
    %223 = vector.broadcast %38 : f32 to vector<1x128xf32>
    %224 = arith.mulf %223, %213 : vector<1x128xf32>
    %225 = arith.addf %209, %224 : vector<1x128xf32>
    %226 = vector.broadcast %39 : f32 to vector<1x128xf32>
    %227 = arith.mulf %226, %213 : vector<1x128xf32>
    %228 = arith.addf %212, %227 : vector<1x128xf32>
    %229 = arith.mulf %85, %95 : vector<1x128xf32>
    %230 = vector.broadcast %40 : f32 to vector<1x128xf32>
    %231 = arith.mulf %230, %229 : vector<1x128xf32>
    %232 = arith.addf %216, %231 : vector<1x128xf32>
    %233 = vector.broadcast %41 : f32 to vector<1x128xf32>
    %234 = arith.mulf %233, %229 : vector<1x128xf32>
    %235 = arith.addf %219, %234 : vector<1x128xf32>
    %236 = vector.broadcast %42 : f32 to vector<1x128xf32>
    %237 = arith.mulf %236, %229 : vector<1x128xf32>
    %238 = arith.addf %222, %237 : vector<1x128xf32>
    %239 = vector.broadcast %43 : f32 to vector<1x128xf32>
    %240 = arith.mulf %239, %229 : vector<1x128xf32>
    %241 = arith.addf %225, %240 : vector<1x128xf32>
    %242 = vector.broadcast %44 : f32 to vector<1x128xf32>
    %243 = arith.mulf %242, %229 : vector<1x128xf32>
    %244 = arith.addf %228, %243 : vector<1x128xf32>
    %245 = arith.mulf %87, %91 : vector<1x128xf32>
    %246 = vector.broadcast %45 : f32 to vector<1x128xf32>
    %247 = arith.mulf %246, %245 : vector<1x128xf32>
    %248 = arith.addf %232, %247 : vector<1x128xf32>
    %249 = vector.broadcast %46 : f32 to vector<1x128xf32>
    %250 = arith.mulf %249, %245 : vector<1x128xf32>
    %251 = arith.addf %235, %250 : vector<1x128xf32>
    %252 = vector.broadcast %47 : f32 to vector<1x128xf32>
    %253 = arith.mulf %252, %245 : vector<1x128xf32>
    %254 = arith.addf %238, %253 : vector<1x128xf32>
    %255 = vector.broadcast %48 : f32 to vector<1x128xf32>
    %256 = arith.mulf %255, %245 : vector<1x128xf32>
    %257 = arith.addf %241, %256 : vector<1x128xf32>
    %258 = vector.broadcast %49 : f32 to vector<1x128xf32>
    %259 = arith.mulf %258, %245 : vector<1x128xf32>
    %260 = arith.addf %244, %259 : vector<1x128xf32>
    %261 = arith.mulf %87, %93 : vector<1x128xf32>
    %262 = vector.broadcast %50 : f32 to vector<1x128xf32>
    %263 = arith.mulf %262, %261 : vector<1x128xf32>
    %264 = arith.addf %248, %263 : vector<1x128xf32>
    %265 = vector.broadcast %51 : f32 to vector<1x128xf32>
    %266 = arith.mulf %265, %261 : vector<1x128xf32>
    %267 = arith.addf %251, %266 : vector<1x128xf32>
    %268 = vector.broadcast %52 : f32 to vector<1x128xf32>
    %269 = arith.mulf %268, %261 : vector<1x128xf32>
    %270 = arith.addf %254, %269 : vector<1x128xf32>
    %271 = vector.broadcast %53 : f32 to vector<1x128xf32>
    %272 = arith.mulf %271, %261 : vector<1x128xf32>
    %273 = arith.addf %257, %272 : vector<1x128xf32>
    %274 = vector.broadcast %54 : f32 to vector<1x128xf32>
    %275 = arith.mulf %274, %261 : vector<1x128xf32>
    %276 = arith.addf %260, %275 : vector<1x128xf32>
    %277 = arith.mulf %87, %95 : vector<1x128xf32>
    %278 = vector.broadcast %55 : f32 to vector<1x128xf32>
    %279 = arith.mulf %278, %277 : vector<1x128xf32>
    %280 = arith.addf %264, %279 : vector<1x128xf32>
    %281 = vector.broadcast %56 : f32 to vector<1x128xf32>
    %282 = arith.mulf %281, %277 : vector<1x128xf32>
    %283 = arith.addf %267, %282 : vector<1x128xf32>
    %284 = vector.broadcast %57 : f32 to vector<1x128xf32>
    %285 = arith.mulf %284, %277 : vector<1x128xf32>
    %286 = arith.addf %270, %285 : vector<1x128xf32>
    %287 = vector.broadcast %58 : f32 to vector<1x128xf32>
    %288 = arith.mulf %287, %277 : vector<1x128xf32>
    %289 = arith.addf %273, %288 : vector<1x128xf32>
    %290 = vector.broadcast %59 : f32 to vector<1x128xf32>
    %291 = arith.mulf %290, %277 : vector<1x128xf32>
    %292 = arith.addf %276, %291 : vector<1x128xf32>
    %293 = arith.mulf %89, %91 : vector<1x128xf32>
    %294 = vector.broadcast %60 : f32 to vector<1x128xf32>
    %295 = arith.mulf %294, %293 : vector<1x128xf32>
    %296 = arith.addf %280, %295 : vector<1x128xf32>
    %297 = vector.broadcast %61 : f32 to vector<1x128xf32>
    %298 = arith.mulf %297, %293 : vector<1x128xf32>
    %299 = arith.addf %283, %298 : vector<1x128xf32>
    %300 = vector.broadcast %62 : f32 to vector<1x128xf32>
    %301 = arith.mulf %300, %293 : vector<1x128xf32>
    %302 = arith.addf %286, %301 : vector<1x128xf32>
    %303 = vector.broadcast %63 : f32 to vector<1x128xf32>
    %304 = arith.mulf %303, %293 : vector<1x128xf32>
    %305 = arith.addf %289, %304 : vector<1x128xf32>
    %306 = vector.broadcast %64 : f32 to vector<1x128xf32>
    %307 = arith.mulf %306, %293 : vector<1x128xf32>
    %308 = arith.addf %292, %307 : vector<1x128xf32>
    %309 = arith.mulf %89, %93 : vector<1x128xf32>
    %310 = vector.broadcast %65 : f32 to vector<1x128xf32>
    %311 = arith.mulf %310, %309 : vector<1x128xf32>
    %312 = arith.addf %296, %311 : vector<1x128xf32>
    %313 = vector.broadcast %66 : f32 to vector<1x128xf32>
    %314 = arith.mulf %313, %309 : vector<1x128xf32>
    %315 = arith.addf %299, %314 : vector<1x128xf32>
    %316 = vector.broadcast %67 : f32 to vector<1x128xf32>
    %317 = arith.mulf %316, %309 : vector<1x128xf32>
    %318 = arith.addf %302, %317 : vector<1x128xf32>
    %319 = vector.broadcast %68 : f32 to vector<1x128xf32>
    %320 = arith.mulf %319, %309 : vector<1x128xf32>
    %321 = arith.addf %305, %320 : vector<1x128xf32>
    %322 = vector.broadcast %69 : f32 to vector<1x128xf32>
    %323 = arith.mulf %322, %309 : vector<1x128xf32>
    %324 = arith.addf %308, %323 : vector<1x128xf32>
    %325 = arith.mulf %89, %95 : vector<1x128xf32>
    %326 = vector.broadcast %70 : f32 to vector<1x128xf32>
    %327 = arith.mulf %326, %325 : vector<1x128xf32>
    %328 = arith.addf %312, %327 : vector<1x128xf32>
    %329 = vector.broadcast %71 : f32 to vector<1x128xf32>
    %330 = arith.mulf %329, %325 : vector<1x128xf32>
    %331 = arith.addf %315, %330 : vector<1x128xf32>
    %332 = vector.broadcast %72 : f32 to vector<1x128xf32>
    %333 = arith.mulf %332, %325 : vector<1x128xf32>
    %334 = arith.addf %318, %333 : vector<1x128xf32>
    %335 = vector.broadcast %73 : f32 to vector<1x128xf32>
    %336 = arith.mulf %335, %325 : vector<1x128xf32>
    %337 = arith.addf %321, %336 : vector<1x128xf32>
    %338 = vector.broadcast %74 : f32 to vector<1x128xf32>
    %339 = arith.mulf %338, %325 : vector<1x128xf32>
    %340 = arith.addf %324, %339 : vector<1x128xf32>
    %c1_26 = arith.constant 1 : index
    %c0_27 = arith.constant 0 : index
    %c0_28 = arith.constant 0 : index
    %c0_29 = arith.constant 0 : index
    %341 = vector.load %arg4[%c1_26, %c0_27, %c0_28, %c0_29] : memref<8x3x1x128xf32, #tpu.memory_space<vmem>>, vector<1x1x1x128xf32>
    %342 = vector.shape_cast %341 : vector<1x1x1x128xf32> to vector<1x128xf32>
    %c1_30 = arith.constant 1 : index
    %c1_31 = arith.constant 1 : index
    %c0_32 = arith.constant 0 : index
    %c0_33 = arith.constant 0 : index
    %343 = vector.load %arg4[%c1_30, %c1_31, %c0_32, %c0_33] : memref<8x3x1x128xf32, #tpu.memory_space<vmem>>, vector<1x1x1x128xf32>
    %344 = vector.shape_cast %343 : vector<1x1x1x128xf32> to vector<1x128xf32>
    %c1_34 = arith.constant 1 : index
    %c2_35 = arith.constant 2 : index
    %c0_36 = arith.constant 0 : index
    %c0_37 = arith.constant 0 : index
    %345 = vector.load %arg4[%c1_34, %c2_35, %c0_36, %c0_37] : memref<8x3x1x128xf32, #tpu.memory_space<vmem>>, vector<1x1x1x128xf32>
    %346 = vector.shape_cast %345 : vector<1x1x1x128xf32> to vector<1x128xf32>
    %cst_38 = arith.constant 0.000000e+00 : f32
    %347 = vector.broadcast %cst_38 : f32 to vector<1x128xf32>
    %cst_39 = arith.constant 0.000000e+00 : f32
    %348 = vector.broadcast %cst_39 : f32 to vector<1x128xf32>
    %cst_40 = arith.constant 0.000000e+00 : f32
    %349 = vector.broadcast %cst_40 : f32 to vector<1x128xf32>
    %cst_41 = arith.constant 0.000000e+00 : f32
    %350 = vector.broadcast %cst_41 : f32 to vector<1x128xf32>
    %cst_42 = arith.constant 0.000000e+00 : f32
    %351 = vector.broadcast %cst_42 : f32 to vector<1x128xf32>
    %352 = arith.mulf %328, %342 : vector<1x128xf32>
    %353 = vector.broadcast %0 : f32 to vector<1x128xf32>
    %354 = arith.mulf %353, %352 : vector<1x128xf32>
    %355 = arith.addf %347, %354 : vector<1x128xf32>
    %356 = vector.broadcast %1 : f32 to vector<1x128xf32>
    %357 = arith.mulf %356, %352 : vector<1x128xf32>
    %358 = arith.addf %348, %357 : vector<1x128xf32>
    %359 = vector.broadcast %2 : f32 to vector<1x128xf32>
    %360 = arith.mulf %359, %352 : vector<1x128xf32>
    %361 = arith.addf %349, %360 : vector<1x128xf32>
    %362 = vector.broadcast %3 : f32 to vector<1x128xf32>
    %363 = arith.mulf %362, %352 : vector<1x128xf32>
    %364 = arith.addf %350, %363 : vector<1x128xf32>
    %365 = vector.broadcast %4 : f32 to vector<1x128xf32>
    %366 = arith.mulf %365, %352 : vector<1x128xf32>
    %367 = arith.addf %351, %366 : vector<1x128xf32>
    %368 = arith.mulf %328, %344 : vector<1x128xf32>
    %369 = vector.broadcast %5 : f32 to vector<1x128xf32>
    %370 = arith.mulf %369, %368 : vector<1x128xf32>
    %371 = arith.addf %355, %370 : vector<1x128xf32>
    %372 = vector.broadcast %6 : f32 to vector<1x128xf32>
    %373 = arith.mulf %372, %368 : vector<1x128xf32>
    %374 = arith.addf %358, %373 : vector<1x128xf32>
    %375 = vector.broadcast %7 : f32 to vector<1x128xf32>
    %376 = arith.mulf %375, %368 : vector<1x128xf32>
    %377 = arith.addf %361, %376 : vector<1x128xf32>
    %378 = vector.broadcast %8 : f32 to vector<1x128xf32>
    %379 = arith.mulf %378, %368 : vector<1x128xf32>
    %380 = arith.addf %364, %379 : vector<1x128xf32>
    %381 = vector.broadcast %9 : f32 to vector<1x128xf32>
    %382 = arith.mulf %381, %368 : vector<1x128xf32>
    %383 = arith.addf %367, %382 : vector<1x128xf32>
    %384 = arith.mulf %328, %346 : vector<1x128xf32>
    %385 = vector.broadcast %10 : f32 to vector<1x128xf32>
    %386 = arith.mulf %385, %384 : vector<1x128xf32>
    %387 = arith.addf %371, %386 : vector<1x128xf32>
    %388 = vector.broadcast %11 : f32 to vector<1x128xf32>
    %389 = arith.mulf %388, %384 : vector<1x128xf32>
    %390 = arith.addf %374, %389 : vector<1x128xf32>
    %391 = vector.broadcast %12 : f32 to vector<1x128xf32>
    %392 = arith.mulf %391, %384 : vector<1x128xf32>
    %393 = arith.addf %377, %392 : vector<1x128xf32>
    %394 = vector.broadcast %13 : f32 to vector<1x128xf32>
    %395 = arith.mulf %394, %384 : vector<1x128xf32>
    %396 = arith.addf %380, %395 : vector<1x128xf32>
    %397 = vector.broadcast %14 : f32 to vector<1x128xf32>
    %398 = arith.mulf %397, %384 : vector<1x128xf32>
    %399 = arith.addf %383, %398 : vector<1x128xf32>
    %400 = arith.mulf %331, %342 : vector<1x128xf32>
    %401 = vector.broadcast %15 : f32 to vector<1x128xf32>
    %402 = arith.mulf %401, %400 : vector<1x128xf32>
    %403 = arith.addf %387, %402 : vector<1x128xf32>
    %404 = vector.broadcast %16 : f32 to vector<1x128xf32>
    %405 = arith.mulf %404, %400 : vector<1x128xf32>
    %406 = arith.addf %390, %405 : vector<1x128xf32>
    %407 = vector.broadcast %17 : f32 to vector<1x128xf32>
    %408 = arith.mulf %407, %400 : vector<1x128xf32>
    %409 = arith.addf %393, %408 : vector<1x128xf32>
    %410 = vector.broadcast %18 : f32 to vector<1x128xf32>
    %411 = arith.mulf %410, %400 : vector<1x128xf32>
    %412 = arith.addf %396, %411 : vector<1x128xf32>
    %413 = vector.broadcast %19 : f32 to vector<1x128xf32>
    %414 = arith.mulf %413, %400 : vector<1x128xf32>
    %415 = arith.addf %399, %414 : vector<1x128xf32>
    %416 = arith.mulf %331, %344 : vector<1x128xf32>
    %417 = vector.broadcast %20 : f32 to vector<1x128xf32>
    %418 = arith.mulf %417, %416 : vector<1x128xf32>
    %419 = arith.addf %403, %418 : vector<1x128xf32>
    %420 = vector.broadcast %21 : f32 to vector<1x128xf32>
    %421 = arith.mulf %420, %416 : vector<1x128xf32>
    %422 = arith.addf %406, %421 : vector<1x128xf32>
    %423 = vector.broadcast %22 : f32 to vector<1x128xf32>
    %424 = arith.mulf %423, %416 : vector<1x128xf32>
    %425 = arith.addf %409, %424 : vector<1x128xf32>
    %426 = vector.broadcast %23 : f32 to vector<1x128xf32>
    %427 = arith.mulf %426, %416 : vector<1x128xf32>
    %428 = arith.addf %412, %427 : vector<1x128xf32>
    %429 = vector.broadcast %24 : f32 to vector<1x128xf32>
    %430 = arith.mulf %429, %416 : vector<1x128xf32>
    %431 = arith.addf %415, %430 : vector<1x128xf32>
    %432 = arith.mulf %331, %346 : vector<1x128xf32>
    %433 = vector.broadcast %25 : f32 to vector<1x128xf32>
    %434 = arith.mulf %433, %432 : vector<1x128xf32>
    %435 = arith.addf %419, %434 : vector<1x128xf32>
    %436 = vector.broadcast %26 : f32 to vector<1x128xf32>
    %437 = arith.mulf %436, %432 : vector<1x128xf32>
    %438 = arith.addf %422, %437 : vector<1x128xf32>
    %439 = vector.broadcast %27 : f32 to vector<1x128xf32>
    %440 = arith.mulf %439, %432 : vector<1x128xf32>
    %441 = arith.addf %425, %440 : vector<1x128xf32>
    %442 = vector.broadcast %28 : f32 to vector<1x128xf32>
    %443 = arith.mulf %442, %432 : vector<1x128xf32>
    %444 = arith.addf %428, %443 : vector<1x128xf32>
    %445 = vector.broadcast %29 : f32 to vector<1x128xf32>
    %446 = arith.mulf %445, %432 : vector<1x128xf32>
    %447 = arith.addf %431, %446 : vector<1x128xf32>
    %448 = arith.mulf %334, %342 : vector<1x128xf32>
    %449 = vector.broadcast %30 : f32 to vector<1x128xf32>
    %450 = arith.mulf %449, %448 : vector<1x128xf32>
    %451 = arith.addf %435, %450 : vector<1x128xf32>
    %452 = vector.broadcast %31 : f32 to vector<1x128xf32>
    %453 = arith.mulf %452, %448 : vector<1x128xf32>
    %454 = arith.addf %438, %453 : vector<1x128xf32>
    %455 = vector.broadcast %32 : f32 to vector<1x128xf32>
    %456 = arith.mulf %455, %448 : vector<1x128xf32>
    %457 = arith.addf %441, %456 : vector<1x128xf32>
    %458 = vector.broadcast %33 : f32 to vector<1x128xf32>
    %459 = arith.mulf %458, %448 : vector<1x128xf32>
    %460 = arith.addf %444, %459 : vector<1x128xf32>
    %461 = vector.broadcast %34 : f32 to vector<1x128xf32>
    %462 = arith.mulf %461, %448 : vector<1x128xf32>
    %463 = arith.addf %447, %462 : vector<1x128xf32>
    %464 = arith.mulf %334, %344 : vector<1x128xf32>
    %465 = vector.broadcast %35 : f32 to vector<1x128xf32>
    %466 = arith.mulf %465, %464 : vector<1x128xf32>
    %467 = arith.addf %451, %466 : vector<1x128xf32>
    %468 = vector.broadcast %36 : f32 to vector<1x128xf32>
    %469 = arith.mulf %468, %464 : vector<1x128xf32>
    %470 = arith.addf %454, %469 : vector<1x128xf32>
    %471 = vector.broadcast %37 : f32 to vector<1x128xf32>
    %472 = arith.mulf %471, %464 : vector<1x128xf32>
    %473 = arith.addf %457, %472 : vector<1x128xf32>
    %474 = vector.broadcast %38 : f32 to vector<1x128xf32>
    %475 = arith.mulf %474, %464 : vector<1x128xf32>
    %476 = arith.addf %460, %475 : vector<1x128xf32>
    %477 = vector.broadcast %39 : f32 to vector<1x128xf32>
    %478 = arith.mulf %477, %464 : vector<1x128xf32>
    %479 = arith.addf %463, %478 : vector<1x128xf32>
    %480 = arith.mulf %334, %346 : vector<1x128xf32>
    %481 = vector.broadcast %40 : f32 to vector<1x128xf32>
    %482 = arith.mulf %481, %480 : vector<1x128xf32>
    %483 = arith.addf %467, %482 : vector<1x128xf32>
    %484 = vector.broadcast %41 : f32 to vector<1x128xf32>
    %485 = arith.mulf %484, %480 : vector<1x128xf32>
    %486 = arith.addf %470, %485 : vector<1x128xf32>
    %487 = vector.broadcast %42 : f32 to vector<1x128xf32>
    %488 = arith.mulf %487, %480 : vector<1x128xf32>
    %489 = arith.addf %473, %488 : vector<1x128xf32>
    %490 = vector.broadcast %43 : f32 to vector<1x128xf32>
    %491 = arith.mulf %490, %480 : vector<1x128xf32>
    %492 = arith.addf %476, %491 : vector<1x128xf32>
    %493 = vector.broadcast %44 : f32 to vector<1x128xf32>
    %494 = arith.mulf %493, %480 : vector<1x128xf32>
    %495 = arith.addf %479, %494 : vector<1x128xf32>
    %496 = arith.mulf %337, %342 : vector<1x128xf32>
    %497 = vector.broadcast %45 : f32 to vector<1x128xf32>
    %498 = arith.mulf %497, %496 : vector<1x128xf32>
    %499 = arith.addf %483, %498 : vector<1x128xf32>
    %500 = vector.broadcast %46 : f32 to vector<1x128xf32>
    %501 = arith.mulf %500, %496 : vector<1x128xf32>
    %502 = arith.addf %486, %501 : vector<1x128xf32>
    %503 = vector.broadcast %47 : f32 to vector<1x128xf32>
    %504 = arith.mulf %503, %496 : vector<1x128xf32>
    %505 = arith.addf %489, %504 : vector<1x128xf32>
    %506 = vector.broadcast %48 : f32 to vector<1x128xf32>
    %507 = arith.mulf %506, %496 : vector<1x128xf32>
    %508 = arith.addf %492, %507 : vector<1x128xf32>
    %509 = vector.broadcast %49 : f32 to vector<1x128xf32>
    %510 = arith.mulf %509, %496 : vector<1x128xf32>
    %511 = arith.addf %495, %510 : vector<1x128xf32>
    %512 = arith.mulf %337, %344 : vector<1x128xf32>
    %513 = vector.broadcast %50 : f32 to vector<1x128xf32>
    %514 = arith.mulf %513, %512 : vector<1x128xf32>
    %515 = arith.addf %499, %514 : vector<1x128xf32>
    %516 = vector.broadcast %51 : f32 to vector<1x128xf32>
    %517 = arith.mulf %516, %512 : vector<1x128xf32>
    %518 = arith.addf %502, %517 : vector<1x128xf32>
    %519 = vector.broadcast %52 : f32 to vector<1x128xf32>
    %520 = arith.mulf %519, %512 : vector<1x128xf32>
    %521 = arith.addf %505, %520 : vector<1x128xf32>
    %522 = vector.broadcast %53 : f32 to vector<1x128xf32>
    %523 = arith.mulf %522, %512 : vector<1x128xf32>
    %524 = arith.addf %508, %523 : vector<1x128xf32>
    %525 = vector.broadcast %54 : f32 to vector<1x128xf32>
    %526 = arith.mulf %525, %512 : vector<1x128xf32>
    %527 = arith.addf %511, %526 : vector<1x128xf32>
    %528 = arith.mulf %337, %346 : vector<1x128xf32>
    %529 = vector.broadcast %55 : f32 to vector<1x128xf32>
    %530 = arith.mulf %529, %528 : vector<1x128xf32>
    %531 = arith.addf %515, %530 : vector<1x128xf32>
    %532 = vector.broadcast %56 : f32 to vector<1x128xf32>
    %533 = arith.mulf %532, %528 : vector<1x128xf32>
    %534 = arith.addf %518, %533 : vector<1x128xf32>
    %535 = vector.broadcast %57 : f32 to vector<1x128xf32>
    %536 = arith.mulf %535, %528 : vector<1x128xf32>
    %537 = arith.addf %521, %536 : vector<1x128xf32>
    %538 = vector.broadcast %58 : f32 to vector<1x128xf32>
    %539 = arith.mulf %538, %528 : vector<1x128xf32>
    %540 = arith.addf %524, %539 : vector<1x128xf32>
    %541 = vector.broadcast %59 : f32 to vector<1x128xf32>
    %542 = arith.mulf %541, %528 : vector<1x128xf32>
    %543 = arith.addf %527, %542 : vector<1x128xf32>
    %544 = arith.mulf %340, %342 : vector<1x128xf32>
    %545 = vector.broadcast %60 : f32 to vector<1x128xf32>
    %546 = arith.mulf %545, %544 : vector<1x128xf32>
    %547 = arith.addf %531, %546 : vector<1x128xf32>
    %548 = vector.broadcast %61 : f32 to vector<1x128xf32>
    %549 = arith.mulf %548, %544 : vector<1x128xf32>
    %550 = arith.addf %534, %549 : vector<1x128xf32>
    %551 = vector.broadcast %62 : f32 to vector<1x128xf32>
    %552 = arith.mulf %551, %544 : vector<1x128xf32>
    %553 = arith.addf %537, %552 : vector<1x128xf32>
    %554 = vector.broadcast %63 : f32 to vector<1x128xf32>
    %555 = arith.mulf %554, %544 : vector<1x128xf32>
    %556 = arith.addf %540, %555 : vector<1x128xf32>
    %557 = vector.broadcast %64 : f32 to vector<1x128xf32>
    %558 = arith.mulf %557, %544 : vector<1x128xf32>
    %559 = arith.addf %543, %558 : vector<1x128xf32>
    %560 = arith.mulf %340, %344 : vector<1x128xf32>
    %561 = vector.broadcast %65 : f32 to vector<1x128xf32>
    %562 = arith.mulf %561, %560 : vector<1x128xf32>
    %563 = arith.addf %547, %562 : vector<1x128xf32>
    %564 = vector.broadcast %66 : f32 to vector<1x128xf32>
    %565 = arith.mulf %564, %560 : vector<1x128xf32>
    %566 = arith.addf %550, %565 : vector<1x128xf32>
    %567 = vector.broadcast %67 : f32 to vector<1x128xf32>
    %568 = arith.mulf %567, %560 : vector<1x128xf32>
    %569 = arith.addf %553, %568 : vector<1x128xf32>
    %570 = vector.broadcast %68 : f32 to vector<1x128xf32>
    %571 = arith.mulf %570, %560 : vector<1x128xf32>
    %572 = arith.addf %556, %571 : vector<1x128xf32>
    %573 = vector.broadcast %69 : f32 to vector<1x128xf32>
    %574 = arith.mulf %573, %560 : vector<1x128xf32>
    %575 = arith.addf %559, %574 : vector<1x128xf32>
    %576 = arith.mulf %340, %346 : vector<1x128xf32>
    %577 = vector.broadcast %70 : f32 to vector<1x128xf32>
    %578 = arith.mulf %577, %576 : vector<1x128xf32>
    %579 = arith.addf %563, %578 : vector<1x128xf32>
    %580 = vector.broadcast %71 : f32 to vector<1x128xf32>
    %581 = arith.mulf %580, %576 : vector<1x128xf32>
    %582 = arith.addf %566, %581 : vector<1x128xf32>
    %583 = vector.broadcast %72 : f32 to vector<1x128xf32>
    %584 = arith.mulf %583, %576 : vector<1x128xf32>
    %585 = arith.addf %569, %584 : vector<1x128xf32>
    %586 = vector.broadcast %73 : f32 to vector<1x128xf32>
    %587 = arith.mulf %586, %576 : vector<1x128xf32>
    %588 = arith.addf %572, %587 : vector<1x128xf32>
    %589 = vector.broadcast %74 : f32 to vector<1x128xf32>
    %590 = arith.mulf %589, %576 : vector<1x128xf32>
    %591 = arith.addf %575, %590 : vector<1x128xf32>
    %c2_43 = arith.constant 2 : index
    %c0_44 = arith.constant 0 : index
    %c0_45 = arith.constant 0 : index
    %c0_46 = arith.constant 0 : index
    %592 = vector.load %arg4[%c2_43, %c0_44, %c0_45, %c0_46] : memref<8x3x1x128xf32, #tpu.memory_space<vmem>>, vector<1x1x1x128xf32>
    %593 = vector.shape_cast %592 : vector<1x1x1x128xf32> to vector<1x128xf32>
    %c2_47 = arith.constant 2 : index
    %c1_48 = arith.constant 1 : index
    %c0_49 = arith.constant 0 : index
    %c0_50 = arith.constant 0 : index
    %594 = vector.load %arg4[%c2_47, %c1_48, %c0_49, %c0_50] : memref<8x3x1x128xf32, #tpu.memory_space<vmem>>, vector<1x1x1x128xf32>
    %595 = vector.shape_cast %594 : vector<1x1x1x128xf32> to vector<1x128xf32>
    %c2_51 = arith.constant 2 : index
    %c2_52 = arith.constant 2 : index
    %c0_53 = arith.constant 0 : index
    %c0_54 = arith.constant 0 : index
    %596 = vector.load %arg4[%c2_51, %c2_52, %c0_53, %c0_54] : memref<8x3x1x128xf32, #tpu.memory_space<vmem>>, vector<1x1x1x128xf32>
    %597 = vector.shape_cast %596 : vector<1x1x1x128xf32> to vector<1x128xf32>
    %cst_55 = arith.constant 0.000000e+00 : f32
    %598 = vector.broadcast %cst_55 : f32 to vector<1x128xf32>
    %cst_56 = arith.constant 0.000000e+00 : f32
    %599 = vector.broadcast %cst_56 : f32 to vector<1x128xf32>
    %cst_57 = arith.constant 0.000000e+00 : f32
    %600 = vector.broadcast %cst_57 : f32 to vector<1x128xf32>
    %cst_58 = arith.constant 0.000000e+00 : f32
    %601 = vector.broadcast %cst_58 : f32 to vector<1x128xf32>
    %cst_59 = arith.constant 0.000000e+00 : f32
    %602 = vector.broadcast %cst_59 : f32 to vector<1x128xf32>
    %603 = arith.mulf %579, %593 : vector<1x128xf32>
    %604 = vector.broadcast %0 : f32 to vector<1x128xf32>
    %605 = arith.mulf %604, %603 : vector<1x128xf32>
    %606 = arith.addf %598, %605 : vector<1x128xf32>
    %607 = vector.broadcast %1 : f32 to vector<1x128xf32>
    %608 = arith.mulf %607, %603 : vector<1x128xf32>
    %609 = arith.addf %599, %608 : vector<1x128xf32>
    %610 = vector.broadcast %2 : f32 to vector<1x128xf32>
    %611 = arith.mulf %610, %603 : vector<1x128xf32>
    %612 = arith.addf %600, %611 : vector<1x128xf32>
    %613 = vector.broadcast %3 : f32 to vector<1x128xf32>
    %614 = arith.mulf %613, %603 : vector<1x128xf32>
    %615 = arith.addf %601, %614 : vector<1x128xf32>
    %616 = vector.broadcast %4 : f32 to vector<1x128xf32>
    %617 = arith.mulf %616, %603 : vector<1x128xf32>
    %618 = arith.addf %602, %617 : vector<1x128xf32>
    %619 = arith.mulf %579, %595 : vector<1x128xf32>
    %620 = vector.broadcast %5 : f32 to vector<1x128xf32>
    %621 = arith.mulf %620, %619 : vector<1x128xf32>
    %622 = arith.addf %606, %621 : vector<1x128xf32>
    %623 = vector.broadcast %6 : f32 to vector<1x128xf32>
    %624 = arith.mulf %623, %619 : vector<1x128xf32>
    %625 = arith.addf %609, %624 : vector<1x128xf32>
    %626 = vector.broadcast %7 : f32 to vector<1x128xf32>
    %627 = arith.mulf %626, %619 : vector<1x128xf32>
    %628 = arith.addf %612, %627 : vector<1x128xf32>
    %629 = vector.broadcast %8 : f32 to vector<1x128xf32>
    %630 = arith.mulf %629, %619 : vector<1x128xf32>
    %631 = arith.addf %615, %630 : vector<1x128xf32>
    %632 = vector.broadcast %9 : f32 to vector<1x128xf32>
    %633 = arith.mulf %632, %619 : vector<1x128xf32>
    %634 = arith.addf %618, %633 : vector<1x128xf32>
    %635 = arith.mulf %579, %597 : vector<1x128xf32>
    %636 = vector.broadcast %10 : f32 to vector<1x128xf32>
    %637 = arith.mulf %636, %635 : vector<1x128xf32>
    %638 = arith.addf %622, %637 : vector<1x128xf32>
    %639 = vector.broadcast %11 : f32 to vector<1x128xf32>
    %640 = arith.mulf %639, %635 : vector<1x128xf32>
    %641 = arith.addf %625, %640 : vector<1x128xf32>
    %642 = vector.broadcast %12 : f32 to vector<1x128xf32>
    %643 = arith.mulf %642, %635 : vector<1x128xf32>
    %644 = arith.addf %628, %643 : vector<1x128xf32>
    %645 = vector.broadcast %13 : f32 to vector<1x128xf32>
    %646 = arith.mulf %645, %635 : vector<1x128xf32>
    %647 = arith.addf %631, %646 : vector<1x128xf32>
    %648 = vector.broadcast %14 : f32 to vector<1x128xf32>
    %649 = arith.mulf %648, %635 : vector<1x128xf32>
    %650 = arith.addf %634, %649 : vector<1x128xf32>
    %651 = arith.mulf %582, %593 : vector<1x128xf32>
    %652 = vector.broadcast %15 : f32 to vector<1x128xf32>
    %653 = arith.mulf %652, %651 : vector<1x128xf32>
    %654 = arith.addf %638, %653 : vector<1x128xf32>
    %655 = vector.broadcast %16 : f32 to vector<1x128xf32>
    %656 = arith.mulf %655, %651 : vector<1x128xf32>
    %657 = arith.addf %641, %656 : vector<1x128xf32>
    %658 = vector.broadcast %17 : f32 to vector<1x128xf32>
    %659 = arith.mulf %658, %651 : vector<1x128xf32>
    %660 = arith.addf %644, %659 : vector<1x128xf32>
    %661 = vector.broadcast %18 : f32 to vector<1x128xf32>
    %662 = arith.mulf %661, %651 : vector<1x128xf32>
    %663 = arith.addf %647, %662 : vector<1x128xf32>
    %664 = vector.broadcast %19 : f32 to vector<1x128xf32>
    %665 = arith.mulf %664, %651 : vector<1x128xf32>
    %666 = arith.addf %650, %665 : vector<1x128xf32>
    %667 = arith.mulf %582, %595 : vector<1x128xf32>
    %668 = vector.broadcast %20 : f32 to vector<1x128xf32>
    %669 = arith.mulf %668, %667 : vector<1x128xf32>
    %670 = arith.addf %654, %669 : vector<1x128xf32>
    %671 = vector.broadcast %21 : f32 to vector<1x128xf32>
    %672 = arith.mulf %671, %667 : vector<1x128xf32>
    %673 = arith.addf %657, %672 : vector<1x128xf32>
    %674 = vector.broadcast %22 : f32 to vector<1x128xf32>
    %675 = arith.mulf %674, %667 : vector<1x128xf32>
    %676 = arith.addf %660, %675 : vector<1x128xf32>
    %677 = vector.broadcast %23 : f32 to vector<1x128xf32>
    %678 = arith.mulf %677, %667 : vector<1x128xf32>
    %679 = arith.addf %663, %678 : vector<1x128xf32>
    %680 = vector.broadcast %24 : f32 to vector<1x128xf32>
    %681 = arith.mulf %680, %667 : vector<1x128xf32>
    %682 = arith.addf %666, %681 : vector<1x128xf32>
    %683 = arith.mulf %582, %597 : vector<1x128xf32>
    %684 = vector.broadcast %25 : f32 to vector<1x128xf32>
    %685 = arith.mulf %684, %683 : vector<1x128xf32>
    %686 = arith.addf %670, %685 : vector<1x128xf32>
    %687 = vector.broadcast %26 : f32 to vector<1x128xf32>
    %688 = arith.mulf %687, %683 : vector<1x128xf32>
    %689 = arith.addf %673, %688 : vector<1x128xf32>
    %690 = vector.broadcast %27 : f32 to vector<1x128xf32>
    %691 = arith.mulf %690, %683 : vector<1x128xf32>
    %692 = arith.addf %676, %691 : vector<1x128xf32>
    %693 = vector.broadcast %28 : f32 to vector<1x128xf32>
    %694 = arith.mulf %693, %683 : vector<1x128xf32>
    %695 = arith.addf %679, %694 : vector<1x128xf32>
    %696 = vector.broadcast %29 : f32 to vector<1x128xf32>
    %697 = arith.mulf %696, %683 : vector<1x128xf32>
    %698 = arith.addf %682, %697 : vector<1x128xf32>
    %699 = arith.mulf %585, %593 : vector<1x128xf32>
    %700 = vector.broadcast %30 : f32 to vector<1x128xf32>
    %701 = arith.mulf %700, %699 : vector<1x128xf32>
    %702 = arith.addf %686, %701 : vector<1x128xf32>
    %703 = vector.broadcast %31 : f32 to vector<1x128xf32>
    %704 = arith.mulf %703, %699 : vector<1x128xf32>
    %705 = arith.addf %689, %704 : vector<1x128xf32>
    %706 = vector.broadcast %32 : f32 to vector<1x128xf32>
    %707 = arith.mulf %706, %699 : vector<1x128xf32>
    %708 = arith.addf %692, %707 : vector<1x128xf32>
    %709 = vector.broadcast %33 : f32 to vector<1x128xf32>
    %710 = arith.mulf %709, %699 : vector<1x128xf32>
    %711 = arith.addf %695, %710 : vector<1x128xf32>
    %712 = vector.broadcast %34 : f32 to vector<1x128xf32>
    %713 = arith.mulf %712, %699 : vector<1x128xf32>
    %714 = arith.addf %698, %713 : vector<1x128xf32>
    %715 = arith.mulf %585, %595 : vector<1x128xf32>
    %716 = vector.broadcast %35 : f32 to vector<1x128xf32>
    %717 = arith.mulf %716, %715 : vector<1x128xf32>
    %718 = arith.addf %702, %717 : vector<1x128xf32>
    %719 = vector.broadcast %36 : f32 to vector<1x128xf32>
    %720 = arith.mulf %719, %715 : vector<1x128xf32>
    %721 = arith.addf %705, %720 : vector<1x128xf32>
    %722 = vector.broadcast %37 : f32 to vector<1x128xf32>
    %723 = arith.mulf %722, %715 : vector<1x128xf32>
    %724 = arith.addf %708, %723 : vector<1x128xf32>
    %725 = vector.broadcast %38 : f32 to vector<1x128xf32>
    %726 = arith.mulf %725, %715 : vector<1x128xf32>
    %727 = arith.addf %711, %726 : vector<1x128xf32>
    %728 = vector.broadcast %39 : f32 to vector<1x128xf32>
    %729 = arith.mulf %728, %715 : vector<1x128xf32>
    %730 = arith.addf %714, %729 : vector<1x128xf32>
    %731 = arith.mulf %585, %597 : vector<1x128xf32>
    %732 = vector.broadcast %40 : f32 to vector<1x128xf32>
    %733 = arith.mulf %732, %731 : vector<1x128xf32>
    %734 = arith.addf %718, %733 : vector<1x128xf32>
    %735 = vector.broadcast %41 : f32 to vector<1x128xf32>
    %736 = arith.mulf %735, %731 : vector<1x128xf32>
    %737 = arith.addf %721, %736 : vector<1x128xf32>
    %738 = vector.broadcast %42 : f32 to vector<1x128xf32>
    %739 = arith.mulf %738, %731 : vector<1x128xf32>
    %740 = arith.addf %724, %739 : vector<1x128xf32>
    %741 = vector.broadcast %43 : f32 to vector<1x128xf32>
    %742 = arith.mulf %741, %731 : vector<1x128xf32>
    %743 = arith.addf %727, %742 : vector<1x128xf32>
    %744 = vector.broadcast %44 : f32 to vector<1x128xf32>
    %745 = arith.mulf %744, %731 : vector<1x128xf32>
    %746 = arith.addf %730, %745 : vector<1x128xf32>
    %747 = arith.mulf %588, %593 : vector<1x128xf32>
    %748 = vector.broadcast %45 : f32 to vector<1x128xf32>
    %749 = arith.mulf %748, %747 : vector<1x128xf32>
    %750 = arith.addf %734, %749 : vector<1x128xf32>
    %751 = vector.broadcast %46 : f32 to vector<1x128xf32>
    %752 = arith.mulf %751, %747 : vector<1x128xf32>
    %753 = arith.addf %737, %752 : vector<1x128xf32>
    %754 = vector.broadcast %47 : f32 to vector<1x128xf32>
    %755 = arith.mulf %754, %747 : vector<1x128xf32>
    %756 = arith.addf %740, %755 : vector<1x128xf32>
    %757 = vector.broadcast %48 : f32 to vector<1x128xf32>
    %758 = arith.mulf %757, %747 : vector<1x128xf32>
    %759 = arith.addf %743, %758 : vector<1x128xf32>
    %760 = vector.broadcast %49 : f32 to vector<1x128xf32>
    %761 = arith.mulf %760, %747 : vector<1x128xf32>
    %762 = arith.addf %746, %761 : vector<1x128xf32>
    %763 = arith.mulf %588, %595 : vector<1x128xf32>
    %764 = vector.broadcast %50 : f32 to vector<1x128xf32>
    %765 = arith.mulf %764, %763 : vector<1x128xf32>
    %766 = arith.addf %750, %765 : vector<1x128xf32>
    %767 = vector.broadcast %51 : f32 to vector<1x128xf32>
    %768 = arith.mulf %767, %763 : vector<1x128xf32>
    %769 = arith.addf %753, %768 : vector<1x128xf32>
    %770 = vector.broadcast %52 : f32 to vector<1x128xf32>
    %771 = arith.mulf %770, %763 : vector<1x128xf32>
    %772 = arith.addf %756, %771 : vector<1x128xf32>
    %773 = vector.broadcast %53 : f32 to vector<1x128xf32>
    %774 = arith.mulf %773, %763 : vector<1x128xf32>
    %775 = arith.addf %759, %774 : vector<1x128xf32>
    %776 = vector.broadcast %54 : f32 to vector<1x128xf32>
    %777 = arith.mulf %776, %763 : vector<1x128xf32>
    %778 = arith.addf %762, %777 : vector<1x128xf32>
    %779 = arith.mulf %588, %597 : vector<1x128xf32>
    %780 = vector.broadcast %55 : f32 to vector<1x128xf32>
    %781 = arith.mulf %780, %779 : vector<1x128xf32>
    %782 = arith.addf %766, %781 : vector<1x128xf32>
    %783 = vector.broadcast %56 : f32 to vector<1x128xf32>
    %784 = arith.mulf %783, %779 : vector<1x128xf32>
    %785 = arith.addf %769, %784 : vector<1x128xf32>
    %786 = vector.broadcast %57 : f32 to vector<1x128xf32>
    %787 = arith.mulf %786, %779 : vector<1x128xf32>
    %788 = arith.addf %772, %787 : vector<1x128xf32>
    %789 = vector.broadcast %58 : f32 to vector<1x128xf32>
    %790 = arith.mulf %789, %779 : vector<1x128xf32>
    %791 = arith.addf %775, %790 : vector<1x128xf32>
    %792 = vector.broadcast %59 : f32 to vector<1x128xf32>
    %793 = arith.mulf %792, %779 : vector<1x128xf32>
    %794 = arith.addf %778, %793 : vector<1x128xf32>
    %795 = arith.mulf %591, %593 : vector<1x128xf32>
    %796 = vector.broadcast %60 : f32 to vector<1x128xf32>
    %797 = arith.mulf %796, %795 : vector<1x128xf32>
    %798 = arith.addf %782, %797 : vector<1x128xf32>
    %799 = vector.broadcast %61 : f32 to vector<1x128xf32>
    %800 = arith.mulf %799, %795 : vector<1x128xf32>
    %801 = arith.addf %785, %800 : vector<1x128xf32>
    %802 = vector.broadcast %62 : f32 to vector<1x128xf32>
    %803 = arith.mulf %802, %795 : vector<1x128xf32>
    %804 = arith.addf %788, %803 : vector<1x128xf32>
    %805 = vector.broadcast %63 : f32 to vector<1x128xf32>
    %806 = arith.mulf %805, %795 : vector<1x128xf32>
    %807 = arith.addf %791, %806 : vector<1x128xf32>
    %808 = vector.broadcast %64 : f32 to vector<1x128xf32>
    %809 = arith.mulf %808, %795 : vector<1x128xf32>
    %810 = arith.addf %794, %809 : vector<1x128xf32>
    %811 = arith.mulf %591, %595 : vector<1x128xf32>
    %812 = vector.broadcast %65 : f32 to vector<1x128xf32>
    %813 = arith.mulf %812, %811 : vector<1x128xf32>
    %814 = arith.addf %798, %813 : vector<1x128xf32>
    %815 = vector.broadcast %66 : f32 to vector<1x128xf32>
    %816 = arith.mulf %815, %811 : vector<1x128xf32>
    %817 = arith.addf %801, %816 : vector<1x128xf32>
    %818 = vector.broadcast %67 : f32 to vector<1x128xf32>
    %819 = arith.mulf %818, %811 : vector<1x128xf32>
    %820 = arith.addf %804, %819 : vector<1x128xf32>
    %821 = vector.broadcast %68 : f32 to vector<1x128xf32>
    %822 = arith.mulf %821, %811 : vector<1x128xf32>
    %823 = arith.addf %807, %822 : vector<1x128xf32>
    %824 = vector.broadcast %69 : f32 to vector<1x128xf32>
    %825 = arith.mulf %824, %811 : vector<1x128xf32>
    %826 = arith.addf %810, %825 : vector<1x128xf32>
    %827 = arith.mulf %591, %597 : vector<1x128xf32>
    %828 = vector.broadcast %70 : f32 to vector<1x128xf32>
    %829 = arith.mulf %828, %827 : vector<1x128xf32>
    %830 = arith.addf %814, %829 : vector<1x128xf32>
    %831 = vector.broadcast %71 : f32 to vector<1x128xf32>
    %832 = arith.mulf %831, %827 : vector<1x128xf32>
    %833 = arith.addf %817, %832 : vector<1x128xf32>
    %834 = vector.broadcast %72 : f32 to vector<1x128xf32>
    %835 = arith.mulf %834, %827 : vector<1x128xf32>
    %836 = arith.addf %820, %835 : vector<1x128xf32>
    %837 = vector.broadcast %73 : f32 to vector<1x128xf32>
    %838 = arith.mulf %837, %827 : vector<1x128xf32>
    %839 = arith.addf %823, %838 : vector<1x128xf32>
    %840 = vector.broadcast %74 : f32 to vector<1x128xf32>
    %841 = arith.mulf %840, %827 : vector<1x128xf32>
    %842 = arith.addf %826, %841 : vector<1x128xf32>
    %c3_60 = arith.constant 3 : index
    %c0_61 = arith.constant 0 : index
    %c0_62 = arith.constant 0 : index
    %c0_63 = arith.constant 0 : index
    %843 = vector.load %arg4[%c3_60, %c0_61, %c0_62, %c0_63] : memref<8x3x1x128xf32, #tpu.memory_space<vmem>>, vector<1x1x1x128xf32>
    %844 = vector.shape_cast %843 : vector<1x1x1x128xf32> to vector<1x128xf32>
    %c3_64 = arith.constant 3 : index
    %c1_65 = arith.constant 1 : index
    %c0_66 = arith.constant 0 : index
    %c0_67 = arith.constant 0 : index
    %845 = vector.load %arg4[%c3_64, %c1_65, %c0_66, %c0_67] : memref<8x3x1x128xf32, #tpu.memory_space<vmem>>, vector<1x1x1x128xf32>
    %846 = vector.shape_cast %845 : vector<1x1x1x128xf32> to vector<1x128xf32>
    %c3_68 = arith.constant 3 : index
    %c2_69 = arith.constant 2 : index
    %c0_70 = arith.constant 0 : index
    %c0_71 = arith.constant 0 : index
    %847 = vector.load %arg4[%c3_68, %c2_69, %c0_70, %c0_71] : memref<8x3x1x128xf32, #tpu.memory_space<vmem>>, vector<1x1x1x128xf32>
    %848 = vector.shape_cast %847 : vector<1x1x1x128xf32> to vector<1x128xf32>
    %cst_72 = arith.constant 0.000000e+00 : f32
    %849 = vector.broadcast %cst_72 : f32 to vector<1x128xf32>
    %cst_73 = arith.constant 0.000000e+00 : f32
    %850 = vector.broadcast %cst_73 : f32 to vector<1x128xf32>
    %cst_74 = arith.constant 0.000000e+00 : f32
    %851 = vector.broadcast %cst_74 : f32 to vector<1x128xf32>
    %cst_75 = arith.constant 0.000000e+00 : f32
    %852 = vector.broadcast %cst_75 : f32 to vector<1x128xf32>
    %cst_76 = arith.constant 0.000000e+00 : f32
    %853 = vector.broadcast %cst_76 : f32 to vector<1x128xf32>
    %854 = arith.mulf %830, %844 : vector<1x128xf32>
    %855 = vector.broadcast %0 : f32 to vector<1x128xf32>
    %856 = arith.mulf %855, %854 : vector<1x128xf32>
    %857 = arith.addf %849, %856 : vector<1x128xf32>
    %858 = vector.broadcast %1 : f32 to vector<1x128xf32>
    %859 = arith.mulf %858, %854 : vector<1x128xf32>
    %860 = arith.addf %850, %859 : vector<1x128xf32>
    %861 = vector.broadcast %2 : f32 to vector<1x128xf32>
    %862 = arith.mulf %861, %854 : vector<1x128xf32>
    %863 = arith.addf %851, %862 : vector<1x128xf32>
    %864 = vector.broadcast %3 : f32 to vector<1x128xf32>
    %865 = arith.mulf %864, %854 : vector<1x128xf32>
    %866 = arith.addf %852, %865 : vector<1x128xf32>
    %867 = vector.broadcast %4 : f32 to vector<1x128xf32>
    %868 = arith.mulf %867, %854 : vector<1x128xf32>
    %869 = arith.addf %853, %868 : vector<1x128xf32>
    %870 = arith.mulf %830, %846 : vector<1x128xf32>
    %871 = vector.broadcast %5 : f32 to vector<1x128xf32>
    %872 = arith.mulf %871, %870 : vector<1x128xf32>
    %873 = arith.addf %857, %872 : vector<1x128xf32>
    %874 = vector.broadcast %6 : f32 to vector<1x128xf32>
    %875 = arith.mulf %874, %870 : vector<1x128xf32>
    %876 = arith.addf %860, %875 : vector<1x128xf32>
    %877 = vector.broadcast %7 : f32 to vector<1x128xf32>
    %878 = arith.mulf %877, %870 : vector<1x128xf32>
    %879 = arith.addf %863, %878 : vector<1x128xf32>
    %880 = vector.broadcast %8 : f32 to vector<1x128xf32>
    %881 = arith.mulf %880, %870 : vector<1x128xf32>
    %882 = arith.addf %866, %881 : vector<1x128xf32>
    %883 = vector.broadcast %9 : f32 to vector<1x128xf32>
    %884 = arith.mulf %883, %870 : vector<1x128xf32>
    %885 = arith.addf %869, %884 : vector<1x128xf32>
    %886 = arith.mulf %830, %848 : vector<1x128xf32>
    %887 = vector.broadcast %10 : f32 to vector<1x128xf32>
    %888 = arith.mulf %887, %886 : vector<1x128xf32>
    %889 = arith.addf %873, %888 : vector<1x128xf32>
    %890 = vector.broadcast %11 : f32 to vector<1x128xf32>
    %891 = arith.mulf %890, %886 : vector<1x128xf32>
    %892 = arith.addf %876, %891 : vector<1x128xf32>
    %893 = vector.broadcast %12 : f32 to vector<1x128xf32>
    %894 = arith.mulf %893, %886 : vector<1x128xf32>
    %895 = arith.addf %879, %894 : vector<1x128xf32>
    %896 = vector.broadcast %13 : f32 to vector<1x128xf32>
    %897 = arith.mulf %896, %886 : vector<1x128xf32>
    %898 = arith.addf %882, %897 : vector<1x128xf32>
    %899 = vector.broadcast %14 : f32 to vector<1x128xf32>
    %900 = arith.mulf %899, %886 : vector<1x128xf32>
    %901 = arith.addf %885, %900 : vector<1x128xf32>
    %902 = arith.mulf %833, %844 : vector<1x128xf32>
    %903 = vector.broadcast %15 : f32 to vector<1x128xf32>
    %904 = arith.mulf %903, %902 : vector<1x128xf32>
    %905 = arith.addf %889, %904 : vector<1x128xf32>
    %906 = vector.broadcast %16 : f32 to vector<1x128xf32>
    %907 = arith.mulf %906, %902 : vector<1x128xf32>
    %908 = arith.addf %892, %907 : vector<1x128xf32>
    %909 = vector.broadcast %17 : f32 to vector<1x128xf32>
    %910 = arith.mulf %909, %902 : vector<1x128xf32>
    %911 = arith.addf %895, %910 : vector<1x128xf32>
    %912 = vector.broadcast %18 : f32 to vector<1x128xf32>
    %913 = arith.mulf %912, %902 : vector<1x128xf32>
    %914 = arith.addf %898, %913 : vector<1x128xf32>
    %915 = vector.broadcast %19 : f32 to vector<1x128xf32>
    %916 = arith.mulf %915, %902 : vector<1x128xf32>
    %917 = arith.addf %901, %916 : vector<1x128xf32>
    %918 = arith.mulf %833, %846 : vector<1x128xf32>
    %919 = vector.broadcast %20 : f32 to vector<1x128xf32>
    %920 = arith.mulf %919, %918 : vector<1x128xf32>
    %921 = arith.addf %905, %920 : vector<1x128xf32>
    %922 = vector.broadcast %21 : f32 to vector<1x128xf32>
    %923 = arith.mulf %922, %918 : vector<1x128xf32>
    %924 = arith.addf %908, %923 : vector<1x128xf32>
    %925 = vector.broadcast %22 : f32 to vector<1x128xf32>
    %926 = arith.mulf %925, %918 : vector<1x128xf32>
    %927 = arith.addf %911, %926 : vector<1x128xf32>
    %928 = vector.broadcast %23 : f32 to vector<1x128xf32>
    %929 = arith.mulf %928, %918 : vector<1x128xf32>
    %930 = arith.addf %914, %929 : vector<1x128xf32>
    %931 = vector.broadcast %24 : f32 to vector<1x128xf32>
    %932 = arith.mulf %931, %918 : vector<1x128xf32>
    %933 = arith.addf %917, %932 : vector<1x128xf32>
    %934 = arith.mulf %833, %848 : vector<1x128xf32>
    %935 = vector.broadcast %25 : f32 to vector<1x128xf32>
    %936 = arith.mulf %935, %934 : vector<1x128xf32>
    %937 = arith.addf %921, %936 : vector<1x128xf32>
    %938 = vector.broadcast %26 : f32 to vector<1x128xf32>
    %939 = arith.mulf %938, %934 : vector<1x128xf32>
    %940 = arith.addf %924, %939 : vector<1x128xf32>
    %941 = vector.broadcast %27 : f32 to vector<1x128xf32>
    %942 = arith.mulf %941, %934 : vector<1x128xf32>
    %943 = arith.addf %927, %942 : vector<1x128xf32>
    %944 = vector.broadcast %28 : f32 to vector<1x128xf32>
    %945 = arith.mulf %944, %934 : vector<1x128xf32>
    %946 = arith.addf %930, %945 : vector<1x128xf32>
    %947 = vector.broadcast %29 : f32 to vector<1x128xf32>
    %948 = arith.mulf %947, %934 : vector<1x128xf32>
    %949 = arith.addf %933, %948 : vector<1x128xf32>
    %950 = arith.mulf %836, %844 : vector<1x128xf32>
    %951 = vector.broadcast %30 : f32 to vector<1x128xf32>
    %952 = arith.mulf %951, %950 : vector<1x128xf32>
    %953 = arith.addf %937, %952 : vector<1x128xf32>
    %954 = vector.broadcast %31 : f32 to vector<1x128xf32>
    %955 = arith.mulf %954, %950 : vector<1x128xf32>
    %956 = arith.addf %940, %955 : vector<1x128xf32>
    %957 = vector.broadcast %32 : f32 to vector<1x128xf32>
    %958 = arith.mulf %957, %950 : vector<1x128xf32>
    %959 = arith.addf %943, %958 : vector<1x128xf32>
    %960 = vector.broadcast %33 : f32 to vector<1x128xf32>
    %961 = arith.mulf %960, %950 : vector<1x128xf32>
    %962 = arith.addf %946, %961 : vector<1x128xf32>
    %963 = vector.broadcast %34 : f32 to vector<1x128xf32>
    %964 = arith.mulf %963, %950 : vector<1x128xf32>
    %965 = arith.addf %949, %964 : vector<1x128xf32>
    %966 = arith.mulf %836, %846 : vector<1x128xf32>
    %967 = vector.broadcast %35 : f32 to vector<1x128xf32>
    %968 = arith.mulf %967, %966 : vector<1x128xf32>
    %969 = arith.addf %953, %968 : vector<1x128xf32>
    %970 = vector.broadcast %36 : f32 to vector<1x128xf32>
    %971 = arith.mulf %970, %966 : vector<1x128xf32>
    %972 = arith.addf %956, %971 : vector<1x128xf32>
    %973 = vector.broadcast %37 : f32 to vector<1x128xf32>
    %974 = arith.mulf %973, %966 : vector<1x128xf32>
    %975 = arith.addf %959, %974 : vector<1x128xf32>
    %976 = vector.broadcast %38 : f32 to vector<1x128xf32>
    %977 = arith.mulf %976, %966 : vector<1x128xf32>
    %978 = arith.addf %962, %977 : vector<1x128xf32>
    %979 = vector.broadcast %39 : f32 to vector<1x128xf32>
    %980 = arith.mulf %979, %966 : vector<1x128xf32>
    %981 = arith.addf %965, %980 : vector<1x128xf32>
    %982 = arith.mulf %836, %848 : vector<1x128xf32>
    %983 = vector.broadcast %40 : f32 to vector<1x128xf32>
    %984 = arith.mulf %983, %982 : vector<1x128xf32>
    %985 = arith.addf %969, %984 : vector<1x128xf32>
    %986 = vector.broadcast %41 : f32 to vector<1x128xf32>
    %987 = arith.mulf %986, %982 : vector<1x128xf32>
    %988 = arith.addf %972, %987 : vector<1x128xf32>
    %989 = vector.broadcast %42 : f32 to vector<1x128xf32>
    %990 = arith.mulf %989, %982 : vector<1x128xf32>
    %991 = arith.addf %975, %990 : vector<1x128xf32>
    %992 = vector.broadcast %43 : f32 to vector<1x128xf32>
    %993 = arith.mulf %992, %982 : vector<1x128xf32>
    %994 = arith.addf %978, %993 : vector<1x128xf32>
    %995 = vector.broadcast %44 : f32 to vector<1x128xf32>
    %996 = arith.mulf %995, %982 : vector<1x128xf32>
    %997 = arith.addf %981, %996 : vector<1x128xf32>
    %998 = arith.mulf %839, %844 : vector<1x128xf32>
    %999 = vector.broadcast %45 : f32 to vector<1x128xf32>
    %1000 = arith.mulf %999, %998 : vector<1x128xf32>
    %1001 = arith.addf %985, %1000 : vector<1x128xf32>
    %1002 = vector.broadcast %46 : f32 to vector<1x128xf32>
    %1003 = arith.mulf %1002, %998 : vector<1x128xf32>
    %1004 = arith.addf %988, %1003 : vector<1x128xf32>
    %1005 = vector.broadcast %47 : f32 to vector<1x128xf32>
    %1006 = arith.mulf %1005, %998 : vector<1x128xf32>
    %1007 = arith.addf %991, %1006 : vector<1x128xf32>
    %1008 = vector.broadcast %48 : f32 to vector<1x128xf32>
    %1009 = arith.mulf %1008, %998 : vector<1x128xf32>
    %1010 = arith.addf %994, %1009 : vector<1x128xf32>
    %1011 = vector.broadcast %49 : f32 to vector<1x128xf32>
    %1012 = arith.mulf %1011, %998 : vector<1x128xf32>
    %1013 = arith.addf %997, %1012 : vector<1x128xf32>
    %1014 = arith.mulf %839, %846 : vector<1x128xf32>
    %1015 = vector.broadcast %50 : f32 to vector<1x128xf32>
    %1016 = arith.mulf %1015, %1014 : vector<1x128xf32>
    %1017 = arith.addf %1001, %1016 : vector<1x128xf32>
    %1018 = vector.broadcast %51 : f32 to vector<1x128xf32>
    %1019 = arith.mulf %1018, %1014 : vector<1x128xf32>
    %1020 = arith.addf %1004, %1019 : vector<1x128xf32>
    %1021 = vector.broadcast %52 : f32 to vector<1x128xf32>
    %1022 = arith.mulf %1021, %1014 : vector<1x128xf32>
    %1023 = arith.addf %1007, %1022 : vector<1x128xf32>
    %1024 = vector.broadcast %53 : f32 to vector<1x128xf32>
    %1025 = arith.mulf %1024, %1014 : vector<1x128xf32>
    %1026 = arith.addf %1010, %1025 : vector<1x128xf32>
    %1027 = vector.broadcast %54 : f32 to vector<1x128xf32>
    %1028 = arith.mulf %1027, %1014 : vector<1x128xf32>
    %1029 = arith.addf %1013, %1028 : vector<1x128xf32>
    %1030 = arith.mulf %839, %848 : vector<1x128xf32>
    %1031 = vector.broadcast %55 : f32 to vector<1x128xf32>
    %1032 = arith.mulf %1031, %1030 : vector<1x128xf32>
    %1033 = arith.addf %1017, %1032 : vector<1x128xf32>
    %1034 = vector.broadcast %56 : f32 to vector<1x128xf32>
    %1035 = arith.mulf %1034, %1030 : vector<1x128xf32>
    %1036 = arith.addf %1020, %1035 : vector<1x128xf32>
    %1037 = vector.broadcast %57 : f32 to vector<1x128xf32>
    %1038 = arith.mulf %1037, %1030 : vector<1x128xf32>
    %1039 = arith.addf %1023, %1038 : vector<1x128xf32>
    %1040 = vector.broadcast %58 : f32 to vector<1x128xf32>
    %1041 = arith.mulf %1040, %1030 : vector<1x128xf32>
    %1042 = arith.addf %1026, %1041 : vector<1x128xf32>
    %1043 = vector.broadcast %59 : f32 to vector<1x128xf32>
    %1044 = arith.mulf %1043, %1030 : vector<1x128xf32>
    %1045 = arith.addf %1029, %1044 : vector<1x128xf32>
    %1046 = arith.mulf %842, %844 : vector<1x128xf32>
    %1047 = vector.broadcast %60 : f32 to vector<1x128xf32>
    %1048 = arith.mulf %1047, %1046 : vector<1x128xf32>
    %1049 = arith.addf %1033, %1048 : vector<1x128xf32>
    %1050 = vector.broadcast %61 : f32 to vector<1x128xf32>
    %1051 = arith.mulf %1050, %1046 : vector<1x128xf32>
    %1052 = arith.addf %1036, %1051 : vector<1x128xf32>
    %1053 = vector.broadcast %62 : f32 to vector<1x128xf32>
    %1054 = arith.mulf %1053, %1046 : vector<1x128xf32>
    %1055 = arith.addf %1039, %1054 : vector<1x128xf32>
    %1056 = vector.broadcast %63 : f32 to vector<1x128xf32>
    %1057 = arith.mulf %1056, %1046 : vector<1x128xf32>
    %1058 = arith.addf %1042, %1057 : vector<1x128xf32>
    %1059 = vector.broadcast %64 : f32 to vector<1x128xf32>
    %1060 = arith.mulf %1059, %1046 : vector<1x128xf32>
    %1061 = arith.addf %1045, %1060 : vector<1x128xf32>
    %1062 = arith.mulf %842, %846 : vector<1x128xf32>
    %1063 = vector.broadcast %65 : f32 to vector<1x128xf32>
    %1064 = arith.mulf %1063, %1062 : vector<1x128xf32>
    %1065 = arith.addf %1049, %1064 : vector<1x128xf32>
    %1066 = vector.broadcast %66 : f32 to vector<1x128xf32>
    %1067 = arith.mulf %1066, %1062 : vector<1x128xf32>
    %1068 = arith.addf %1052, %1067 : vector<1x128xf32>
    %1069 = vector.broadcast %67 : f32 to vector<1x128xf32>
    %1070 = arith.mulf %1069, %1062 : vector<1x128xf32>
    %1071 = arith.addf %1055, %1070 : vector<1x128xf32>
    %1072 = vector.broadcast %68 : f32 to vector<1x128xf32>
    %1073 = arith.mulf %1072, %1062 : vector<1x128xf32>
    %1074 = arith.addf %1058, %1073 : vector<1x128xf32>
    %1075 = vector.broadcast %69 : f32 to vector<1x128xf32>
    %1076 = arith.mulf %1075, %1062 : vector<1x128xf32>
    %1077 = arith.addf %1061, %1076 : vector<1x128xf32>
    %1078 = arith.mulf %842, %848 : vector<1x128xf32>
    %1079 = vector.broadcast %70 : f32 to vector<1x128xf32>
    %1080 = arith.mulf %1079, %1078 : vector<1x128xf32>
    %1081 = arith.addf %1065, %1080 : vector<1x128xf32>
    %1082 = vector.broadcast %71 : f32 to vector<1x128xf32>
    %1083 = arith.mulf %1082, %1078 : vector<1x128xf32>
    %1084 = arith.addf %1068, %1083 : vector<1x128xf32>
    %1085 = vector.broadcast %72 : f32 to vector<1x128xf32>
    %1086 = arith.mulf %1085, %1078 : vector<1x128xf32>
    %1087 = arith.addf %1071, %1086 : vector<1x128xf32>
    %1088 = vector.broadcast %73 : f32 to vector<1x128xf32>
    %1089 = arith.mulf %1088, %1078 : vector<1x128xf32>
    %1090 = arith.addf %1074, %1089 : vector<1x128xf32>
    %1091 = vector.broadcast %74 : f32 to vector<1x128xf32>
    %1092 = arith.mulf %1091, %1078 : vector<1x128xf32>
    %1093 = arith.addf %1077, %1092 : vector<1x128xf32>
    %c4_77 = arith.constant 4 : index
    %c0_78 = arith.constant 0 : index
    %c0_79 = arith.constant 0 : index
    %c0_80 = arith.constant 0 : index
    %1094 = vector.load %arg4[%c4_77, %c0_78, %c0_79, %c0_80] : memref<8x3x1x128xf32, #tpu.memory_space<vmem>>, vector<1x1x1x128xf32>
    %1095 = vector.shape_cast %1094 : vector<1x1x1x128xf32> to vector<1x128xf32>
    %c4_81 = arith.constant 4 : index
    %c1_82 = arith.constant 1 : index
    %c0_83 = arith.constant 0 : index
    %c0_84 = arith.constant 0 : index
    %1096 = vector.load %arg4[%c4_81, %c1_82, %c0_83, %c0_84] : memref<8x3x1x128xf32, #tpu.memory_space<vmem>>, vector<1x1x1x128xf32>
    %1097 = vector.shape_cast %1096 : vector<1x1x1x128xf32> to vector<1x128xf32>
    %c4_85 = arith.constant 4 : index
    %c2_86 = arith.constant 2 : index
    %c0_87 = arith.constant 0 : index
    %c0_88 = arith.constant 0 : index
    %1098 = vector.load %arg4[%c4_85, %c2_86, %c0_87, %c0_88] : memref<8x3x1x128xf32, #tpu.memory_space<vmem>>, vector<1x1x1x128xf32>
    %1099 = vector.shape_cast %1098 : vector<1x1x1x128xf32> to vector<1x128xf32>
    %cst_89 = arith.constant 0.000000e+00 : f32
    %1100 = vector.broadcast %cst_89 : f32 to vector<1x128xf32>
    %cst_90 = arith.constant 0.000000e+00 : f32
    %1101 = vector.broadcast %cst_90 : f32 to vector<1x128xf32>
    %cst_91 = arith.constant 0.000000e+00 : f32
    %1102 = vector.broadcast %cst_91 : f32 to vector<1x128xf32>
    %cst_92 = arith.constant 0.000000e+00 : f32
    %1103 = vector.broadcast %cst_92 : f32 to vector<1x128xf32>
    %cst_93 = arith.constant 0.000000e+00 : f32
    %1104 = vector.broadcast %cst_93 : f32 to vector<1x128xf32>
    %1105 = arith.mulf %1081, %1095 : vector<1x128xf32>
    %1106 = vector.broadcast %0 : f32 to vector<1x128xf32>
    %1107 = arith.mulf %1106, %1105 : vector<1x128xf32>
    %1108 = arith.addf %1100, %1107 : vector<1x128xf32>
    %1109 = vector.broadcast %1 : f32 to vector<1x128xf32>
    %1110 = arith.mulf %1109, %1105 : vector<1x128xf32>
    %1111 = arith.addf %1101, %1110 : vector<1x128xf32>
    %1112 = vector.broadcast %2 : f32 to vector<1x128xf32>
    %1113 = arith.mulf %1112, %1105 : vector<1x128xf32>
    %1114 = arith.addf %1102, %1113 : vector<1x128xf32>
    %1115 = vector.broadcast %3 : f32 to vector<1x128xf32>
    %1116 = arith.mulf %1115, %1105 : vector<1x128xf32>
    %1117 = arith.addf %1103, %1116 : vector<1x128xf32>
    %1118 = vector.broadcast %4 : f32 to vector<1x128xf32>
    %1119 = arith.mulf %1118, %1105 : vector<1x128xf32>
    %1120 = arith.addf %1104, %1119 : vector<1x128xf32>
    %1121 = arith.mulf %1081, %1097 : vector<1x128xf32>
    %1122 = vector.broadcast %5 : f32 to vector<1x128xf32>
    %1123 = arith.mulf %1122, %1121 : vector<1x128xf32>
    %1124 = arith.addf %1108, %1123 : vector<1x128xf32>
    %1125 = vector.broadcast %6 : f32 to vector<1x128xf32>
    %1126 = arith.mulf %1125, %1121 : vector<1x128xf32>
    %1127 = arith.addf %1111, %1126 : vector<1x128xf32>
    %1128 = vector.broadcast %7 : f32 to vector<1x128xf32>
    %1129 = arith.mulf %1128, %1121 : vector<1x128xf32>
    %1130 = arith.addf %1114, %1129 : vector<1x128xf32>
    %1131 = vector.broadcast %8 : f32 to vector<1x128xf32>
    %1132 = arith.mulf %1131, %1121 : vector<1x128xf32>
    %1133 = arith.addf %1117, %1132 : vector<1x128xf32>
    %1134 = vector.broadcast %9 : f32 to vector<1x128xf32>
    %1135 = arith.mulf %1134, %1121 : vector<1x128xf32>
    %1136 = arith.addf %1120, %1135 : vector<1x128xf32>
    %1137 = arith.mulf %1081, %1099 : vector<1x128xf32>
    %1138 = vector.broadcast %10 : f32 to vector<1x128xf32>
    %1139 = arith.mulf %1138, %1137 : vector<1x128xf32>
    %1140 = arith.addf %1124, %1139 : vector<1x128xf32>
    %1141 = vector.broadcast %11 : f32 to vector<1x128xf32>
    %1142 = arith.mulf %1141, %1137 : vector<1x128xf32>
    %1143 = arith.addf %1127, %1142 : vector<1x128xf32>
    %1144 = vector.broadcast %12 : f32 to vector<1x128xf32>
    %1145 = arith.mulf %1144, %1137 : vector<1x128xf32>
    %1146 = arith.addf %1130, %1145 : vector<1x128xf32>
    %1147 = vector.broadcast %13 : f32 to vector<1x128xf32>
    %1148 = arith.mulf %1147, %1137 : vector<1x128xf32>
    %1149 = arith.addf %1133, %1148 : vector<1x128xf32>
    %1150 = vector.broadcast %14 : f32 to vector<1x128xf32>
    %1151 = arith.mulf %1150, %1137 : vector<1x128xf32>
    %1152 = arith.addf %1136, %1151 : vector<1x128xf32>
    %1153 = arith.mulf %1084, %1095 : vector<1x128xf32>
    %1154 = vector.broadcast %15 : f32 to vector<1x128xf32>
    %1155 = arith.mulf %1154, %1153 : vector<1x128xf32>
    %1156 = arith.addf %1140, %1155 : vector<1x128xf32>
    %1157 = vector.broadcast %16 : f32 to vector<1x128xf32>
    %1158 = arith.mulf %1157, %1153 : vector<1x128xf32>
    %1159 = arith.addf %1143, %1158 : vector<1x128xf32>
    %1160 = vector.broadcast %17 : f32 to vector<1x128xf32>
    %1161 = arith.mulf %1160, %1153 : vector<1x128xf32>
    %1162 = arith.addf %1146, %1161 : vector<1x128xf32>
    %1163 = vector.broadcast %18 : f32 to vector<1x128xf32>
    %1164 = arith.mulf %1163, %1153 : vector<1x128xf32>
    %1165 = arith.addf %1149, %1164 : vector<1x128xf32>
    %1166 = vector.broadcast %19 : f32 to vector<1x128xf32>
    %1167 = arith.mulf %1166, %1153 : vector<1x128xf32>
    %1168 = arith.addf %1152, %1167 : vector<1x128xf32>
    %1169 = arith.mulf %1084, %1097 : vector<1x128xf32>
    %1170 = vector.broadcast %20 : f32 to vector<1x128xf32>
    %1171 = arith.mulf %1170, %1169 : vector<1x128xf32>
    %1172 = arith.addf %1156, %1171 : vector<1x128xf32>
    %1173 = vector.broadcast %21 : f32 to vector<1x128xf32>
    %1174 = arith.mulf %1173, %1169 : vector<1x128xf32>
    %1175 = arith.addf %1159, %1174 : vector<1x128xf32>
    %1176 = vector.broadcast %22 : f32 to vector<1x128xf32>
    %1177 = arith.mulf %1176, %1169 : vector<1x128xf32>
    %1178 = arith.addf %1162, %1177 : vector<1x128xf32>
    %1179 = vector.broadcast %23 : f32 to vector<1x128xf32>
    %1180 = arith.mulf %1179, %1169 : vector<1x128xf32>
    %1181 = arith.addf %1165, %1180 : vector<1x128xf32>
    %1182 = vector.broadcast %24 : f32 to vector<1x128xf32>
    %1183 = arith.mulf %1182, %1169 : vector<1x128xf32>
    %1184 = arith.addf %1168, %1183 : vector<1x128xf32>
    %1185 = arith.mulf %1084, %1099 : vector<1x128xf32>
    %1186 = vector.broadcast %25 : f32 to vector<1x128xf32>
    %1187 = arith.mulf %1186, %1185 : vector<1x128xf32>
    %1188 = arith.addf %1172, %1187 : vector<1x128xf32>
    %1189 = vector.broadcast %26 : f32 to vector<1x128xf32>
    %1190 = arith.mulf %1189, %1185 : vector<1x128xf32>
    %1191 = arith.addf %1175, %1190 : vector<1x128xf32>
    %1192 = vector.broadcast %27 : f32 to vector<1x128xf32>
    %1193 = arith.mulf %1192, %1185 : vector<1x128xf32>
    %1194 = arith.addf %1178, %1193 : vector<1x128xf32>
    %1195 = vector.broadcast %28 : f32 to vector<1x128xf32>
    %1196 = arith.mulf %1195, %1185 : vector<1x128xf32>
    %1197 = arith.addf %1181, %1196 : vector<1x128xf32>
    %1198 = vector.broadcast %29 : f32 to vector<1x128xf32>
    %1199 = arith.mulf %1198, %1185 : vector<1x128xf32>
    %1200 = arith.addf %1184, %1199 : vector<1x128xf32>
    %1201 = arith.mulf %1087, %1095 : vector<1x128xf32>
    %1202 = vector.broadcast %30 : f32 to vector<1x128xf32>
    %1203 = arith.mulf %1202, %1201 : vector<1x128xf32>
    %1204 = arith.addf %1188, %1203 : vector<1x128xf32>
    %1205 = vector.broadcast %31 : f32 to vector<1x128xf32>
    %1206 = arith.mulf %1205, %1201 : vector<1x128xf32>
    %1207 = arith.addf %1191, %1206 : vector<1x128xf32>
    %1208 = vector.broadcast %32 : f32 to vector<1x128xf32>
    %1209 = arith.mulf %1208, %1201 : vector<1x128xf32>
    %1210 = arith.addf %1194, %1209 : vector<1x128xf32>
    %1211 = vector.broadcast %33 : f32 to vector<1x128xf32>
    %1212 = arith.mulf %1211, %1201 : vector<1x128xf32>
    %1213 = arith.addf %1197, %1212 : vector<1x128xf32>
    %1214 = vector.broadcast %34 : f32 to vector<1x128xf32>
    %1215 = arith.mulf %1214, %1201 : vector<1x128xf32>
    %1216 = arith.addf %1200, %1215 : vector<1x128xf32>
    %1217 = arith.mulf %1087, %1097 : vector<1x128xf32>
    %1218 = vector.broadcast %35 : f32 to vector<1x128xf32>
    %1219 = arith.mulf %1218, %1217 : vector<1x128xf32>
    %1220 = arith.addf %1204, %1219 : vector<1x128xf32>
    %1221 = vector.broadcast %36 : f32 to vector<1x128xf32>
    %1222 = arith.mulf %1221, %1217 : vector<1x128xf32>
    %1223 = arith.addf %1207, %1222 : vector<1x128xf32>
    %1224 = vector.broadcast %37 : f32 to vector<1x128xf32>
    %1225 = arith.mulf %1224, %1217 : vector<1x128xf32>
    %1226 = arith.addf %1210, %1225 : vector<1x128xf32>
    %1227 = vector.broadcast %38 : f32 to vector<1x128xf32>
    %1228 = arith.mulf %1227, %1217 : vector<1x128xf32>
    %1229 = arith.addf %1213, %1228 : vector<1x128xf32>
    %1230 = vector.broadcast %39 : f32 to vector<1x128xf32>
    %1231 = arith.mulf %1230, %1217 : vector<1x128xf32>
    %1232 = arith.addf %1216, %1231 : vector<1x128xf32>
    %1233 = arith.mulf %1087, %1099 : vector<1x128xf32>
    %1234 = vector.broadcast %40 : f32 to vector<1x128xf32>
    %1235 = arith.mulf %1234, %1233 : vector<1x128xf32>
    %1236 = arith.addf %1220, %1235 : vector<1x128xf32>
    %1237 = vector.broadcast %41 : f32 to vector<1x128xf32>
    %1238 = arith.mulf %1237, %1233 : vector<1x128xf32>
    %1239 = arith.addf %1223, %1238 : vector<1x128xf32>
    %1240 = vector.broadcast %42 : f32 to vector<1x128xf32>
    %1241 = arith.mulf %1240, %1233 : vector<1x128xf32>
    %1242 = arith.addf %1226, %1241 : vector<1x128xf32>
    %1243 = vector.broadcast %43 : f32 to vector<1x128xf32>
    %1244 = arith.mulf %1243, %1233 : vector<1x128xf32>
    %1245 = arith.addf %1229, %1244 : vector<1x128xf32>
    %1246 = vector.broadcast %44 : f32 to vector<1x128xf32>
    %1247 = arith.mulf %1246, %1233 : vector<1x128xf32>
    %1248 = arith.addf %1232, %1247 : vector<1x128xf32>
    %1249 = arith.mulf %1090, %1095 : vector<1x128xf32>
    %1250 = vector.broadcast %45 : f32 to vector<1x128xf32>
    %1251 = arith.mulf %1250, %1249 : vector<1x128xf32>
    %1252 = arith.addf %1236, %1251 : vector<1x128xf32>
    %1253 = vector.broadcast %46 : f32 to vector<1x128xf32>
    %1254 = arith.mulf %1253, %1249 : vector<1x128xf32>
    %1255 = arith.addf %1239, %1254 : vector<1x128xf32>
    %1256 = vector.broadcast %47 : f32 to vector<1x128xf32>
    %1257 = arith.mulf %1256, %1249 : vector<1x128xf32>
    %1258 = arith.addf %1242, %1257 : vector<1x128xf32>
    %1259 = vector.broadcast %48 : f32 to vector<1x128xf32>
    %1260 = arith.mulf %1259, %1249 : vector<1x128xf32>
    %1261 = arith.addf %1245, %1260 : vector<1x128xf32>
    %1262 = vector.broadcast %49 : f32 to vector<1x128xf32>
    %1263 = arith.mulf %1262, %1249 : vector<1x128xf32>
    %1264 = arith.addf %1248, %1263 : vector<1x128xf32>
    %1265 = arith.mulf %1090, %1097 : vector<1x128xf32>
    %1266 = vector.broadcast %50 : f32 to vector<1x128xf32>
    %1267 = arith.mulf %1266, %1265 : vector<1x128xf32>
    %1268 = arith.addf %1252, %1267 : vector<1x128xf32>
    %1269 = vector.broadcast %51 : f32 to vector<1x128xf32>
    %1270 = arith.mulf %1269, %1265 : vector<1x128xf32>
    %1271 = arith.addf %1255, %1270 : vector<1x128xf32>
    %1272 = vector.broadcast %52 : f32 to vector<1x128xf32>
    %1273 = arith.mulf %1272, %1265 : vector<1x128xf32>
    %1274 = arith.addf %1258, %1273 : vector<1x128xf32>
    %1275 = vector.broadcast %53 : f32 to vector<1x128xf32>
    %1276 = arith.mulf %1275, %1265 : vector<1x128xf32>
    %1277 = arith.addf %1261, %1276 : vector<1x128xf32>
    %1278 = vector.broadcast %54 : f32 to vector<1x128xf32>
    %1279 = arith.mulf %1278, %1265 : vector<1x128xf32>
    %1280 = arith.addf %1264, %1279 : vector<1x128xf32>
    %1281 = arith.mulf %1090, %1099 : vector<1x128xf32>
    %1282 = vector.broadcast %55 : f32 to vector<1x128xf32>
    %1283 = arith.mulf %1282, %1281 : vector<1x128xf32>
    %1284 = arith.addf %1268, %1283 : vector<1x128xf32>
    %1285 = vector.broadcast %56 : f32 to vector<1x128xf32>
    %1286 = arith.mulf %1285, %1281 : vector<1x128xf32>
    %1287 = arith.addf %1271, %1286 : vector<1x128xf32>
    %1288 = vector.broadcast %57 : f32 to vector<1x128xf32>
    %1289 = arith.mulf %1288, %1281 : vector<1x128xf32>
    %1290 = arith.addf %1274, %1289 : vector<1x128xf32>
    %1291 = vector.broadcast %58 : f32 to vector<1x128xf32>
    %1292 = arith.mulf %1291, %1281 : vector<1x128xf32>
    %1293 = arith.addf %1277, %1292 : vector<1x128xf32>
    %1294 = vector.broadcast %59 : f32 to vector<1x128xf32>
    %1295 = arith.mulf %1294, %1281 : vector<1x128xf32>
    %1296 = arith.addf %1280, %1295 : vector<1x128xf32>
    %1297 = arith.mulf %1093, %1095 : vector<1x128xf32>
    %1298 = vector.broadcast %60 : f32 to vector<1x128xf32>
    %1299 = arith.mulf %1298, %1297 : vector<1x128xf32>
    %1300 = arith.addf %1284, %1299 : vector<1x128xf32>
    %1301 = vector.broadcast %61 : f32 to vector<1x128xf32>
    %1302 = arith.mulf %1301, %1297 : vector<1x128xf32>
    %1303 = arith.addf %1287, %1302 : vector<1x128xf32>
    %1304 = vector.broadcast %62 : f32 to vector<1x128xf32>
    %1305 = arith.mulf %1304, %1297 : vector<1x128xf32>
    %1306 = arith.addf %1290, %1305 : vector<1x128xf32>
    %1307 = vector.broadcast %63 : f32 to vector<1x128xf32>
    %1308 = arith.mulf %1307, %1297 : vector<1x128xf32>
    %1309 = arith.addf %1293, %1308 : vector<1x128xf32>
    %1310 = vector.broadcast %64 : f32 to vector<1x128xf32>
    %1311 = arith.mulf %1310, %1297 : vector<1x128xf32>
    %1312 = arith.addf %1296, %1311 : vector<1x128xf32>
    %1313 = arith.mulf %1093, %1097 : vector<1x128xf32>
    %1314 = vector.broadcast %65 : f32 to vector<1x128xf32>
    %1315 = arith.mulf %1314, %1313 : vector<1x128xf32>
    %1316 = arith.addf %1300, %1315 : vector<1x128xf32>
    %1317 = vector.broadcast %66 : f32 to vector<1x128xf32>
    %1318 = arith.mulf %1317, %1313 : vector<1x128xf32>
    %1319 = arith.addf %1303, %1318 : vector<1x128xf32>
    %1320 = vector.broadcast %67 : f32 to vector<1x128xf32>
    %1321 = arith.mulf %1320, %1313 : vector<1x128xf32>
    %1322 = arith.addf %1306, %1321 : vector<1x128xf32>
    %1323 = vector.broadcast %68 : f32 to vector<1x128xf32>
    %1324 = arith.mulf %1323, %1313 : vector<1x128xf32>
    %1325 = arith.addf %1309, %1324 : vector<1x128xf32>
    %1326 = vector.broadcast %69 : f32 to vector<1x128xf32>
    %1327 = arith.mulf %1326, %1313 : vector<1x128xf32>
    %1328 = arith.addf %1312, %1327 : vector<1x128xf32>
    %1329 = arith.mulf %1093, %1099 : vector<1x128xf32>
    %1330 = vector.broadcast %70 : f32 to vector<1x128xf32>
    %1331 = arith.mulf %1330, %1329 : vector<1x128xf32>
    %1332 = arith.addf %1316, %1331 : vector<1x128xf32>
    %1333 = vector.broadcast %71 : f32 to vector<1x128xf32>
    %1334 = arith.mulf %1333, %1329 : vector<1x128xf32>
    %1335 = arith.addf %1319, %1334 : vector<1x128xf32>
    %1336 = vector.broadcast %72 : f32 to vector<1x128xf32>
    %1337 = arith.mulf %1336, %1329 : vector<1x128xf32>
    %1338 = arith.addf %1322, %1337 : vector<1x128xf32>
    %1339 = vector.broadcast %73 : f32 to vector<1x128xf32>
    %1340 = arith.mulf %1339, %1329 : vector<1x128xf32>
    %1341 = arith.addf %1325, %1340 : vector<1x128xf32>
    %1342 = vector.broadcast %74 : f32 to vector<1x128xf32>
    %1343 = arith.mulf %1342, %1329 : vector<1x128xf32>
    %1344 = arith.addf %1328, %1343 : vector<1x128xf32>
    %c5_94 = arith.constant 5 : index
    %c0_95 = arith.constant 0 : index
    %c0_96 = arith.constant 0 : index
    %c0_97 = arith.constant 0 : index
    %1345 = vector.load %arg4[%c5_94, %c0_95, %c0_96, %c0_97] : memref<8x3x1x128xf32, #tpu.memory_space<vmem>>, vector<1x1x1x128xf32>
    %1346 = vector.shape_cast %1345 : vector<1x1x1x128xf32> to vector<1x128xf32>
    %c5_98 = arith.constant 5 : index
    %c1_99 = arith.constant 1 : index
    %c0_100 = arith.constant 0 : index
    %c0_101 = arith.constant 0 : index
    %1347 = vector.load %arg4[%c5_98, %c1_99, %c0_100, %c0_101] : memref<8x3x1x128xf32, #tpu.memory_space<vmem>>, vector<1x1x1x128xf32>
    %1348 = vector.shape_cast %1347 : vector<1x1x1x128xf32> to vector<1x128xf32>
    %c5_102 = arith.constant 5 : index
    %c2_103 = arith.constant 2 : index
    %c0_104 = arith.constant 0 : index
    %c0_105 = arith.constant 0 : index
    %1349 = vector.load %arg4[%c5_102, %c2_103, %c0_104, %c0_105] : memref<8x3x1x128xf32, #tpu.memory_space<vmem>>, vector<1x1x1x128xf32>
    %1350 = vector.shape_cast %1349 : vector<1x1x1x128xf32> to vector<1x128xf32>
    %cst_106 = arith.constant 0.000000e+00 : f32
    %1351 = vector.broadcast %cst_106 : f32 to vector<1x128xf32>
    %cst_107 = arith.constant 0.000000e+00 : f32
    %1352 = vector.broadcast %cst_107 : f32 to vector<1x128xf32>
    %cst_108 = arith.constant 0.000000e+00 : f32
    %1353 = vector.broadcast %cst_108 : f32 to vector<1x128xf32>
    %cst_109 = arith.constant 0.000000e+00 : f32
    %1354 = vector.broadcast %cst_109 : f32 to vector<1x128xf32>
    %cst_110 = arith.constant 0.000000e+00 : f32
    %1355 = vector.broadcast %cst_110 : f32 to vector<1x128xf32>
    %1356 = arith.mulf %1332, %1346 : vector<1x128xf32>
    %1357 = vector.broadcast %0 : f32 to vector<1x128xf32>
    %1358 = arith.mulf %1357, %1356 : vector<1x128xf32>
    %1359 = arith.addf %1351, %1358 : vector<1x128xf32>
    %1360 = vector.broadcast %1 : f32 to vector<1x128xf32>
    %1361 = arith.mulf %1360, %1356 : vector<1x128xf32>
    %1362 = arith.addf %1352, %1361 : vector<1x128xf32>
    %1363 = vector.broadcast %2 : f32 to vector<1x128xf32>
    %1364 = arith.mulf %1363, %1356 : vector<1x128xf32>
    %1365 = arith.addf %1353, %1364 : vector<1x128xf32>
    %1366 = vector.broadcast %3 : f32 to vector<1x128xf32>
    %1367 = arith.mulf %1366, %1356 : vector<1x128xf32>
    %1368 = arith.addf %1354, %1367 : vector<1x128xf32>
    %1369 = vector.broadcast %4 : f32 to vector<1x128xf32>
    %1370 = arith.mulf %1369, %1356 : vector<1x128xf32>
    %1371 = arith.addf %1355, %1370 : vector<1x128xf32>
    %1372 = arith.mulf %1332, %1348 : vector<1x128xf32>
    %1373 = vector.broadcast %5 : f32 to vector<1x128xf32>
    %1374 = arith.mulf %1373, %1372 : vector<1x128xf32>
    %1375 = arith.addf %1359, %1374 : vector<1x128xf32>
    %1376 = vector.broadcast %6 : f32 to vector<1x128xf32>
    %1377 = arith.mulf %1376, %1372 : vector<1x128xf32>
    %1378 = arith.addf %1362, %1377 : vector<1x128xf32>
    %1379 = vector.broadcast %7 : f32 to vector<1x128xf32>
    %1380 = arith.mulf %1379, %1372 : vector<1x128xf32>
    %1381 = arith.addf %1365, %1380 : vector<1x128xf32>
    %1382 = vector.broadcast %8 : f32 to vector<1x128xf32>
    %1383 = arith.mulf %1382, %1372 : vector<1x128xf32>
    %1384 = arith.addf %1368, %1383 : vector<1x128xf32>
    %1385 = vector.broadcast %9 : f32 to vector<1x128xf32>
    %1386 = arith.mulf %1385, %1372 : vector<1x128xf32>
    %1387 = arith.addf %1371, %1386 : vector<1x128xf32>
    %1388 = arith.mulf %1332, %1350 : vector<1x128xf32>
    %1389 = vector.broadcast %10 : f32 to vector<1x128xf32>
    %1390 = arith.mulf %1389, %1388 : vector<1x128xf32>
    %1391 = arith.addf %1375, %1390 : vector<1x128xf32>
    %1392 = vector.broadcast %11 : f32 to vector<1x128xf32>
    %1393 = arith.mulf %1392, %1388 : vector<1x128xf32>
    %1394 = arith.addf %1378, %1393 : vector<1x128xf32>
    %1395 = vector.broadcast %12 : f32 to vector<1x128xf32>
    %1396 = arith.mulf %1395, %1388 : vector<1x128xf32>
    %1397 = arith.addf %1381, %1396 : vector<1x128xf32>
    %1398 = vector.broadcast %13 : f32 to vector<1x128xf32>
    %1399 = arith.mulf %1398, %1388 : vector<1x128xf32>
    %1400 = arith.addf %1384, %1399 : vector<1x128xf32>
    %1401 = vector.broadcast %14 : f32 to vector<1x128xf32>
    %1402 = arith.mulf %1401, %1388 : vector<1x128xf32>
    %1403 = arith.addf %1387, %1402 : vector<1x128xf32>
    %1404 = arith.mulf %1335, %1346 : vector<1x128xf32>
    %1405 = vector.broadcast %15 : f32 to vector<1x128xf32>
    %1406 = arith.mulf %1405, %1404 : vector<1x128xf32>
    %1407 = arith.addf %1391, %1406 : vector<1x128xf32>
    %1408 = vector.broadcast %16 : f32 to vector<1x128xf32>
    %1409 = arith.mulf %1408, %1404 : vector<1x128xf32>
    %1410 = arith.addf %1394, %1409 : vector<1x128xf32>
    %1411 = vector.broadcast %17 : f32 to vector<1x128xf32>
    %1412 = arith.mulf %1411, %1404 : vector<1x128xf32>
    %1413 = arith.addf %1397, %1412 : vector<1x128xf32>
    %1414 = vector.broadcast %18 : f32 to vector<1x128xf32>
    %1415 = arith.mulf %1414, %1404 : vector<1x128xf32>
    %1416 = arith.addf %1400, %1415 : vector<1x128xf32>
    %1417 = vector.broadcast %19 : f32 to vector<1x128xf32>
    %1418 = arith.mulf %1417, %1404 : vector<1x128xf32>
    %1419 = arith.addf %1403, %1418 : vector<1x128xf32>
    %1420 = arith.mulf %1335, %1348 : vector<1x128xf32>
    %1421 = vector.broadcast %20 : f32 to vector<1x128xf32>
    %1422 = arith.mulf %1421, %1420 : vector<1x128xf32>
    %1423 = arith.addf %1407, %1422 : vector<1x128xf32>
    %1424 = vector.broadcast %21 : f32 to vector<1x128xf32>
    %1425 = arith.mulf %1424, %1420 : vector<1x128xf32>
    %1426 = arith.addf %1410, %1425 : vector<1x128xf32>
    %1427 = vector.broadcast %22 : f32 to vector<1x128xf32>
    %1428 = arith.mulf %1427, %1420 : vector<1x128xf32>
    %1429 = arith.addf %1413, %1428 : vector<1x128xf32>
    %1430 = vector.broadcast %23 : f32 to vector<1x128xf32>
    %1431 = arith.mulf %1430, %1420 : vector<1x128xf32>
    %1432 = arith.addf %1416, %1431 : vector<1x128xf32>
    %1433 = vector.broadcast %24 : f32 to vector<1x128xf32>
    %1434 = arith.mulf %1433, %1420 : vector<1x128xf32>
    %1435 = arith.addf %1419, %1434 : vector<1x128xf32>
    %1436 = arith.mulf %1335, %1350 : vector<1x128xf32>
    %1437 = vector.broadcast %25 : f32 to vector<1x128xf32>
    %1438 = arith.mulf %1437, %1436 : vector<1x128xf32>
    %1439 = arith.addf %1423, %1438 : vector<1x128xf32>
    %1440 = vector.broadcast %26 : f32 to vector<1x128xf32>
    %1441 = arith.mulf %1440, %1436 : vector<1x128xf32>
    %1442 = arith.addf %1426, %1441 : vector<1x128xf32>
    %1443 = vector.broadcast %27 : f32 to vector<1x128xf32>
    %1444 = arith.mulf %1443, %1436 : vector<1x128xf32>
    %1445 = arith.addf %1429, %1444 : vector<1x128xf32>
    %1446 = vector.broadcast %28 : f32 to vector<1x128xf32>
    %1447 = arith.mulf %1446, %1436 : vector<1x128xf32>
    %1448 = arith.addf %1432, %1447 : vector<1x128xf32>
    %1449 = vector.broadcast %29 : f32 to vector<1x128xf32>
    %1450 = arith.mulf %1449, %1436 : vector<1x128xf32>
    %1451 = arith.addf %1435, %1450 : vector<1x128xf32>
    %1452 = arith.mulf %1338, %1346 : vector<1x128xf32>
    %1453 = vector.broadcast %30 : f32 to vector<1x128xf32>
    %1454 = arith.mulf %1453, %1452 : vector<1x128xf32>
    %1455 = arith.addf %1439, %1454 : vector<1x128xf32>
    %1456 = vector.broadcast %31 : f32 to vector<1x128xf32>
    %1457 = arith.mulf %1456, %1452 : vector<1x128xf32>
    %1458 = arith.addf %1442, %1457 : vector<1x128xf32>
    %1459 = vector.broadcast %32 : f32 to vector<1x128xf32>
    %1460 = arith.mulf %1459, %1452 : vector<1x128xf32>
    %1461 = arith.addf %1445, %1460 : vector<1x128xf32>
    %1462 = vector.broadcast %33 : f32 to vector<1x128xf32>
    %1463 = arith.mulf %1462, %1452 : vector<1x128xf32>
    %1464 = arith.addf %1448, %1463 : vector<1x128xf32>
    %1465 = vector.broadcast %34 : f32 to vector<1x128xf32>
    %1466 = arith.mulf %1465, %1452 : vector<1x128xf32>
    %1467 = arith.addf %1451, %1466 : vector<1x128xf32>
    %1468 = arith.mulf %1338, %1348 : vector<1x128xf32>
    %1469 = vector.broadcast %35 : f32 to vector<1x128xf32>
    %1470 = arith.mulf %1469, %1468 : vector<1x128xf32>
    %1471 = arith.addf %1455, %1470 : vector<1x128xf32>
    %1472 = vector.broadcast %36 : f32 to vector<1x128xf32>
    %1473 = arith.mulf %1472, %1468 : vector<1x128xf32>
    %1474 = arith.addf %1458, %1473 : vector<1x128xf32>
    %1475 = vector.broadcast %37 : f32 to vector<1x128xf32>
    %1476 = arith.mulf %1475, %1468 : vector<1x128xf32>
    %1477 = arith.addf %1461, %1476 : vector<1x128xf32>
    %1478 = vector.broadcast %38 : f32 to vector<1x128xf32>
    %1479 = arith.mulf %1478, %1468 : vector<1x128xf32>
    %1480 = arith.addf %1464, %1479 : vector<1x128xf32>
    %1481 = vector.broadcast %39 : f32 to vector<1x128xf32>
    %1482 = arith.mulf %1481, %1468 : vector<1x128xf32>
    %1483 = arith.addf %1467, %1482 : vector<1x128xf32>
    %1484 = arith.mulf %1338, %1350 : vector<1x128xf32>
    %1485 = vector.broadcast %40 : f32 to vector<1x128xf32>
    %1486 = arith.mulf %1485, %1484 : vector<1x128xf32>
    %1487 = arith.addf %1471, %1486 : vector<1x128xf32>
    %1488 = vector.broadcast %41 : f32 to vector<1x128xf32>
    %1489 = arith.mulf %1488, %1484 : vector<1x128xf32>
    %1490 = arith.addf %1474, %1489 : vector<1x128xf32>
    %1491 = vector.broadcast %42 : f32 to vector<1x128xf32>
    %1492 = arith.mulf %1491, %1484 : vector<1x128xf32>
    %1493 = arith.addf %1477, %1492 : vector<1x128xf32>
    %1494 = vector.broadcast %43 : f32 to vector<1x128xf32>
    %1495 = arith.mulf %1494, %1484 : vector<1x128xf32>
    %1496 = arith.addf %1480, %1495 : vector<1x128xf32>
    %1497 = vector.broadcast %44 : f32 to vector<1x128xf32>
    %1498 = arith.mulf %1497, %1484 : vector<1x128xf32>
    %1499 = arith.addf %1483, %1498 : vector<1x128xf32>
    %1500 = arith.mulf %1341, %1346 : vector<1x128xf32>
    %1501 = vector.broadcast %45 : f32 to vector<1x128xf32>
    %1502 = arith.mulf %1501, %1500 : vector<1x128xf32>
    %1503 = arith.addf %1487, %1502 : vector<1x128xf32>
    %1504 = vector.broadcast %46 : f32 to vector<1x128xf32>
    %1505 = arith.mulf %1504, %1500 : vector<1x128xf32>
    %1506 = arith.addf %1490, %1505 : vector<1x128xf32>
    %1507 = vector.broadcast %47 : f32 to vector<1x128xf32>
    %1508 = arith.mulf %1507, %1500 : vector<1x128xf32>
    %1509 = arith.addf %1493, %1508 : vector<1x128xf32>
    %1510 = vector.broadcast %48 : f32 to vector<1x128xf32>
    %1511 = arith.mulf %1510, %1500 : vector<1x128xf32>
    %1512 = arith.addf %1496, %1511 : vector<1x128xf32>
    %1513 = vector.broadcast %49 : f32 to vector<1x128xf32>
    %1514 = arith.mulf %1513, %1500 : vector<1x128xf32>
    %1515 = arith.addf %1499, %1514 : vector<1x128xf32>
    %1516 = arith.mulf %1341, %1348 : vector<1x128xf32>
    %1517 = vector.broadcast %50 : f32 to vector<1x128xf32>
    %1518 = arith.mulf %1517, %1516 : vector<1x128xf32>
    %1519 = arith.addf %1503, %1518 : vector<1x128xf32>
    %1520 = vector.broadcast %51 : f32 to vector<1x128xf32>
    %1521 = arith.mulf %1520, %1516 : vector<1x128xf32>
    %1522 = arith.addf %1506, %1521 : vector<1x128xf32>
    %1523 = vector.broadcast %52 : f32 to vector<1x128xf32>
    %1524 = arith.mulf %1523, %1516 : vector<1x128xf32>
    %1525 = arith.addf %1509, %1524 : vector<1x128xf32>
    %1526 = vector.broadcast %53 : f32 to vector<1x128xf32>
    %1527 = arith.mulf %1526, %1516 : vector<1x128xf32>
    %1528 = arith.addf %1512, %1527 : vector<1x128xf32>
    %1529 = vector.broadcast %54 : f32 to vector<1x128xf32>
    %1530 = arith.mulf %1529, %1516 : vector<1x128xf32>
    %1531 = arith.addf %1515, %1530 : vector<1x128xf32>
    %1532 = arith.mulf %1341, %1350 : vector<1x128xf32>
    %1533 = vector.broadcast %55 : f32 to vector<1x128xf32>
    %1534 = arith.mulf %1533, %1532 : vector<1x128xf32>
    %1535 = arith.addf %1519, %1534 : vector<1x128xf32>
    %1536 = vector.broadcast %56 : f32 to vector<1x128xf32>
    %1537 = arith.mulf %1536, %1532 : vector<1x128xf32>
    %1538 = arith.addf %1522, %1537 : vector<1x128xf32>
    %1539 = vector.broadcast %57 : f32 to vector<1x128xf32>
    %1540 = arith.mulf %1539, %1532 : vector<1x128xf32>
    %1541 = arith.addf %1525, %1540 : vector<1x128xf32>
    %1542 = vector.broadcast %58 : f32 to vector<1x128xf32>
    %1543 = arith.mulf %1542, %1532 : vector<1x128xf32>
    %1544 = arith.addf %1528, %1543 : vector<1x128xf32>
    %1545 = vector.broadcast %59 : f32 to vector<1x128xf32>
    %1546 = arith.mulf %1545, %1532 : vector<1x128xf32>
    %1547 = arith.addf %1531, %1546 : vector<1x128xf32>
    %1548 = arith.mulf %1344, %1346 : vector<1x128xf32>
    %1549 = vector.broadcast %60 : f32 to vector<1x128xf32>
    %1550 = arith.mulf %1549, %1548 : vector<1x128xf32>
    %1551 = arith.addf %1535, %1550 : vector<1x128xf32>
    %1552 = vector.broadcast %61 : f32 to vector<1x128xf32>
    %1553 = arith.mulf %1552, %1548 : vector<1x128xf32>
    %1554 = arith.addf %1538, %1553 : vector<1x128xf32>
    %1555 = vector.broadcast %62 : f32 to vector<1x128xf32>
    %1556 = arith.mulf %1555, %1548 : vector<1x128xf32>
    %1557 = arith.addf %1541, %1556 : vector<1x128xf32>
    %1558 = vector.broadcast %63 : f32 to vector<1x128xf32>
    %1559 = arith.mulf %1558, %1548 : vector<1x128xf32>
    %1560 = arith.addf %1544, %1559 : vector<1x128xf32>
    %1561 = vector.broadcast %64 : f32 to vector<1x128xf32>
    %1562 = arith.mulf %1561, %1548 : vector<1x128xf32>
    %1563 = arith.addf %1547, %1562 : vector<1x128xf32>
    %1564 = arith.mulf %1344, %1348 : vector<1x128xf32>
    %1565 = vector.broadcast %65 : f32 to vector<1x128xf32>
    %1566 = arith.mulf %1565, %1564 : vector<1x128xf32>
    %1567 = arith.addf %1551, %1566 : vector<1x128xf32>
    %1568 = vector.broadcast %66 : f32 to vector<1x128xf32>
    %1569 = arith.mulf %1568, %1564 : vector<1x128xf32>
    %1570 = arith.addf %1554, %1569 : vector<1x128xf32>
    %1571 = vector.broadcast %67 : f32 to vector<1x128xf32>
    %1572 = arith.mulf %1571, %1564 : vector<1x128xf32>
    %1573 = arith.addf %1557, %1572 : vector<1x128xf32>
    %1574 = vector.broadcast %68 : f32 to vector<1x128xf32>
    %1575 = arith.mulf %1574, %1564 : vector<1x128xf32>
    %1576 = arith.addf %1560, %1575 : vector<1x128xf32>
    %1577 = vector.broadcast %69 : f32 to vector<1x128xf32>
    %1578 = arith.mulf %1577, %1564 : vector<1x128xf32>
    %1579 = arith.addf %1563, %1578 : vector<1x128xf32>
    %1580 = arith.mulf %1344, %1350 : vector<1x128xf32>
    %1581 = vector.broadcast %70 : f32 to vector<1x128xf32>
    %1582 = arith.mulf %1581, %1580 : vector<1x128xf32>
    %1583 = arith.addf %1567, %1582 : vector<1x128xf32>
    %1584 = vector.broadcast %71 : f32 to vector<1x128xf32>
    %1585 = arith.mulf %1584, %1580 : vector<1x128xf32>
    %1586 = arith.addf %1570, %1585 : vector<1x128xf32>
    %1587 = vector.broadcast %72 : f32 to vector<1x128xf32>
    %1588 = arith.mulf %1587, %1580 : vector<1x128xf32>
    %1589 = arith.addf %1573, %1588 : vector<1x128xf32>
    %1590 = vector.broadcast %73 : f32 to vector<1x128xf32>
    %1591 = arith.mulf %1590, %1580 : vector<1x128xf32>
    %1592 = arith.addf %1576, %1591 : vector<1x128xf32>
    %1593 = vector.broadcast %74 : f32 to vector<1x128xf32>
    %1594 = arith.mulf %1593, %1580 : vector<1x128xf32>
    %1595 = arith.addf %1579, %1594 : vector<1x128xf32>
    %c6_111 = arith.constant 6 : index
    %c0_112 = arith.constant 0 : index
    %c0_113 = arith.constant 0 : index
    %c0_114 = arith.constant 0 : index
    %1596 = vector.load %arg4[%c6_111, %c0_112, %c0_113, %c0_114] : memref<8x3x1x128xf32, #tpu.memory_space<vmem>>, vector<1x1x1x128xf32>
    %1597 = vector.shape_cast %1596 : vector<1x1x1x128xf32> to vector<1x128xf32>
    %c6_115 = arith.constant 6 : index
    %c1_116 = arith.constant 1 : index
    %c0_117 = arith.constant 0 : index
    %c0_118 = arith.constant 0 : index
    %1598 = vector.load %arg4[%c6_115, %c1_116, %c0_117, %c0_118] : memref<8x3x1x128xf32, #tpu.memory_space<vmem>>, vector<1x1x1x128xf32>
    %1599 = vector.shape_cast %1598 : vector<1x1x1x128xf32> to vector<1x128xf32>
    %c6_119 = arith.constant 6 : index
    %c2_120 = arith.constant 2 : index
    %c0_121 = arith.constant 0 : index
    %c0_122 = arith.constant 0 : index
    %1600 = vector.load %arg4[%c6_119, %c2_120, %c0_121, %c0_122] : memref<8x3x1x128xf32, #tpu.memory_space<vmem>>, vector<1x1x1x128xf32>
    %1601 = vector.shape_cast %1600 : vector<1x1x1x128xf32> to vector<1x128xf32>
    %cst_123 = arith.constant 0.000000e+00 : f32
    %1602 = vector.broadcast %cst_123 : f32 to vector<1x128xf32>
    %cst_124 = arith.constant 0.000000e+00 : f32
    %1603 = vector.broadcast %cst_124 : f32 to vector<1x128xf32>
    %cst_125 = arith.constant 0.000000e+00 : f32
    %1604 = vector.broadcast %cst_125 : f32 to vector<1x128xf32>
    %cst_126 = arith.constant 0.000000e+00 : f32
    %1605 = vector.broadcast %cst_126 : f32 to vector<1x128xf32>
    %cst_127 = arith.constant 0.000000e+00 : f32
    %1606 = vector.broadcast %cst_127 : f32 to vector<1x128xf32>
    %1607 = arith.mulf %1583, %1597 : vector<1x128xf32>
    %1608 = vector.broadcast %0 : f32 to vector<1x128xf32>
    %1609 = arith.mulf %1608, %1607 : vector<1x128xf32>
    %1610 = arith.addf %1602, %1609 : vector<1x128xf32>
    %1611 = vector.broadcast %1 : f32 to vector<1x128xf32>
    %1612 = arith.mulf %1611, %1607 : vector<1x128xf32>
    %1613 = arith.addf %1603, %1612 : vector<1x128xf32>
    %1614 = vector.broadcast %2 : f32 to vector<1x128xf32>
    %1615 = arith.mulf %1614, %1607 : vector<1x128xf32>
    %1616 = arith.addf %1604, %1615 : vector<1x128xf32>
    %1617 = vector.broadcast %3 : f32 to vector<1x128xf32>
    %1618 = arith.mulf %1617, %1607 : vector<1x128xf32>
    %1619 = arith.addf %1605, %1618 : vector<1x128xf32>
    %1620 = vector.broadcast %4 : f32 to vector<1x128xf32>
    %1621 = arith.mulf %1620, %1607 : vector<1x128xf32>
    %1622 = arith.addf %1606, %1621 : vector<1x128xf32>
    %1623 = arith.mulf %1583, %1599 : vector<1x128xf32>
    %1624 = vector.broadcast %5 : f32 to vector<1x128xf32>
    %1625 = arith.mulf %1624, %1623 : vector<1x128xf32>
    %1626 = arith.addf %1610, %1625 : vector<1x128xf32>
    %1627 = vector.broadcast %6 : f32 to vector<1x128xf32>
    %1628 = arith.mulf %1627, %1623 : vector<1x128xf32>
    %1629 = arith.addf %1613, %1628 : vector<1x128xf32>
    %1630 = vector.broadcast %7 : f32 to vector<1x128xf32>
    %1631 = arith.mulf %1630, %1623 : vector<1x128xf32>
    %1632 = arith.addf %1616, %1631 : vector<1x128xf32>
    %1633 = vector.broadcast %8 : f32 to vector<1x128xf32>
    %1634 = arith.mulf %1633, %1623 : vector<1x128xf32>
    %1635 = arith.addf %1619, %1634 : vector<1x128xf32>
    %1636 = vector.broadcast %9 : f32 to vector<1x128xf32>
    %1637 = arith.mulf %1636, %1623 : vector<1x128xf32>
    %1638 = arith.addf %1622, %1637 : vector<1x128xf32>
    %1639 = arith.mulf %1583, %1601 : vector<1x128xf32>
    %1640 = vector.broadcast %10 : f32 to vector<1x128xf32>
    %1641 = arith.mulf %1640, %1639 : vector<1x128xf32>
    %1642 = arith.addf %1626, %1641 : vector<1x128xf32>
    %1643 = vector.broadcast %11 : f32 to vector<1x128xf32>
    %1644 = arith.mulf %1643, %1639 : vector<1x128xf32>
    %1645 = arith.addf %1629, %1644 : vector<1x128xf32>
    %1646 = vector.broadcast %12 : f32 to vector<1x128xf32>
    %1647 = arith.mulf %1646, %1639 : vector<1x128xf32>
    %1648 = arith.addf %1632, %1647 : vector<1x128xf32>
    %1649 = vector.broadcast %13 : f32 to vector<1x128xf32>
    %1650 = arith.mulf %1649, %1639 : vector<1x128xf32>
    %1651 = arith.addf %1635, %1650 : vector<1x128xf32>
    %1652 = vector.broadcast %14 : f32 to vector<1x128xf32>
    %1653 = arith.mulf %1652, %1639 : vector<1x128xf32>
    %1654 = arith.addf %1638, %1653 : vector<1x128xf32>
    %1655 = arith.mulf %1586, %1597 : vector<1x128xf32>
    %1656 = vector.broadcast %15 : f32 to vector<1x128xf32>
    %1657 = arith.mulf %1656, %1655 : vector<1x128xf32>
    %1658 = arith.addf %1642, %1657 : vector<1x128xf32>
    %1659 = vector.broadcast %16 : f32 to vector<1x128xf32>
    %1660 = arith.mulf %1659, %1655 : vector<1x128xf32>
    %1661 = arith.addf %1645, %1660 : vector<1x128xf32>
    %1662 = vector.broadcast %17 : f32 to vector<1x128xf32>
    %1663 = arith.mulf %1662, %1655 : vector<1x128xf32>
    %1664 = arith.addf %1648, %1663 : vector<1x128xf32>
    %1665 = vector.broadcast %18 : f32 to vector<1x128xf32>
    %1666 = arith.mulf %1665, %1655 : vector<1x128xf32>
    %1667 = arith.addf %1651, %1666 : vector<1x128xf32>
    %1668 = vector.broadcast %19 : f32 to vector<1x128xf32>
    %1669 = arith.mulf %1668, %1655 : vector<1x128xf32>
    %1670 = arith.addf %1654, %1669 : vector<1x128xf32>
    %1671 = arith.mulf %1586, %1599 : vector<1x128xf32>
    %1672 = vector.broadcast %20 : f32 to vector<1x128xf32>
    %1673 = arith.mulf %1672, %1671 : vector<1x128xf32>
    %1674 = arith.addf %1658, %1673 : vector<1x128xf32>
    %1675 = vector.broadcast %21 : f32 to vector<1x128xf32>
    %1676 = arith.mulf %1675, %1671 : vector<1x128xf32>
    %1677 = arith.addf %1661, %1676 : vector<1x128xf32>
    %1678 = vector.broadcast %22 : f32 to vector<1x128xf32>
    %1679 = arith.mulf %1678, %1671 : vector<1x128xf32>
    %1680 = arith.addf %1664, %1679 : vector<1x128xf32>
    %1681 = vector.broadcast %23 : f32 to vector<1x128xf32>
    %1682 = arith.mulf %1681, %1671 : vector<1x128xf32>
    %1683 = arith.addf %1667, %1682 : vector<1x128xf32>
    %1684 = vector.broadcast %24 : f32 to vector<1x128xf32>
    %1685 = arith.mulf %1684, %1671 : vector<1x128xf32>
    %1686 = arith.addf %1670, %1685 : vector<1x128xf32>
    %1687 = arith.mulf %1586, %1601 : vector<1x128xf32>
    %1688 = vector.broadcast %25 : f32 to vector<1x128xf32>
    %1689 = arith.mulf %1688, %1687 : vector<1x128xf32>
    %1690 = arith.addf %1674, %1689 : vector<1x128xf32>
    %1691 = vector.broadcast %26 : f32 to vector<1x128xf32>
    %1692 = arith.mulf %1691, %1687 : vector<1x128xf32>
    %1693 = arith.addf %1677, %1692 : vector<1x128xf32>
    %1694 = vector.broadcast %27 : f32 to vector<1x128xf32>
    %1695 = arith.mulf %1694, %1687 : vector<1x128xf32>
    %1696 = arith.addf %1680, %1695 : vector<1x128xf32>
    %1697 = vector.broadcast %28 : f32 to vector<1x128xf32>
    %1698 = arith.mulf %1697, %1687 : vector<1x128xf32>
    %1699 = arith.addf %1683, %1698 : vector<1x128xf32>
    %1700 = vector.broadcast %29 : f32 to vector<1x128xf32>
    %1701 = arith.mulf %1700, %1687 : vector<1x128xf32>
    %1702 = arith.addf %1686, %1701 : vector<1x128xf32>
    %1703 = arith.mulf %1589, %1597 : vector<1x128xf32>
    %1704 = vector.broadcast %30 : f32 to vector<1x128xf32>
    %1705 = arith.mulf %1704, %1703 : vector<1x128xf32>
    %1706 = arith.addf %1690, %1705 : vector<1x128xf32>
    %1707 = vector.broadcast %31 : f32 to vector<1x128xf32>
    %1708 = arith.mulf %1707, %1703 : vector<1x128xf32>
    %1709 = arith.addf %1693, %1708 : vector<1x128xf32>
    %1710 = vector.broadcast %32 : f32 to vector<1x128xf32>
    %1711 = arith.mulf %1710, %1703 : vector<1x128xf32>
    %1712 = arith.addf %1696, %1711 : vector<1x128xf32>
    %1713 = vector.broadcast %33 : f32 to vector<1x128xf32>
    %1714 = arith.mulf %1713, %1703 : vector<1x128xf32>
    %1715 = arith.addf %1699, %1714 : vector<1x128xf32>
    %1716 = vector.broadcast %34 : f32 to vector<1x128xf32>
    %1717 = arith.mulf %1716, %1703 : vector<1x128xf32>
    %1718 = arith.addf %1702, %1717 : vector<1x128xf32>
    %1719 = arith.mulf %1589, %1599 : vector<1x128xf32>
    %1720 = vector.broadcast %35 : f32 to vector<1x128xf32>
    %1721 = arith.mulf %1720, %1719 : vector<1x128xf32>
    %1722 = arith.addf %1706, %1721 : vector<1x128xf32>
    %1723 = vector.broadcast %36 : f32 to vector<1x128xf32>
    %1724 = arith.mulf %1723, %1719 : vector<1x128xf32>
    %1725 = arith.addf %1709, %1724 : vector<1x128xf32>
    %1726 = vector.broadcast %37 : f32 to vector<1x128xf32>
    %1727 = arith.mulf %1726, %1719 : vector<1x128xf32>
    %1728 = arith.addf %1712, %1727 : vector<1x128xf32>
    %1729 = vector.broadcast %38 : f32 to vector<1x128xf32>
    %1730 = arith.mulf %1729, %1719 : vector<1x128xf32>
    %1731 = arith.addf %1715, %1730 : vector<1x128xf32>
    %1732 = vector.broadcast %39 : f32 to vector<1x128xf32>
    %1733 = arith.mulf %1732, %1719 : vector<1x128xf32>
    %1734 = arith.addf %1718, %1733 : vector<1x128xf32>
    %1735 = arith.mulf %1589, %1601 : vector<1x128xf32>
    %1736 = vector.broadcast %40 : f32 to vector<1x128xf32>
    %1737 = arith.mulf %1736, %1735 : vector<1x128xf32>
    %1738 = arith.addf %1722, %1737 : vector<1x128xf32>
    %1739 = vector.broadcast %41 : f32 to vector<1x128xf32>
    %1740 = arith.mulf %1739, %1735 : vector<1x128xf32>
    %1741 = arith.addf %1725, %1740 : vector<1x128xf32>
    %1742 = vector.broadcast %42 : f32 to vector<1x128xf32>
    %1743 = arith.mulf %1742, %1735 : vector<1x128xf32>
    %1744 = arith.addf %1728, %1743 : vector<1x128xf32>
    %1745 = vector.broadcast %43 : f32 to vector<1x128xf32>
    %1746 = arith.mulf %1745, %1735 : vector<1x128xf32>
    %1747 = arith.addf %1731, %1746 : vector<1x128xf32>
    %1748 = vector.broadcast %44 : f32 to vector<1x128xf32>
    %1749 = arith.mulf %1748, %1735 : vector<1x128xf32>
    %1750 = arith.addf %1734, %1749 : vector<1x128xf32>
    %1751 = arith.mulf %1592, %1597 : vector<1x128xf32>
    %1752 = vector.broadcast %45 : f32 to vector<1x128xf32>
    %1753 = arith.mulf %1752, %1751 : vector<1x128xf32>
    %1754 = arith.addf %1738, %1753 : vector<1x128xf32>
    %1755 = vector.broadcast %46 : f32 to vector<1x128xf32>
    %1756 = arith.mulf %1755, %1751 : vector<1x128xf32>
    %1757 = arith.addf %1741, %1756 : vector<1x128xf32>
    %1758 = vector.broadcast %47 : f32 to vector<1x128xf32>
    %1759 = arith.mulf %1758, %1751 : vector<1x128xf32>
    %1760 = arith.addf %1744, %1759 : vector<1x128xf32>
    %1761 = vector.broadcast %48 : f32 to vector<1x128xf32>
    %1762 = arith.mulf %1761, %1751 : vector<1x128xf32>
    %1763 = arith.addf %1747, %1762 : vector<1x128xf32>
    %1764 = vector.broadcast %49 : f32 to vector<1x128xf32>
    %1765 = arith.mulf %1764, %1751 : vector<1x128xf32>
    %1766 = arith.addf %1750, %1765 : vector<1x128xf32>
    %1767 = arith.mulf %1592, %1599 : vector<1x128xf32>
    %1768 = vector.broadcast %50 : f32 to vector<1x128xf32>
    %1769 = arith.mulf %1768, %1767 : vector<1x128xf32>
    %1770 = arith.addf %1754, %1769 : vector<1x128xf32>
    %1771 = vector.broadcast %51 : f32 to vector<1x128xf32>
    %1772 = arith.mulf %1771, %1767 : vector<1x128xf32>
    %1773 = arith.addf %1757, %1772 : vector<1x128xf32>
    %1774 = vector.broadcast %52 : f32 to vector<1x128xf32>
    %1775 = arith.mulf %1774, %1767 : vector<1x128xf32>
    %1776 = arith.addf %1760, %1775 : vector<1x128xf32>
    %1777 = vector.broadcast %53 : f32 to vector<1x128xf32>
    %1778 = arith.mulf %1777, %1767 : vector<1x128xf32>
    %1779 = arith.addf %1763, %1778 : vector<1x128xf32>
    %1780 = vector.broadcast %54 : f32 to vector<1x128xf32>
    %1781 = arith.mulf %1780, %1767 : vector<1x128xf32>
    %1782 = arith.addf %1766, %1781 : vector<1x128xf32>
    %1783 = arith.mulf %1592, %1601 : vector<1x128xf32>
    %1784 = vector.broadcast %55 : f32 to vector<1x128xf32>
    %1785 = arith.mulf %1784, %1783 : vector<1x128xf32>
    %1786 = arith.addf %1770, %1785 : vector<1x128xf32>
    %1787 = vector.broadcast %56 : f32 to vector<1x128xf32>
    %1788 = arith.mulf %1787, %1783 : vector<1x128xf32>
    %1789 = arith.addf %1773, %1788 : vector<1x128xf32>
    %1790 = vector.broadcast %57 : f32 to vector<1x128xf32>
    %1791 = arith.mulf %1790, %1783 : vector<1x128xf32>
    %1792 = arith.addf %1776, %1791 : vector<1x128xf32>
    %1793 = vector.broadcast %58 : f32 to vector<1x128xf32>
    %1794 = arith.mulf %1793, %1783 : vector<1x128xf32>
    %1795 = arith.addf %1779, %1794 : vector<1x128xf32>
    %1796 = vector.broadcast %59 : f32 to vector<1x128xf32>
    %1797 = arith.mulf %1796, %1783 : vector<1x128xf32>
    %1798 = arith.addf %1782, %1797 : vector<1x128xf32>
    %1799 = arith.mulf %1595, %1597 : vector<1x128xf32>
    %1800 = vector.broadcast %60 : f32 to vector<1x128xf32>
    %1801 = arith.mulf %1800, %1799 : vector<1x128xf32>
    %1802 = arith.addf %1786, %1801 : vector<1x128xf32>
    %1803 = vector.broadcast %61 : f32 to vector<1x128xf32>
    %1804 = arith.mulf %1803, %1799 : vector<1x128xf32>
    %1805 = arith.addf %1789, %1804 : vector<1x128xf32>
    %1806 = vector.broadcast %62 : f32 to vector<1x128xf32>
    %1807 = arith.mulf %1806, %1799 : vector<1x128xf32>
    %1808 = arith.addf %1792, %1807 : vector<1x128xf32>
    %1809 = vector.broadcast %63 : f32 to vector<1x128xf32>
    %1810 = arith.mulf %1809, %1799 : vector<1x128xf32>
    %1811 = arith.addf %1795, %1810 : vector<1x128xf32>
    %1812 = vector.broadcast %64 : f32 to vector<1x128xf32>
    %1813 = arith.mulf %1812, %1799 : vector<1x128xf32>
    %1814 = arith.addf %1798, %1813 : vector<1x128xf32>
    %1815 = arith.mulf %1595, %1599 : vector<1x128xf32>
    %1816 = vector.broadcast %65 : f32 to vector<1x128xf32>
    %1817 = arith.mulf %1816, %1815 : vector<1x128xf32>
    %1818 = arith.addf %1802, %1817 : vector<1x128xf32>
    %1819 = vector.broadcast %66 : f32 to vector<1x128xf32>
    %1820 = arith.mulf %1819, %1815 : vector<1x128xf32>
    %1821 = arith.addf %1805, %1820 : vector<1x128xf32>
    %1822 = vector.broadcast %67 : f32 to vector<1x128xf32>
    %1823 = arith.mulf %1822, %1815 : vector<1x128xf32>
    %1824 = arith.addf %1808, %1823 : vector<1x128xf32>
    %1825 = vector.broadcast %68 : f32 to vector<1x128xf32>
    %1826 = arith.mulf %1825, %1815 : vector<1x128xf32>
    %1827 = arith.addf %1811, %1826 : vector<1x128xf32>
    %1828 = vector.broadcast %69 : f32 to vector<1x128xf32>
    %1829 = arith.mulf %1828, %1815 : vector<1x128xf32>
    %1830 = arith.addf %1814, %1829 : vector<1x128xf32>
    %1831 = arith.mulf %1595, %1601 : vector<1x128xf32>
    %1832 = vector.broadcast %70 : f32 to vector<1x128xf32>
    %1833 = arith.mulf %1832, %1831 : vector<1x128xf32>
    %1834 = arith.addf %1818, %1833 : vector<1x128xf32>
    %1835 = vector.broadcast %71 : f32 to vector<1x128xf32>
    %1836 = arith.mulf %1835, %1831 : vector<1x128xf32>
    %1837 = arith.addf %1821, %1836 : vector<1x128xf32>
    %1838 = vector.broadcast %72 : f32 to vector<1x128xf32>
    %1839 = arith.mulf %1838, %1831 : vector<1x128xf32>
    %1840 = arith.addf %1824, %1839 : vector<1x128xf32>
    %1841 = vector.broadcast %73 : f32 to vector<1x128xf32>
    %1842 = arith.mulf %1841, %1831 : vector<1x128xf32>
    %1843 = arith.addf %1827, %1842 : vector<1x128xf32>
    %1844 = vector.broadcast %74 : f32 to vector<1x128xf32>
    %1845 = arith.mulf %1844, %1831 : vector<1x128xf32>
    %1846 = arith.addf %1830, %1845 : vector<1x128xf32>
    %c7_128 = arith.constant 7 : index
    %c0_129 = arith.constant 0 : index
    %c0_130 = arith.constant 0 : index
    %c0_131 = arith.constant 0 : index
    %1847 = vector.load %arg4[%c7_128, %c0_129, %c0_130, %c0_131] : memref<8x3x1x128xf32, #tpu.memory_space<vmem>>, vector<1x1x1x128xf32>
    %1848 = vector.shape_cast %1847 : vector<1x1x1x128xf32> to vector<1x128xf32>
    %c7_132 = arith.constant 7 : index
    %c1_133 = arith.constant 1 : index
    %c0_134 = arith.constant 0 : index
    %c0_135 = arith.constant 0 : index
    %1849 = vector.load %arg4[%c7_132, %c1_133, %c0_134, %c0_135] : memref<8x3x1x128xf32, #tpu.memory_space<vmem>>, vector<1x1x1x128xf32>
    %1850 = vector.shape_cast %1849 : vector<1x1x1x128xf32> to vector<1x128xf32>
    %c7_136 = arith.constant 7 : index
    %c2_137 = arith.constant 2 : index
    %c0_138 = arith.constant 0 : index
    %c0_139 = arith.constant 0 : index
    %1851 = vector.load %arg4[%c7_136, %c2_137, %c0_138, %c0_139] : memref<8x3x1x128xf32, #tpu.memory_space<vmem>>, vector<1x1x1x128xf32>
    %1852 = vector.shape_cast %1851 : vector<1x1x1x128xf32> to vector<1x128xf32>
    %cst_140 = arith.constant 0.000000e+00 : f32
    %1853 = vector.broadcast %cst_140 : f32 to vector<1x128xf32>
    %cst_141 = arith.constant 0.000000e+00 : f32
    %1854 = vector.broadcast %cst_141 : f32 to vector<1x128xf32>
    %cst_142 = arith.constant 0.000000e+00 : f32
    %1855 = vector.broadcast %cst_142 : f32 to vector<1x128xf32>
    %cst_143 = arith.constant 0.000000e+00 : f32
    %1856 = vector.broadcast %cst_143 : f32 to vector<1x128xf32>
    %cst_144 = arith.constant 0.000000e+00 : f32
    %1857 = vector.broadcast %cst_144 : f32 to vector<1x128xf32>
    %1858 = arith.mulf %1834, %1848 : vector<1x128xf32>
    %1859 = vector.broadcast %0 : f32 to vector<1x128xf32>
    %1860 = arith.mulf %1859, %1858 : vector<1x128xf32>
    %1861 = arith.addf %1853, %1860 : vector<1x128xf32>
    %1862 = vector.broadcast %1 : f32 to vector<1x128xf32>
    %1863 = arith.mulf %1862, %1858 : vector<1x128xf32>
    %1864 = arith.addf %1854, %1863 : vector<1x128xf32>
    %1865 = vector.broadcast %2 : f32 to vector<1x128xf32>
    %1866 = arith.mulf %1865, %1858 : vector<1x128xf32>
    %1867 = arith.addf %1855, %1866 : vector<1x128xf32>
    %1868 = vector.broadcast %3 : f32 to vector<1x128xf32>
    %1869 = arith.mulf %1868, %1858 : vector<1x128xf32>
    %1870 = arith.addf %1856, %1869 : vector<1x128xf32>
    %1871 = vector.broadcast %4 : f32 to vector<1x128xf32>
    %1872 = arith.mulf %1871, %1858 : vector<1x128xf32>
    %1873 = arith.addf %1857, %1872 : vector<1x128xf32>
    %1874 = arith.mulf %1834, %1850 : vector<1x128xf32>
    %1875 = vector.broadcast %5 : f32 to vector<1x128xf32>
    %1876 = arith.mulf %1875, %1874 : vector<1x128xf32>
    %1877 = arith.addf %1861, %1876 : vector<1x128xf32>
    %1878 = vector.broadcast %6 : f32 to vector<1x128xf32>
    %1879 = arith.mulf %1878, %1874 : vector<1x128xf32>
    %1880 = arith.addf %1864, %1879 : vector<1x128xf32>
    %1881 = vector.broadcast %7 : f32 to vector<1x128xf32>
    %1882 = arith.mulf %1881, %1874 : vector<1x128xf32>
    %1883 = arith.addf %1867, %1882 : vector<1x128xf32>
    %1884 = vector.broadcast %8 : f32 to vector<1x128xf32>
    %1885 = arith.mulf %1884, %1874 : vector<1x128xf32>
    %1886 = arith.addf %1870, %1885 : vector<1x128xf32>
    %1887 = vector.broadcast %9 : f32 to vector<1x128xf32>
    %1888 = arith.mulf %1887, %1874 : vector<1x128xf32>
    %1889 = arith.addf %1873, %1888 : vector<1x128xf32>
    %1890 = arith.mulf %1834, %1852 : vector<1x128xf32>
    %1891 = vector.broadcast %10 : f32 to vector<1x128xf32>
    %1892 = arith.mulf %1891, %1890 : vector<1x128xf32>
    %1893 = arith.addf %1877, %1892 : vector<1x128xf32>
    %1894 = vector.broadcast %11 : f32 to vector<1x128xf32>
    %1895 = arith.mulf %1894, %1890 : vector<1x128xf32>
    %1896 = arith.addf %1880, %1895 : vector<1x128xf32>
    %1897 = vector.broadcast %12 : f32 to vector<1x128xf32>
    %1898 = arith.mulf %1897, %1890 : vector<1x128xf32>
    %1899 = arith.addf %1883, %1898 : vector<1x128xf32>
    %1900 = vector.broadcast %13 : f32 to vector<1x128xf32>
    %1901 = arith.mulf %1900, %1890 : vector<1x128xf32>
    %1902 = arith.addf %1886, %1901 : vector<1x128xf32>
    %1903 = vector.broadcast %14 : f32 to vector<1x128xf32>
    %1904 = arith.mulf %1903, %1890 : vector<1x128xf32>
    %1905 = arith.addf %1889, %1904 : vector<1x128xf32>
    %1906 = arith.mulf %1837, %1848 : vector<1x128xf32>
    %1907 = vector.broadcast %15 : f32 to vector<1x128xf32>
    %1908 = arith.mulf %1907, %1906 : vector<1x128xf32>
    %1909 = arith.addf %1893, %1908 : vector<1x128xf32>
    %1910 = vector.broadcast %16 : f32 to vector<1x128xf32>
    %1911 = arith.mulf %1910, %1906 : vector<1x128xf32>
    %1912 = arith.addf %1896, %1911 : vector<1x128xf32>
    %1913 = vector.broadcast %17 : f32 to vector<1x128xf32>
    %1914 = arith.mulf %1913, %1906 : vector<1x128xf32>
    %1915 = arith.addf %1899, %1914 : vector<1x128xf32>
    %1916 = vector.broadcast %18 : f32 to vector<1x128xf32>
    %1917 = arith.mulf %1916, %1906 : vector<1x128xf32>
    %1918 = arith.addf %1902, %1917 : vector<1x128xf32>
    %1919 = vector.broadcast %19 : f32 to vector<1x128xf32>
    %1920 = arith.mulf %1919, %1906 : vector<1x128xf32>
    %1921 = arith.addf %1905, %1920 : vector<1x128xf32>
    %1922 = arith.mulf %1837, %1850 : vector<1x128xf32>
    %1923 = vector.broadcast %20 : f32 to vector<1x128xf32>
    %1924 = arith.mulf %1923, %1922 : vector<1x128xf32>
    %1925 = arith.addf %1909, %1924 : vector<1x128xf32>
    %1926 = vector.broadcast %21 : f32 to vector<1x128xf32>
    %1927 = arith.mulf %1926, %1922 : vector<1x128xf32>
    %1928 = arith.addf %1912, %1927 : vector<1x128xf32>
    %1929 = vector.broadcast %22 : f32 to vector<1x128xf32>
    %1930 = arith.mulf %1929, %1922 : vector<1x128xf32>
    %1931 = arith.addf %1915, %1930 : vector<1x128xf32>
    %1932 = vector.broadcast %23 : f32 to vector<1x128xf32>
    %1933 = arith.mulf %1932, %1922 : vector<1x128xf32>
    %1934 = arith.addf %1918, %1933 : vector<1x128xf32>
    %1935 = vector.broadcast %24 : f32 to vector<1x128xf32>
    %1936 = arith.mulf %1935, %1922 : vector<1x128xf32>
    %1937 = arith.addf %1921, %1936 : vector<1x128xf32>
    %1938 = arith.mulf %1837, %1852 : vector<1x128xf32>
    %1939 = vector.broadcast %25 : f32 to vector<1x128xf32>
    %1940 = arith.mulf %1939, %1938 : vector<1x128xf32>
    %1941 = arith.addf %1925, %1940 : vector<1x128xf32>
    %1942 = vector.broadcast %26 : f32 to vector<1x128xf32>
    %1943 = arith.mulf %1942, %1938 : vector<1x128xf32>
    %1944 = arith.addf %1928, %1943 : vector<1x128xf32>
    %1945 = vector.broadcast %27 : f32 to vector<1x128xf32>
    %1946 = arith.mulf %1945, %1938 : vector<1x128xf32>
    %1947 = arith.addf %1931, %1946 : vector<1x128xf32>
    %1948 = vector.broadcast %28 : f32 to vector<1x128xf32>
    %1949 = arith.mulf %1948, %1938 : vector<1x128xf32>
    %1950 = arith.addf %1934, %1949 : vector<1x128xf32>
    %1951 = vector.broadcast %29 : f32 to vector<1x128xf32>
    %1952 = arith.mulf %1951, %1938 : vector<1x128xf32>
    %1953 = arith.addf %1937, %1952 : vector<1x128xf32>
    %1954 = arith.mulf %1840, %1848 : vector<1x128xf32>
    %1955 = vector.broadcast %30 : f32 to vector<1x128xf32>
    %1956 = arith.mulf %1955, %1954 : vector<1x128xf32>
    %1957 = arith.addf %1941, %1956 : vector<1x128xf32>
    %1958 = vector.broadcast %31 : f32 to vector<1x128xf32>
    %1959 = arith.mulf %1958, %1954 : vector<1x128xf32>
    %1960 = arith.addf %1944, %1959 : vector<1x128xf32>
    %1961 = vector.broadcast %32 : f32 to vector<1x128xf32>
    %1962 = arith.mulf %1961, %1954 : vector<1x128xf32>
    %1963 = arith.addf %1947, %1962 : vector<1x128xf32>
    %1964 = vector.broadcast %33 : f32 to vector<1x128xf32>
    %1965 = arith.mulf %1964, %1954 : vector<1x128xf32>
    %1966 = arith.addf %1950, %1965 : vector<1x128xf32>
    %1967 = vector.broadcast %34 : f32 to vector<1x128xf32>
    %1968 = arith.mulf %1967, %1954 : vector<1x128xf32>
    %1969 = arith.addf %1953, %1968 : vector<1x128xf32>
    %1970 = arith.mulf %1840, %1850 : vector<1x128xf32>
    %1971 = vector.broadcast %35 : f32 to vector<1x128xf32>
    %1972 = arith.mulf %1971, %1970 : vector<1x128xf32>
    %1973 = arith.addf %1957, %1972 : vector<1x128xf32>
    %1974 = vector.broadcast %36 : f32 to vector<1x128xf32>
    %1975 = arith.mulf %1974, %1970 : vector<1x128xf32>
    %1976 = arith.addf %1960, %1975 : vector<1x128xf32>
    %1977 = vector.broadcast %37 : f32 to vector<1x128xf32>
    %1978 = arith.mulf %1977, %1970 : vector<1x128xf32>
    %1979 = arith.addf %1963, %1978 : vector<1x128xf32>
    %1980 = vector.broadcast %38 : f32 to vector<1x128xf32>
    %1981 = arith.mulf %1980, %1970 : vector<1x128xf32>
    %1982 = arith.addf %1966, %1981 : vector<1x128xf32>
    %1983 = vector.broadcast %39 : f32 to vector<1x128xf32>
    %1984 = arith.mulf %1983, %1970 : vector<1x128xf32>
    %1985 = arith.addf %1969, %1984 : vector<1x128xf32>
    %1986 = arith.mulf %1840, %1852 : vector<1x128xf32>
    %1987 = vector.broadcast %40 : f32 to vector<1x128xf32>
    %1988 = arith.mulf %1987, %1986 : vector<1x128xf32>
    %1989 = arith.addf %1973, %1988 : vector<1x128xf32>
    %1990 = vector.broadcast %41 : f32 to vector<1x128xf32>
    %1991 = arith.mulf %1990, %1986 : vector<1x128xf32>
    %1992 = arith.addf %1976, %1991 : vector<1x128xf32>
    %1993 = vector.broadcast %42 : f32 to vector<1x128xf32>
    %1994 = arith.mulf %1993, %1986 : vector<1x128xf32>
    %1995 = arith.addf %1979, %1994 : vector<1x128xf32>
    %1996 = vector.broadcast %43 : f32 to vector<1x128xf32>
    %1997 = arith.mulf %1996, %1986 : vector<1x128xf32>
    %1998 = arith.addf %1982, %1997 : vector<1x128xf32>
    %1999 = vector.broadcast %44 : f32 to vector<1x128xf32>
    %2000 = arith.mulf %1999, %1986 : vector<1x128xf32>
    %2001 = arith.addf %1985, %2000 : vector<1x128xf32>
    %2002 = arith.mulf %1843, %1848 : vector<1x128xf32>
    %2003 = vector.broadcast %45 : f32 to vector<1x128xf32>
    %2004 = arith.mulf %2003, %2002 : vector<1x128xf32>
    %2005 = arith.addf %1989, %2004 : vector<1x128xf32>
    %2006 = vector.broadcast %46 : f32 to vector<1x128xf32>
    %2007 = arith.mulf %2006, %2002 : vector<1x128xf32>
    %2008 = arith.addf %1992, %2007 : vector<1x128xf32>
    %2009 = vector.broadcast %47 : f32 to vector<1x128xf32>
    %2010 = arith.mulf %2009, %2002 : vector<1x128xf32>
    %2011 = arith.addf %1995, %2010 : vector<1x128xf32>
    %2012 = vector.broadcast %48 : f32 to vector<1x128xf32>
    %2013 = arith.mulf %2012, %2002 : vector<1x128xf32>
    %2014 = arith.addf %1998, %2013 : vector<1x128xf32>
    %2015 = vector.broadcast %49 : f32 to vector<1x128xf32>
    %2016 = arith.mulf %2015, %2002 : vector<1x128xf32>
    %2017 = arith.addf %2001, %2016 : vector<1x128xf32>
    %2018 = arith.mulf %1843, %1850 : vector<1x128xf32>
    %2019 = vector.broadcast %50 : f32 to vector<1x128xf32>
    %2020 = arith.mulf %2019, %2018 : vector<1x128xf32>
    %2021 = arith.addf %2005, %2020 : vector<1x128xf32>
    %2022 = vector.broadcast %51 : f32 to vector<1x128xf32>
    %2023 = arith.mulf %2022, %2018 : vector<1x128xf32>
    %2024 = arith.addf %2008, %2023 : vector<1x128xf32>
    %2025 = vector.broadcast %52 : f32 to vector<1x128xf32>
    %2026 = arith.mulf %2025, %2018 : vector<1x128xf32>
    %2027 = arith.addf %2011, %2026 : vector<1x128xf32>
    %2028 = vector.broadcast %53 : f32 to vector<1x128xf32>
    %2029 = arith.mulf %2028, %2018 : vector<1x128xf32>
    %2030 = arith.addf %2014, %2029 : vector<1x128xf32>
    %2031 = vector.broadcast %54 : f32 to vector<1x128xf32>
    %2032 = arith.mulf %2031, %2018 : vector<1x128xf32>
    %2033 = arith.addf %2017, %2032 : vector<1x128xf32>
    %2034 = arith.mulf %1843, %1852 : vector<1x128xf32>
    %2035 = vector.broadcast %55 : f32 to vector<1x128xf32>
    %2036 = arith.mulf %2035, %2034 : vector<1x128xf32>
    %2037 = arith.addf %2021, %2036 : vector<1x128xf32>
    %2038 = vector.broadcast %56 : f32 to vector<1x128xf32>
    %2039 = arith.mulf %2038, %2034 : vector<1x128xf32>
    %2040 = arith.addf %2024, %2039 : vector<1x128xf32>
    %2041 = vector.broadcast %57 : f32 to vector<1x128xf32>
    %2042 = arith.mulf %2041, %2034 : vector<1x128xf32>
    %2043 = arith.addf %2027, %2042 : vector<1x128xf32>
    %2044 = vector.broadcast %58 : f32 to vector<1x128xf32>
    %2045 = arith.mulf %2044, %2034 : vector<1x128xf32>
    %2046 = arith.addf %2030, %2045 : vector<1x128xf32>
    %2047 = vector.broadcast %59 : f32 to vector<1x128xf32>
    %2048 = arith.mulf %2047, %2034 : vector<1x128xf32>
    %2049 = arith.addf %2033, %2048 : vector<1x128xf32>
    %2050 = arith.mulf %1846, %1848 : vector<1x128xf32>
    %2051 = vector.broadcast %60 : f32 to vector<1x128xf32>
    %2052 = arith.mulf %2051, %2050 : vector<1x128xf32>
    %2053 = arith.addf %2037, %2052 : vector<1x128xf32>
    %2054 = vector.broadcast %61 : f32 to vector<1x128xf32>
    %2055 = arith.mulf %2054, %2050 : vector<1x128xf32>
    %2056 = arith.addf %2040, %2055 : vector<1x128xf32>
    %2057 = vector.broadcast %62 : f32 to vector<1x128xf32>
    %2058 = arith.mulf %2057, %2050 : vector<1x128xf32>
    %2059 = arith.addf %2043, %2058 : vector<1x128xf32>
    %2060 = vector.broadcast %63 : f32 to vector<1x128xf32>
    %2061 = arith.mulf %2060, %2050 : vector<1x128xf32>
    %2062 = arith.addf %2046, %2061 : vector<1x128xf32>
    %2063 = vector.broadcast %64 : f32 to vector<1x128xf32>
    %2064 = arith.mulf %2063, %2050 : vector<1x128xf32>
    %2065 = arith.addf %2049, %2064 : vector<1x128xf32>
    %2066 = arith.mulf %1846, %1850 : vector<1x128xf32>
    %2067 = vector.broadcast %65 : f32 to vector<1x128xf32>
    %2068 = arith.mulf %2067, %2066 : vector<1x128xf32>
    %2069 = arith.addf %2053, %2068 : vector<1x128xf32>
    %2070 = vector.broadcast %66 : f32 to vector<1x128xf32>
    %2071 = arith.mulf %2070, %2066 : vector<1x128xf32>
    %2072 = arith.addf %2056, %2071 : vector<1x128xf32>
    %2073 = vector.broadcast %67 : f32 to vector<1x128xf32>
    %2074 = arith.mulf %2073, %2066 : vector<1x128xf32>
    %2075 = arith.addf %2059, %2074 : vector<1x128xf32>
    %2076 = vector.broadcast %68 : f32 to vector<1x128xf32>
    %2077 = arith.mulf %2076, %2066 : vector<1x128xf32>
    %2078 = arith.addf %2062, %2077 : vector<1x128xf32>
    %2079 = vector.broadcast %69 : f32 to vector<1x128xf32>
    %2080 = arith.mulf %2079, %2066 : vector<1x128xf32>
    %2081 = arith.addf %2065, %2080 : vector<1x128xf32>
    %2082 = arith.mulf %1846, %1852 : vector<1x128xf32>
    %2083 = vector.broadcast %70 : f32 to vector<1x128xf32>
    %2084 = arith.mulf %2083, %2082 : vector<1x128xf32>
    %2085 = arith.addf %2069, %2084 : vector<1x128xf32>
    %2086 = vector.broadcast %71 : f32 to vector<1x128xf32>
    %2087 = arith.mulf %2086, %2082 : vector<1x128xf32>
    %2088 = arith.addf %2072, %2087 : vector<1x128xf32>
    %2089 = vector.broadcast %72 : f32 to vector<1x128xf32>
    %2090 = arith.mulf %2089, %2082 : vector<1x128xf32>
    %2091 = arith.addf %2075, %2090 : vector<1x128xf32>
    %2092 = vector.broadcast %73 : f32 to vector<1x128xf32>
    %2093 = arith.mulf %2092, %2082 : vector<1x128xf32>
    %2094 = arith.addf %2078, %2093 : vector<1x128xf32>
    %2095 = vector.broadcast %74 : f32 to vector<1x128xf32>
    %2096 = arith.mulf %2095, %2082 : vector<1x128xf32>
    %2097 = arith.addf %2081, %2096 : vector<1x128xf32>
    %cst_145 = arith.constant 0.000000e+00 : f32
    %2098 = vector.broadcast %cst_145 : f32 to vector<1x128xf32>
    %2099 = vector.broadcast %75 : f32 to vector<1x128xf32>
    %2100 = arith.mulf %2099, %2085 : vector<1x128xf32>
    %2101 = arith.addf %2098, %2100 : vector<1x128xf32>
    %2102 = vector.broadcast %76 : f32 to vector<1x128xf32>
    %2103 = arith.mulf %2102, %2088 : vector<1x128xf32>
    %2104 = arith.addf %2101, %2103 : vector<1x128xf32>
    %2105 = vector.broadcast %77 : f32 to vector<1x128xf32>
    %2106 = arith.mulf %2105, %2091 : vector<1x128xf32>
    %2107 = arith.addf %2104, %2106 : vector<1x128xf32>
    %2108 = vector.broadcast %78 : f32 to vector<1x128xf32>
    %2109 = arith.mulf %2108, %2094 : vector<1x128xf32>
    %2110 = arith.addf %2107, %2109 : vector<1x128xf32>
    %2111 = vector.broadcast %79 : f32 to vector<1x128xf32>
    %2112 = arith.mulf %2111, %2097 : vector<1x128xf32>
    %2113 = arith.addf %2110, %2112 : vector<1x128xf32>
    %c0_146 = arith.constant 0 : index
    %c0_147 = arith.constant 0 : index
    %c0_148 = arith.constant 0 : index
    %2114 = vector.load %arg5[%c0_146, %c0_147, %c0_148] : memref<1x1x128xf32, #tpu.memory_space<vmem>>, vector<1x1x128xf32>
    %2115 = vector.shape_cast %2114 : vector<1x1x128xf32> to vector<1x128xf32>
    %2116 = vector.shape_cast %2113 : vector<1x128xf32> to vector<1x1x128xf32>
    tpu.vector_store %arg5[%c0_146, %c0_147, %c0_148], %2116 {strides = array<i32>} : memref<1x1x128xf32, #tpu.memory_space<vmem>>, vector<1x1x128xf32>,
    return
  }
  func.func @transform_0(%arg0: i32, %arg1: memref<5xf32, #tpu.memory_space<smem>>, %arg2: memref<75xf32, #tpu.memory_space<smem>>, %arg3: memref<5xf32, #tpu.memory_space<smem>>) -> (i32, i32, i32, i32) {
    %c0_i32 = arith.constant 0 : i32
    %c0_i32_0 = arith.constant 0 : i32
    %c0_i32_1 = arith.constant 0 : i32
    %c0_i32_2 = arith.constant 0 : i32
    return %c0_i32, %c0_i32_0, %arg0, %c0_i32_1 : i32, i32, i32, i32
  }
  func.func @transform_1(%arg0: i32, %arg1: memref<5xf32, #tpu.memory_space<smem>>, %arg2: memref<75xf32, #tpu.memory_space<smem>>, %arg3: memref<5xf32, #tpu.memory_space<smem>>) -> (i32, i32, i32) {
    %c0_i32 = arith.constant 0 : i32
    %c0_i32_0 = arith.constant 0 : i32
    %c0_i32_1 = arith.constant 0 : i32
    return %c0_i32, %arg0, %c0_i32_0 : i32, i32, i32
  }
}

</mosaic_0001>

<bundles_post_ra>
// kernel: tpu_custom_call.1
= control target key start
LH: loop header
LB: loop body
LE: loop exit
PB: predicated region body
PF: predicated region fallthrough
CT: control target
= control target key end

     0   :  { %s3235_s0 = inlined_call_operand.hbm [shape: f32[5], index: 0, kind: input, shape index: {}]   ;;  %s3236_s3 = inlined_call_operand.hbm [shape: f32[8,3,1,128], index: 3, kind: input, shape index: {}]   ;;  %s3237_s4 = inlined_call_operand.hbm [shape: f32[1,1,128], index: 4, kind: output, shape index: {}]   ;;  %s3238_s1 = inlined_call_operand.vmem [shape: f32[75], index: 1, kind: input, shape index: {}]   ;;  %s3239_s2 = inlined_call_operand.vmem [shape: f32[5], index: 2, kind: input, shape index: {}]  }
   0x1   :  { %3314 = sst [smem:[#allocation90_spill]] %s3237_s4  ;;  %s1690_s17 = scalar_lea.hbm %s3235_s0, 16 }
   0x2   :  { %p1691_p0 = scmp.ne.s32.totalorder %s3235_s0, %s1690_s17  ;;  %p1694_p1 = scmp.lt.u32.totalorder %s1690_s17, %s3235_s0 }
   0x4   :  { %p1696_p2 = pnand %p1694_p1, %p1691_p0 }
   0x6   :  { %1699 = shalt.err (!%p1696_p2)  }
   0x7   :  { %s1774_s22 = smov [#allocation3]   ;;  %s11_s27 = sshll.u32 %s3238_s1, 4  ;;  %s12_s27 = int_to_ptr.vmem [resolvable:$true] %s11_s27 }
   0x8   :  { %10 = dma.hbm_to_smem %s3235_s0, 16, %s1774_s22, [#allocation2] }
   0x9   :  { %s15_s30 = sshll.u32 %s3239_s2, 4  ;;  %s1700_s5 = scalar_lea.vmem %s12_s27, 16  ;;  %s16_s30 = int_to_ptr.vmem [resolvable:$true] %s15_s30 }
   0xa   :  { %p1701_p3 = scmp.ne.s32.totalorder %s12_s27, %s1700_s5  ;;  %p1705_p4 = scmp.lt.s32.totalorder %s12_s27, %s12_s27 }
   0xb   :  { %p1706_p5 = scmp.lt.s32.totalorder %s1700_s5, %s1700_s5 }
   0xd   :  { %p1707_p6 = por %p1706_p5, %p1705_p4 }
   0xf   :  { %p1708_p7 = pnand %p1707_p6, %p1701_p3 }
  0x11   :  { %1711 = shalt.err (!%p1708_p7)  }
  0x12   :  { %s1775_s6 = smov [#allocation4]   ;;  %s1712_s0 = scalar_lea.vmem %s16_s30, 16 }
  0x13   :  { %14 = dma.vmem_to_smem %s12_s27, 16, %s1775_s6, [#allocation2] }
  0x14   :  { %p1713_p8 = scmp.ne.s32.totalorder %s16_s30, %s1712_s0  ;;  %p1717_p9 = scmp.lt.s32.totalorder %s16_s30, %s16_s30 }
  0x15   :  { %p1718_p10 = scmp.lt.s32.totalorder %s1712_s0, %s1712_s0 }
  0x17   :  { %p1719_p11 = por %p1718_p10, %p1717_p9 }
  0x19   :  { %p1720_p12 = pnand %p1719_p11, %p1713_p8 }
  0x1b   :  { %1723 = shalt.err (!%p1720_p12)  }
  0x1c   :  { %s1776_s1 = smov [#allocation5]  }
  0x1d   :  { %18 = dma.vmem_to_smem %s16_s30, 16, %s1776_s1, [#allocation2] }
  0x1e   :  { %1768 = dma.done.wait [#allocation2], 48 }
  0x1f   :  { %1769 = vsyncadd [#allocation2], 4294967248 }
  0x20   :  { %20 = sfence }
  0x21   :  { %21 = vsyncpa [#allocation7], 0 }
  0x22   :  { %22 = vsyncpa [#allocation8], 0  ;;  %s1777_s2 = smov [#allocation6]   ;;  %s1724_s10 = scalar_lea.hbm %s3236_s3, 384 }
  0x23   :  { %s28_s7 = sshll.u32 %s1777_s2, 4  ;;  %p1725_p13 = scmp.ne.s32.totalorder %s3236_s3, %s1724_s10  ;;  %s29_s7 = int_to_ptr.vmem [resolvable:$true] %s28_s7 }
  0x24   :  { %p1728_p0 = scmp.lt.u32.totalorder %s1724_s10, %s3236_s3 }
  0x26   :  { %p1730_p1 = pnand %p1728_p0, %p1725_p13 }
  0x28   :  { %1733 = shalt.err (!%p1730_p1)
}
  0x29   :  { %s1734_s15 = scalar_lea.vmem %s29_s7, 384  ;;  %p1739_p3 = scmp.lt.s32.totalorder %s29_s7, %s29_s7 }
  0x2a   :  { %p1735_p2 = scmp.ne.s32.totalorder %s29_s7, %s1734_s15  ;;  %p1740_p4 = scmp.lt.s32.totalorder %s1734_s15, %s1734_s15 }
  0x2c   :  { %p1741_p5 = por %p1740_p4, %p1739_p3 }
  0x2e   :  { %p1742_p6 = pnand %p1741_p5, %p1735_p2 }
  0x30   :  { %1745 = shalt.err (!%p1742_p6)
}
  0x31   :  { %s1778_s16 = smov 16   ;;  %s1779_s17 = smov 1  }
  0x32   :  { %34 = dma.hbm_to_vmem [thread:$0]  %s3236_s3, 384, %s29_s7, [#allocation7], %s1778_s16, %s1778_s16, %s1779_s17  }
  0x33   :  { %1770 = dma.done.wait [#allocation7], 384  }
  0x34   :  { %1771 = vsyncadd [#allocation7], 4294966912  ;;  %s1836_s20 = sld [smem:[#allocation4]]  ;;  %s1838_s21 = sld [smem:[#allocation4 + $0x1]]  ;;  %v2179_v63 = vld [vmem:[#allocation6] sm:$0x1] }
  0x35   :  { %s1840_s22 = sld [smem:[#allocation4 + $0x2]]  ;;  %s1842_s23 = sld [smem:[#allocation4 + $0x3]] }
  0x36   :  { %s1844_s24 = sld [smem:[#allocation4 + $0x4]]  ;;  %s1846_s25 = sld [smem:[#allocation4 + $0x5]] }
  0x37   :  { %s1848_s26 = sld [smem:[#allocation4 + $0x6]]  ;;  %s1850_s27 = sld [smem:[#allocation4 + $0x7]] }
  0x38   :  { %s1852_s28 = sld [smem:[#allocation4 + $0x8]]  ;;  %s1854_s3 = sld [smem:[#allocation4 + $0x9]] }
  0x39   :  { %s1856_s29 = sld [smem:[#allocation4 + $0xa]]  ;;  %s1858_s30 = sld [smem:[#allocation4 + $0xb]] }
  0x3a   :  { %s1860_s5 = sld [smem:[#allocation4 + $0xc]]  ;;  %s1862_s6 = sld [smem:[#allocation4 + $0xd]]  ;;  %v1943_v0 = vstv %s1836_s20  ;;  %v1946_v1 = vstv %s1838_s21 }
  0x3b   :  { %s1864_s0 = sld [smem:[#allocation4 + $0xe]]  ;;  %s1866_s1 = sld [smem:[#allocation4 + $0xf]]  ;;  %3339 = vst [vmem:[#allocation37_spill] sm:$0xff] %v1943_v0  ;;  %3340 = vst [vmem:[#allocation38_spill] sm:$0xff] %v1946_v1  ;;  %v1949_v2 = vstv %s1840_s22  ;;  %v1956_v3 = vstv %s1842_s23 }
  0x3c   :  { %s1868_s2 = sld [smem:[#allocation4 + $0x10]]  ;;  %s1870_s7 = sld [smem:[#allocation4 + $0x11]]  ;;  %3341 = vst [vmem:[#allocation39_spill] sm:$0xff] %v1949_v2  ;;  %3342 = vst [vmem:[#allocation40_spill] sm:$0xff] %v1956_v3  ;;  %v1959_v4 = vstv %s1844_s24  ;;  %v1962_v5 = vstv %s1846_s25 }
  0x3d   :  { %s1872_s8 = sld [smem:[#allocation4 + $0x12]]  ;;  %s1874_s9 = sld [smem:[#allocation4 + $0x13]]  ;;  %3343 = vst [vmem:[#allocation41_spill] sm:$0xff] %v1959_v4  ;;  %3344 = vst [vmem:[#allocation42_spill] sm:$0xff] %v1962_v5  ;;  %v1965_v6 = vstv %s1848_s26  ;;  %v1972_v7 = vstv %s1850_s27 }
  0x3e   :  { %s1876_s10 = sld [smem:[#allocation4 + $0x14]]  ;;  %s1878_s11 = sld [smem:[#allocation4 + $0x15]]  ;;  %3345 = vst [vmem:[#allocation43_spill] sm:$0xff] %v1965_v6  ;;  %3347 = vst [vmem:[#allocation45_spill] sm:$0xff] %v1972_v7  ;;  %v1975_v8 = vstv %s1852_s28  ;;  %v1978_v9 = vstv %s1854_s3 }
  0x3f   :  { %s1880_s12 = sld [smem:[#allocation4 + $0x16]]  ;;  %s1882_s13 = sld [smem:[#allocation4 + $0x17]]  ;;  %3348 = vst [vmem:[#allocation46_spill] sm:$0xff] %v1975_v8  ;;  %3349 = vst [vmem:[#allocation47_spill] sm:$0xff] %v1978_v9  ;;  %v1981_v10 = vstv %s1856_s29  ;;  %v1988_v11 = vstv %s1858_s30 }
  0x40   :  { %s1884_s14 = sld [smem:[#allocation4 + $0x18]]  ;;  %s1886_s15 = sld [smem:[#allocation4 + $0x19]]  ;;  %3350 = vst [vmem:[#allocation48_spill] sm:$0xff] %v1981_v10  ;;  %3355 = vst [vmem:[#allocation49_spill] sm:$0xff] %v1988_v11  ;;  %v1991_v12 = vstv %s1860_s5  ;;  %v1994_v13 = vstv %s1862_s6 }
  0x41   :  { %s1888_s16 = sld [smem:[#allocation4 + $0x1a]]  ;;  %s1890_s17 = sld [smem:[#allocation4 + $0x1b]]  ;;  %v1997_v14 = vstv %s1864_s0  ;;  %v2004_v15 = vstv %s1866_s1 }
  0x42   :  { %s1892_s18 = sld [smem:[#allocation4 + $0x1c]]  ;;  %s1894_s19 = sld [smem:[#allocation4 + $0x1d]]  ;;  %v2007_v16 = vstv %s1868_s2  ;;  %v2010_v17 = vstv %s1870_s7 }
  0x43   :  { %s1896_s4 = sld [smem:[#allocation4 + $0x1e]]  ;;  %s1967_s20 = sld [smem:[#allocation4 + $0x37]]  ;;  %v2013_v18 = vstv %s1872_s8  ;;  %v2020_v19 = vstv %s1874_s9 }
  0x44   :  { %3315 = sst [smem:[#allocation13_spill]] %s1876_s10  ;;  %s1898_s10 = sld [smem:[#allocation4 + $0x1f]] }
  0x45   :  { %3316 = sst [smem:[#allocation14_spill]] %s1878_s11  ;;  %s1900_s11 = sld [smem:[#allocation4 + $0x20]] }
  0x46   :  { %3317 = sst [smem:[#allocation15_spill]] %s1880_s12  ;;  %s1902_s12 = sld [smem:[#allocation4 + $0x21]] }
  0x47   :  { %3318 = sst [smem:[#allocation16_spill]] %s1882_s13  ;;  %s1904_s13 = sld [smem:[#allocation4 + $0x22]]  ;;  %v2052_v27 = vstv %s1890_s17 }
  0x48   :  { %3319 = sst [smem:[#allocation17_spill]] %s1884_s14  ;;  %s1906_s14 = sld [smem:[#allocation4 + $0x23]] }
  0x49   :  { %3320 = sst [smem:[#allocation18_spill]] %s1886_s15  ;;  %s1908_s15 = sld [smem:[#allocation4 + $0x24]]  ;;  %v2061_v30 = vstv %s1896_s4  ;;  %v2156_v55 = vstv %s1967_s20 }
  0x4a   :  { %3321 = sst [smem:[#allocation19_spill]] %s1888_s16  ;;  %s1910_s16 = sld [smem:[#allocation4 + $0x25]]  ;;  %3410 = vst [vmem:[#allocation69_spill] sm:$0xff] %v2156_v55 }
  0x4b   :  { %3322 = sst [smem:[#allocation20_spill]] %s1892_s18  ;;  %s1912_s18 = sld [smem:[#allocation4 + $0x26]] }
  0x4c   :  { %3323 = sst [smem:[#allocation21_spill]] %s1894_s19  ;;  %s1914_s19 = sld [smem:[#allocation4 + $0x27]] }
  0x4d   :  { %3324 = sst [smem:[#allocation22_spill]] %s1898_s10  ;;  %s1916_s10 = sld [smem:[#allocation4 + $0x28]] }
  0x4e   :  { %3325 = sst [smem:[#allocation23_spill]] %s1900_s11  ;;  %s1918_s11 = sld [smem:[#allocation4 + $0x29]] }
  0x4f   :  { %3326 = sst [smem:[#allocation24_spill]] %s1902_s12  ;;  %s1920_s12 = sld [smem:[#allocation4 + $0x2a]] }
  0x50   :  { %3327 = sst [smem:[#allocation25_spill]] %s1904_s13  ;;  %s1922_s13 = sld [smem:[#allocation4 + $0x2b]] }
  0x51   :  { %3328 = sst [smem:[#allocation26_spill]] %s1906_s14  ;;  %s1932_s14 = sld [smem:[#allocation4 + $0x30]] }
  0x52   :  { %3329 = sst [smem:[#allocation27_spill]] %s1908_s15  ;;  %s1924_s15 = sld [smem:[#allocation4 + $0x2c]] }
  0x53   :  { %3330 = sst [smem:[#allocation28_spill]] %s1910_s16  ;;  %s1926_s16 = sld [smem:[#allocation4 + $0x2d]]  ;;  %v2103_v40 = vstv %s1916_s10 }
  0x54   :  { %3331 = sst [smem:[#allocation29_spill]] %s1912_s18  ;;  %s1928_s18 = sld [smem:[#allocation4 + $0x2e]]  ;;  %3387 = vst [vmem:[#allocation54_spill] sm:$0xff] %v2103_v40 }
  0x55   :  { %3332 = sst [smem:[#allocation30_spill]] %s1914_s19  ;;  %s1930_s19 = sld [smem:[#allocation4 + $0x2f]] }
  0x56   :  { %3333 = sst [smem:[#allocation31_spill]] %s1918_s11  ;;  %s1934_s11 = sld [smem:[#allocation4 + $0x31]] }
  0x57   :  { %3334 = sst [smem:[#allocation32_spill]] %s1920_s12  ;;  %s1936_s12 = sld [smem:[#allocation4 + $0x32]] }
  0x58   :  { %3335 = sst [smem:[#allocation33_spill]] %s1922_s13  ;;  %s1938_s13 = sld [smem:[#allocation4 + $0x33]] }
  0x59   :  { %3336 = sst [smem:[#allocation34_spill]] %s1924_s15  ;;  %s1940_s15 = sld [smem:[#allocation4 + $0x34]]  ;;  %v2118_v45 = vstv %s1926_s16 }
  0x5a   :  { %3337 = sst [smem:[#allocation35_spill]] %s1932_s14  ;;  %s1951_s14 = sld [smem:[#allocation4 + $0x35]]  ;;  %3392 = vst [vmem:[#allocation59_spill] sm:$0xff] %v2118_v45  ;;  %v2121_v46 = vstv %s1928_s18 }
  0x5b   :  { %s1969_s21 = sld [smem:[#allocation4 + $0x38]]  ;;  %s3351_s22 = sld [smem:[#allocation13_spill]]  ;;  %3394 = vst [vmem:[#allocation60_spill] sm:$0xff] %v2121_v46  ;;  %v2128_v47 = vstv %s1930_s19 }
  0x5c   :  { %3338 = sst [smem:[#allocation36_spill]] %s1934_s11  ;;  %s1953_s11 = sld [smem:[#allocation4 + $0x36]]  ;;  %3396 = vst [vmem:[#allocation61_spill] sm:$0xff] %v2128_v47 }
  0x5d   :  { %s1983_s23 = sld [smem:[#allocation4 + $0x39]]  ;;  %s3353_s24 = sld [smem:[#allocation14_spill]]  ;;  %v2137_v50 = vstv %s1936_s12 }
  0x5e   :  { %s1985_s25 = sld [smem:[#allocation4 + $0x3a]]  ;;  %s3354_s26 = sld [smem:[#allocation15_spill]]  ;;  %3402 = vst [vmem:[#allocation64_spill] sm:$0xff] %v2137_v50  ;;  %v2144_v51 = vstv %s1938_s13 }
  0x5f   :  { %s3356_s27 = sld [smem:[#allocation16_spill]]  ;;  %s3357_s28 = sld [smem:[#allocation17_spill]]  ;;  %3404 = vst [vmem:[#allocation65_spill] sm:$0xff] %v2144_v51  ;;  %v2147_v52 = vstv %s1940_s15 }
  0x60   :  { %s1999_s3 = sld [smem:[#allocation4 + $0x3b]]  ;;  %s3358_s29 = sld [smem:[#allocation18_spill]]  ;;  %3405 = vst [vmem:[#allocation66_spill] sm:$0xff] %v2147_v52  ;;  %v2150_v53 = vstv %s1951_s14 }
  0x61   :  { %3346 = sst [smem:[#allocation44_spill]] %s1969_s21  ;;  %s2001_s21 = sld [smem:[#allocation4 + $0x3c]]  ;;  %v2023_v20 = vstv %s3351_s22  ;;  %3407 = vst [vmem:[#allocation67_spill] sm:$0xff] %v2150_v53 }
  0x62   :  { %s3361_s30 = sld [smem:[#allocation20_spill]]  ;;  %s2015_s5 = sld [smem:[#allocation4 + $0x3d]]  ;;  %v2153_v54 = vstv %s1953_s11 }
  0x63   :  { %3352 = sst [smem:[#allocation13_spill]] %s1983_s23  ;;  %s3360_s23 = sld [smem:[#allocation19_spill]]  ;;  %v2026_v21 = vstv %s3353_s24  ;;  %3409 = vst [vmem:[#allocation68_spill] sm:$0xff] %v2153_v54 }
  0x64   :  { %s3363_s6 = sld [smem:[#allocation21_spill]]  ;;  %s2017_s0 = sld [smem:[#allocation4 + $0x3e]]  ;;  %v2029_v22 = vstv %s3354_s26  ;;  %v2165_v58 = vstv %s1985_s25 }
  0x65   :  { %s3365_s1 = sld [smem:[#allocation22_spill]]  ;;  %s3366_s2 = sld [smem:[#allocation23_spill]]  ;;  %v2036_v23 = vstv %s3356_s27  ;;  %v2039_v24 = vstv %s3357_s28  ;;  %3413 = vst [vmem:[#allocation72_spill] sm:$0xff] %v2165_v58 }
  0x66   :  { %s2031_s7 = sld [smem:[#allocation4 + $0x3f]]  ;;  %s3368_s8 = sld [smem:[#allocation24_spill]]  ;;  %v2042_v25 = vstv %s3358_s29  ;;  %v2168_v59 = vstv %s1999_s3 }
  0x67   :  { %3359 = sst [smem:[#allocation14_spill]] %s2001_s21  ;;  %s2033_s21 = sld [smem:[#allocation4 + $0x40]]  ;;  %3414 = vst [vmem:[#allocation73_spill] sm:$0xff] %v2168_v59 }
  0x68   :  { %3362 = sst [smem:[#allocation15_spill]] %s2015_s5  ;;  %s3369_s5 = sld [smem:[#allocation25_spill]]  ;;  %v2055_v28 = vstv %s3361_s30 }
  0x69   :  { %s3370_s9 = sld [smem:[#allocation26_spill]]  ;;  %v2045_v26 = vstv %s3360_s23  ;;  %s3371_s22 = sld [smem:[#allocation27_spill]] }
  0x6a   :  { %3364 = sst [smem:[#allocation16_spill]] %s2017_s0  ;;  %s2047_s24 = sld [smem:[#allocation4 + $0x41]]  ;;  %v2058_v29 = vstv %s3363_s6 }
  0x6b   :  { %s3373_s26 = sld [smem:[#allocation28_spill]]  ;;  %s2049_s0 = sld [smem:[#allocation4 + $0x42]]  ;;  %v2068_v31 = vstv %s3365_s1  ;;  %v2071_v32 = vstv %s3366_s2 }
  0x6c   :  { %3367 = sst [smem:[#allocation17_spill]] %s2031_s7  ;;  %s3375_s7 = sld [smem:[#allocation29_spill]]  ;;  %v2074_v33 = vstv %s3368_s8 }
  0x6d   :  { %s3376_s27 = sld [smem:[#allocation30_spill]]  ;;  %s2063_s28 = sld [smem:[#allocation4 + $0x43]]  ;;  %v2187_v58 = vstv %s2033_s21 }
  0x6e   :  { %s3377_s23 = sld [smem:[#allocation31_spill]]  ;;  %s2065_s29 = sld [smem:[#allocation4 + $0x44]]  ;;  %v2077_v34 = vstv %s3369_s5  ;;  %3419 = vst [vmem:[#allocation78_spill] sm:$0xff] %v2187_v58 }
  0x6f   :  { %s3380_s17 = sld [smem:[#allocation34_spill]]  ;;  %s2079_s4 = sld [smem:[#allocation4 + $0x45]]  ;;  %v2084_v35 = vstv %s3370_s9  ;;  %v2087_v36 = vstv %s3371_s22 }
  0x70   :  { %3372 = sst [smem:[#allocation18_spill]] %s2047_s24  ;;  %s3378_s24 = sld [smem:[#allocation32_spill]]  ;;  %3381 = vst [vmem:[#allocation50_spill] sm:$0xff] %v2087_v36 }
  0x71   :  { %3374 = sst [smem:[#allocation19_spill]] %s2049_s0  ;;  %s3379_s0 = sld [smem:[#allocation33_spill]]  ;;  %v2090_v37 = vstv %s3373_s26 }
  0x72   :  { %s2081_s30 = sld [smem:[#allocation4 + $0x46]]  ;;  %s3382_s6 = sld [smem:[#allocation35_spill]]  ;;  %3383 = vst [vmem:[#allocation51_spill] sm:$0xff] %v2090_v37  ;;  %v2093_v38 = vstv %s3375_s7 }
  0x73   :  { %s3384_s1 = sld [smem:[#allocation36_spill]]  ;;  %3385 = vst [vmem:[#allocation52_spill] sm:$0xff] %v2093_v38  ;;  %s2095_s2 = sld [smem:[#allocation4 + $0x47]]  ;;  %v2100_v39 = vstv %s3376_s27 }
  0x74   :  { %s2097_s5 = sld [smem:[#allocation4 + $0x48]]  ;;  %3386 = vst [vmem:[#allocation53_spill] sm:$0xff] %v2100_v39  ;;  %v2106_v41 = vstv %s3377_s23  ;;  %s3393_s7 = sld [smem:[#allocation44_spill]]  ;;  %v2201_v54 = vstv %s2065_s29 }
  0x75   :  { %3388 = vst [vmem:[#allocation55_spill] sm:$0xff] %v2106_v41  ;;  %v2115_v44 = vstv %s3380_s17  ;;  %s3395_s8 = sld [smem:[#allocation13_spill]]  ;;  %s2123_s10 = sld [smem:[#allocation3]]  ;;  %3423 = vst [vmem:[#allocation82_spill] sm:$0xff] %v2201_v54 }
  0x76   :  { %v2109_v42 = vstv %s3378_s24  ;;  %3391 = vst [vmem:[#allocation58_spill] sm:$0xff] %v2115_v44  ;;  %s2125_s9 = sld [smem:[#allocation3 + $0x1]]  ;;  %s3397_s22 = sld [smem:[#allocation14_spill]] }
  0x77   :  { %3389 = vst [vmem:[#allocation56_spill] sm:$0xff] %v2109_v42  ;;  %v2112_v43 = vstv %s3379_s0  ;;  %s3399_s0 = sld [smem:[#allocation15_spill]]  ;;  %s3401_s16 = sld [smem:[#allocation16_spill]] }
  0x78   :  { %3390 = vst [vmem:[#allocation57_spill] sm:$0xff] %v2112_v43  ;;  %v2131_v48 = vstv %s3382_s6  ;;  %s2139_s18 = sld [smem:[#allocation3 + $0x2]]  ;;  %s2141_s24 = sld [smem:[#allocation3 + $0x3]]  ;;  %v2207_v53 = vstv %s2081_s30 }
  0x79   :  { %3398 = vst [vmem:[#allocation62_spill] sm:$0xff] %v2131_v48  ;;  %v2134_v49 = vstv %s3384_s1  ;;  %s3403_s26 = sld [smem:[#allocation17_spill]]  ;;  %s3406_s19 = sld [smem:[#allocation18_spill]]  ;;  %3425 = vst [vmem:[#allocation84_spill] sm:$0xff] %v2207_v53  ;;  %v2212_v50 = vstv %s2095_s2 }
  0x7a   :  { %3400 = vst [vmem:[#allocation63_spill] sm:$0xff] %v2134_v49  ;;  %s3408_s27 = sld [smem:[#allocation19_spill]]  ;;  %s1682_s23 = sld [smem:[#allocation3 + $0x4]]  ;;  %v2159_v56 = vstv %s3393_s7  ;;  %3426 = vst [vmem:[#allocation85_spill] sm:$0xff] %v2212_v50 }
  0x7b   :  { %3411 = vst [vmem:[#allocation70_spill] sm:$0xff] %v2159_v56  ;;  %v2162_v57 = vstv %s3395_s8  ;;  %v119_v52 = vstv %s2123_s10  ;;  %s2292_s11 = sld [smem:[#allocation4 + $0x49]]  ;;  %s2294_s12 = sld [smem:[#allocation4 + $0x4a]] }
  0x7c   :  { %3412 = vst [vmem:[#allocation71_spill] sm:$0xff] %v2162_v57  ;;  %v2171_v60 = vstv %s3397_s22  ;;  %v2181_v57 = vld [vmem:[#allocation6 + $0x1] sm:$0x1]  ;;  %v121_v51 = vstv %s2125_s9  ;;  %s3062_s13 = sld [smem:[#allocation5]]  ;;  %s3064_s14 = sld [smem:[#allocation5 + $0x1]] }
  0x7d   :  { %3415 = vst [vmem:[#allocation74_spill] sm:$0xff] %v2171_v60  ;;  %v2174_v61 = vstv %s3399_s0  ;;  %v2177_v62 = vstv %s3401_s16  ;;  %v2195_v60 = vld [vmem:[#allocation6 + $0x2] sm:$0x1]  ;;  %v149_v49 = vmul.f32 %v2181_v57, %v119_v52  ;;  %v197_v53 = vmul.f32 %v2181_v57, %v121_v51  ;;  %s3182_s15 = sld [smem:[#allocation5 + $0x2]]  ;;  %s3195_s20 = sld [smem:[#allocation5 + $0x3]] }
  0x7e   :  { %3416 = vst [vmem:[#allocation75_spill] sm:$0xff] %v2174_v61  ;;  %3417 = vst [vmem:[#allocation76_spill] sm:$0xff] %v2177_v62  ;;  %v2198_v61 = vstv %s2063_s28  ;;  %v2204_v62 = vstv %s2079_s4  ;;  %v123_v58 = vstv %s2139_s18  ;;  %v165_v54 = vmul.f32 %v2195_v60, %v119_v52  ;;  %s3202_s21 = sld [smem:[#allocation5 + $0x4]]  ;;  %s1780_s25 = smov [#allocation9]  }
  0x7f   :  { %v2184_v56 = vstv %s3403_s26  ;;  %v2190_v59 = vstv %s3406_s19  ;;  %3422 = vst [vmem:[#allocation81_spill] sm:$0xff] %v2198_v61  ;;  %3424 = vst [vmem:[#allocation83_spill] sm:$0xff] %v2204_v62  ;;  %v181_v62 = vmul.f32 %v2179_v63, %v121_v51  ;;  %v151_v45 = vmul.f32 %v1962_v5, %v149_v49  ;;  %s1592_s3 = sshll.u32 %s1780_s25, 4  ;;  %s1593_s3 = int_to_ptr.vmem [resolvable:$true] %s1592_s3 }
  0x80   :  { %3418 = vst [vmem:[#allocation77_spill] sm:$0xff] %v2184_v56  ;;  %3420 = vst [vmem:[#allocation79_spill] sm:$0xff] %v2190_v59  ;;  %v2193_v55 = vstv %s3408_s27  ;;  %v2215_v56 = vstv %s2097_s5  ;;  %v2219_v59 = vstv %s2141_s24  ;;  %v2223_v61 = vstv %s1682_s23  ;;  %s1746_s28 = scalar_lea.vmem %s1593_s3, 16  ;;  %s1750_s29 = scalar_lea.vmem %s1593_s3, 32 }
  0x81   :  { %3421 = vst [vmem:[#allocation80_spill] sm:$0xff] %v2193_v55  ;;  %3427 = vst [vmem:[#allocation86_spill] sm:$0xff] %v2215_v56  ;;  %v133_v55 = vmul.f32 %v2179_v63, %v119_v52  ;;  %v157_v52 = vmul.f32 %v1972_v7, %v149_v49  ;;  %v163_v44 = vmul.f32 %v1978_v9, %v149_v49  ;;  %p1747_p7 = scmp.ne.s32.totalorder %s1593_s3, %s1746_s28  ;;  %p1751_p8 = scmp.lt.s32.totalorder %s1593_s3, %s1593_s3 }
  0x82   :  { %3428 = vst [vmem:[#allocation87_spill] sm:$0xff] %v2219_v59  ;;  %3429 = vst [vmem:[#allocation88_spill] sm:$0xff] %v2223_v61  ;;  %v154_v61 = vmul.f32 %v1965_v6, %v149_v49  ;;  %v160_v59 = vmul.f32 %v1975_v8, %v149_v49  ;;  %v176_v5 = vmul.f32 %v1994_v13, %v165_v54  ;;  %p1752_p9 = scmp.lt.s32.totalorder %s1750_s29, %s1746_s28 }
  0x83   :  { %v135_v48 = vmul.f32 %v1943_v0, %v133_v55  ;;  %v138_v50 = vmul.f32 %v1946_v1, %v133_v55  ;;  %v141_v56 = vmul.f32 %v1949_v2, %v133_v55  ;;  %v144_v47 = vmul.f32 %v1956_v3, %v133_v55 }
  0x84   :  { %v147_v46 = vmul.f32 %v1959_v4, %v133_v55  ;;  %v167_v0 = vmul.f32 %v1981_v10, %v165_v54  ;;  %v170_v1 = vmul.f32 %v1988_v11, %v165_v54  ;;  %v173_v3 = vmul.f32 %v1991_v12, %v165_v54  ;;  %p1753_p10 = por %p1752_p9, %p1751_p8 }
  0x85   :  { %v152_v43 = vadd.f32 %v151_v45, %v135_v48  ;;  %v155_v2 = vadd.f32 %v154_v61, %v138_v50  ;;  %v158_v42 = vadd.f32 %v157_v52, %v141_v56  ;;  %v161_v55 = vadd.f32 %v160_v59, %v144_v47 }
  0x86   :  { %v164_v4 = vadd.f32 %v163_v44, %v147_v46  ;;  %v179_v6 = vmul.f32 %v1997_v14, %v165_v54  ;;  %v183_v49 = vmul.f32 %v2004_v15, %v181_v62  ;;  %v186_v11 = vmul.f32 %v2007_v16, %v181_v62  ;;  %p1754_p11 = pnand %p1753_p10, %p1747_p7 }
  0x87   :  { %v168_v7 = vadd.f32 %v167_v0, %v152_v43  ;;  %v171_v41 = vadd.f32 %v170_v1, %v155_v2  ;;  %v174_v8 = vadd.f32 %v173_v3, %v158_v42  ;;  %v177_v9 = vadd.f32 %v176_v5, %v161_v55 }
  0x88   :  { %v180_v10 = vadd.f32 %v179_v6, %v164_v4  ;;  %v189_v45 = vmul.f32 %v2010_v17, %v181_v62  ;;  %v192_v50 = vmul.f32 %v2013_v18, %v181_v62  ;;  %v195_v44 = vmul.f32 %v2020_v19, %v181_v62 }
  0x89   :  { %v184_v48 = vadd.f32 %v183_v49, %v168_v7  ;;  %v199_v46 = vmul.f32 %v2023_v20, %v197_v53  ;;  %v187_v47 = vadd.f32 %v186_v11, %v171_v41  ;;  %v202_v0 = vmul.f32 %v2026_v21, %v197_v53 }
  0x8a   :  { %v190_v54 = vadd.f32 %v189_v45, %v174_v8  ;;  %v205_v1 = vmul.f32 %v2029_v22, %v197_v53  ;;  %v193_v2 = vadd.f32 %v192_v50, %v177_v9  ;;  %v196_v3 = vadd.f32 %v195_v44, %v180_v10 }
  0x8b   :  { %v200_v4 = vadd.f32 %v199_v46, %v184_v48  ;;  %v208_v5 = vmul.f32 %v2036_v23, %v197_v53  ;;  %v203_v6 = vadd.f32 %v202_v0, %v187_v47  ;;  %v211_v7 = vmul.f32 %v2039_v24, %v197_v53 }
  0x8c   :  { %v206_v42 = vadd.f32 %v205_v1, %v190_v54  ;;  %v213_v43 = vmul.f32 %v2195_v60, %v121_v51  ;;  %v229_v59 = vmul.f32 %v2179_v63, %v123_v58  ;;  %v245_v8 = vmul.f32 %v2181_v57, %v123_v58 }
  0x8d   :  { %v209_v56 = vadd.f32 %v208_v5, %v193_v2  ;;  %v261_v11 = vmul.f32 %v2195_v60, %v123_v58  ;;  %v212_v41 = vadd.f32 %v211_v7, %v196_v3 }
  0x8e   :  { %v215_v9 = vmul.f32 %v2042_v25, %v213_v43  ;;  %v218_v10 = vmul.f32 %v2045_v26, %v213_v43  ;;  %v221_v61 = vmul.f32 %v2052_v27, %v213_v43  ;;  %v224_v62 = vmul.f32 %v2055_v28, %v213_v43 }
  0x8f   :  { %v227_v53 = vmul.f32 %v2058_v29, %v213_v43  ;;  %v231_v51 = vmul.f32 %v2061_v30, %v229_v59  ;;  %v234_v52 = vmul.f32 %v2068_v31, %v229_v59  ;;  %v237_v58 = vmul.f32 %v2071_v32, %v229_v59 }
  0x90   :  { %v216_v55 = vadd.f32 %v215_v9, %v200_v4  ;;  %v219_v49 = vadd.f32 %v218_v10, %v203_v6  ;;  %v222_v45 = vadd.f32 %v221_v61, %v206_v42  ;;  %v225_v48 = vadd.f32 %v224_v62, %v209_v56  ;;  %v3431_v10 = vld [vmem:[#allocation56_spill] sm:$0xff] }
  0x91   :  { %v228_v50 = vadd.f32 %v227_v53, %v212_v41  ;;  %v240_v44 = vmul.f32 %v2074_v33, %v229_v59  ;;  %v243_v46 = vmul.f32 %v2077_v34, %v229_v59  ;;  %v247_v1 = vmul.f32 %v2084_v35, %v245_v8  ;;  %v3430_v41 = vld [vmem:[#allocation55_spill] sm:$0xff] }
  0x92   :  { %v232_v47 = vadd.f32 %v231_v51, %v216_v55  ;;  %v235_v54 = vadd.f32 %v234_v52, %v219_v49  ;;  %v238_v0 = vadd.f32 %v237_v58, %v222_v45  ;;  %v250_v5 = vmul.f32 %v2087_v36, %v245_v8  ;;  %v3432_v52 = vld [vmem:[#allocation57_spill] sm:$0xff]  ;;  %v3433_v58 = vld [vmem:[#allocation58_spill] sm:$0xff] }
  0x93   :  { %v241_v2 = vadd.f32 %v240_v44, %v225_v48  ;;  %v244_v3 = vadd.f32 %v243_v46, %v228_v50  ;;  %v253_v4 = vmul.f32 %v2090_v37, %v245_v8  ;;  %v256_v42 = vmul.f32 %v2093_v38, %v245_v8  ;;  %v3434_v50 = vld [vmem:[#allocation87_spill] sm:$0xff] }
  0x94   :  { %v248_v6 = vadd.f32 %v247_v1, %v232_v47  ;;  %v259_v7 = vmul.f32 %v2100_v39, %v245_v8  ;;  %v263_v43 = vmul.f32 %v2103_v40, %v261_v11  ;;  %v251_v56 = vadd.f32 %v250_v5, %v235_v54  ;;  %v3435_v54 = vld [vmem:[#allocation88_spill] sm:$0xff]  ;;  %v3447_v39 = vld [vmem:[#allocation70_spill] sm:$0xff] }
  0x95   :  { %v254_v59 = vadd.f32 %v253_v4, %v238_v0  ;;  %v266_v9 = vmul.f32 %v3430_v41, %v261_v11  ;;  %v269_v61 = vmul.f32 %v3431_v10, %v261_v11  ;;  %v257_v62 = vadd.f32 %v256_v42, %v241_v2  ;;  %v3436_v2 = vld [vmem:[#allocation59_spill] sm:$0xff]  ;;  %v3437_v5 = vld [vmem:[#allocation60_spill] sm:$0xff]  ;;  %v3439_v42 = vld [vmem:[#allocation62_spill] sm:$0xff] }
  0x96   :  { %v260_v53 = vadd.f32 %v259_v7, %v244_v3  ;;  %v264_v51 = vadd.f32 %v263_v43, %v248_v6  ;;  %v272_v55 = vmul.f32 %v3432_v52, %v261_v11  ;;  %v275_v48 = vmul.f32 %v3433_v58, %v261_v11  ;;  %v3438_v6 = vld [vmem:[#allocation61_spill] sm:$0xff]  ;;  %v3440_v43 = vld [vmem:[#allocation63_spill] sm:$0xff] }
  0x97   :  { %v267_v49 = vadd.f32 %v266_v9, %v251_v56  ;;  %v270_v45 = vadd.f32 %v269_v61, %v254_v59  ;;  %v277_v8 = vmul.f32 %v2179_v63, %v3434_v50  ;;  %v293_v46 = vmul.f32 %v2181_v57, %v3434_v50  ;;  %v3441_v59 = vld [vmem:[#allocation64_spill] sm:$0xff]  ;;  %v3442_v61 = vld [vmem:[#allocation65_spill] sm:$0xff] }
  0x98   :  { %v273_v44 = vadd.f32 %v272_v55, %v257_v62  ;;  %v309_v47 = vmul.f32 %v2195_v60, %v3434_v50  ;;  %v325_v0 = vmul.f32 %v2179_v63, %v3435_v54  ;;  %v276_v1 = vadd.f32 %v275_v48, %v260_v53  ;;  %v3443_v48 = vld [vmem:[#allocation66_spill] sm:$0xff]  ;;  %v3446_v10 = vld [vmem:[#allocation69_spill] sm:$0xff] }
  0x99   :  { %v279_v3 = vmul.f32 %v3436_v2, %v277_v8  ;;  %v282_v4 = vmul.f32 %v3437_v5, %v277_v8  ;;  %v285_v11 = vmul.f32 %v3438_v6, %v277_v8  ;;  %v288_v7 = vmul.f32 %v3439_v42, %v277_v8  ;;  %v3444_v6 = vld [vmem:[#allocation67_spill] sm:$0xff]  ;;  %v3445_v42 = vld [vmem:[#allocation68_spill] sm:$0xff] }
  0x9a   :  { %v291_v56 = vmul.f32 %v3440_v43, %v277_v8  ;;  %v295_v9 = vmul.f32 %v3441_v59, %v293_v46  ;;  %v298_v62 = vmul.f32 %v3442_v61, %v293_v46  ;;  %v301_v50 = vmul.f32 %v3443_v48, %v293_v46 }
  0x9b   :  { %v280_v63 = vadd.f32 %v279_v3, %v264_v51  ;;  %v283_v53 = vadd.f32 %v282_v4, %v267_v49  ;;  %v286_v55 = vadd.f32 %v285_v11, %v270_v45  ;;  %v289_v5 = vadd.f32 %v288_v7, %v273_v44  ;;  %v3448_v51 = vld [vmem:[#allocation71_spill] sm:$0xff]  ;;  %v3449_v3 = vld [vmem:[#allocation72_spill] sm:$0xff]  ;;  %v3450_v44 = vld [vmem:[#allocation73_spill] sm:$0xff] }
  0x9c   :  { %v292_v2 = vadd.f32 %v291_v56, %v276_v1  ;;  %v304_v58 = vmul.f32 %v3444_v6, %v293_v46  ;;  %v307_v52 = vmul.f32 %v3445_v42, %v293_v46  ;;  %v311_v61 = vmul.f32 %v3446_v10, %v309_v47  ;;  %v3451_v11 = vld [vmem:[#allocation74_spill] sm:$0xff]  ;;  %v3477_v10 = vld [vmem:[#allocation48_spill] sm:$0xff]  ;;  %v3478_v42 = vld [vmem:[#allocation49_spill] sm:$0xff] }
  0x9d   :  { %v296_v8 = vadd.f32 %v295_v9, %v280_v63  ;;  %v299_v43 = vadd.f32 %v298_v62, %v283_v53  ;;  %v302_v59 = vadd.f32 %v301_v50, %v286_v55  ;;  %v314_v38 = vmul.f32 %v3447_v39, %v309_v47  ;;  %v3452_v9 = vld [vmem:[#allocation75_spill] sm:$0xff]  ;;  %v3453_v63 = vld [vmem:[#allocation76_spill] sm:$0xff]  ;;  %v3454_v53 = vld [vmem:[#allocation77_spill] sm:$0xff] }
  0x9e   :  { %v305_v41 = vadd.f32 %v304_v58, %v289_v5  ;;  %v308_v40 = vadd.f32 %v307_v52, %v292_v2  ;;  %v317_v49 = vmul.f32 %v3448_v51, %v309_v47  ;;  %v320_v4 = vmul.f32 %v3449_v3, %v309_v47  ;;  %v3476_v51 = vld [vmem:[#allocation47_spill] sm:$0xff] }
  0x9f   :  { %v312_v45 = vadd.f32 %v311_v61, %v296_v8  ;;  %v323_v1 = vmul.f32 %v3450_v44, %v309_v47  ;;  %v327_v7 = vmul.f32 %v3451_v11, %v325_v0  ;;  %v315_v46 = vadd.f32 %v314_v38, %v299_v43  ;;  %v3455_v8 = vld [vmem:[#allocation78_spill] sm:$0xff] }
  0xa0   :  { %v318_v56 = vadd.f32 %v317_v49, %v302_v59  ;;  %v330_v62 = vmul.f32 %v3452_v9, %v325_v0  ;;  %v333_v58 = vmul.f32 %v3453_v63, %v325_v0  ;;  %v321_v52 = vadd.f32 %v320_v4, %v305_v41  ;;  %v3475_v9 = vld [vmem:[#allocation46_spill] sm:$0xff] }
  0xa1   :  { %v324_v2 = vadd.f32 %v323_v1, %v308_v40  ;;  %v328_v5 = vadd.f32 %v327_v7, %v312_v45  ;;  %v336_v55 = vmul.f32 %v3454_v53, %v325_v0  ;;  %v339_v3 = vmul.f32 %v3455_v8, %v325_v0  ;;  %v3458_v40 = vld [vmem:[#allocation79_spill] sm:$0xff]  ;;  %v3459_v45 = vld [vmem:[#allocation80_spill] sm:$0xff]  ;;  %v3460_v1 = vld [vmem:[#allocation81_spill] sm:$0xff] }
  0xa2   :  { %v331_v61 = vadd.f32 %v330_v62, %v315_v46  ;;  %v334_v50 = vadd.f32 %v333_v58, %v318_v56  ;;  %v341_v47 = vmul.f32 %v2181_v57, %v3435_v54  ;;  %v357_v38 = vmul.f32 %v2195_v60, %v3435_v54  ;;  %v3461_v46 = vld [vmem:[#allocation82_spill] sm:$0xff]  ;;  %v3462_v56 = vld [vmem:[#allocation83_spill] sm:$0xff]  ;;  %v3463_v57 = vld [vmem:[#allocation84_spill] sm:$0xff] }
  0xa3   :  { %v337_v11 = vadd.f32 %v336_v55, %v321_v52  ;;  %v2314_v43 = vstv %s2292_s11  ;;  %v2317_v59 = vstv %s2294_s12  ;;  %v340_v41 = vadd.f32 %v339_v3, %v324_v2  ;;  %v3464_v52 = vld [vmem:[#allocation85_spill] sm:$0xff]  ;;  %v3465_v53 = vld [vmem:[#allocation86_spill] sm:$0xff] }
  0xa4   :  { %3456 = vst [vmem:[#allocation87_spill] sm:$0xff] %v2314_v43  ;;  %3457 = vst [vmem:[#allocation88_spill] sm:$0xff] %v2317_v59  ;;  %v343_v49 = vmul.f32 %v3458_v40, %v341_v47  ;;  %v346_v4 = vmul.f32 %v3459_v45, %v341_v47  ;;  %v349_v7 = vmul.f32 %v3460_v1, %v341_v47  ;;  %v2329_v1 = vld [vmem:[#allocation6 + $0x3] sm:$0x1] }
  0xa5   :  { %v352_v0 = vmul.f32 %v3461_v46, %v341_v47  ;;  %v355_v62 = vmul.f32 %v3462_v56, %v341_v47  ;;  %v359_v58 = vmul.f32 %v3463_v57, %v357_v38  ;;  %v362_v55 = vmul.f32 %v3464_v52, %v357_v38  ;;  %v2331_v46 = vld [vmem:[#allocation6 + $0x4] sm:$0x1]  ;;  %v2333_v47 = vld [vmem:[#allocation6 + $0x5] sm:$0x1] }
  0xa6   :  { %v344_v60 = vadd.f32 %v343_v49, %v328_v5  ;;  %v347_v54 = vadd.f32 %v346_v4, %v331_v61  ;;  %v350_v8 = vadd.f32 %v349_v7, %v334_v50  ;;  %v365_v63 = vmul.f32 %v3465_v53, %v357_v38  ;;  %v3468_v7 = vld [vmem:[#allocation38_spill] sm:$0xff] }
  0xa7   :  { %v353_v3 = vadd.f32 %v352_v0, %v337_v11  ;;  %v356_v2 = vadd.f32 %v355_v62, %v340_v41  ;;  %v368_v40 = vmul.f32 %v2314_v43, %v357_v38  ;;  %v371_v45 = vmul.f32 %v2317_v59, %v357_v38  ;;  %v3469_v62 = vld [vmem:[#allocation39_spill] sm:$0xff]  ;;  %v3474_v43 = vld [vmem:[#allocation45_spill] sm:$0xff] }
  0xa8   :  { %v360_v57 = vadd.f32 %v359_v58, %v344_v60  ;;  %v363_v56 = vadd.f32 %v362_v55, %v347_v54  ;;  %v2335_v52 = vadd.f32 %v365_v63, %v350_v8  ;;  %v3470_v58 = vld [vmem:[#allocation40_spill] sm:$0xff]  ;;  %v3471_v60 = vld [vmem:[#allocation41_spill] sm:$0xff] }
  0xa9   :  { %v2337_v5 = vadd.f32 %v368_v40, %v353_v3  ;;  %v2339_v61 = vadd.f32 %v371_v45, %v356_v2  ;;  %v3467_v40 = vld [vmem:[#allocation37_spill] sm:$0xff]  ;;  %v3472_v3 = vld [vmem:[#allocation42_spill] sm:$0xff]  ;;  %v3473_v2 = vld [vmem:[#allocation43_spill] sm:$0xff] }
  0xaa   :  { %v379_v11 = vmul.f32 %v2329_v1, %v360_v57  ;;  %v390_v50 = vmul.f32 %v2331_v46, %v360_v57  ;;  %v401_v38 = vmul.f32 %v2333_v47, %v360_v57  ;;  %v412_v41 = vmul.f32 %v2329_v1, %v363_v56 }
  0xab   :  { %3466 = vst [vmem:[#allocation89_spill] sm:$0xff] %v2339_v61  ;;  %v423_v49 = vmul.f32 %v2331_v46, %v363_v56  ;;  %v434_v4 = vmul.f32 %v2333_v47, %v363_v56  ;;  %v2349_v63 = vmul.f32 %v2329_v1, %v2335_v52  ;;  %v2353_v8 = vmul.f32 %v2331_v46, %v2335_v52 }
  0xac   :  { %v380_v45 = vmul.f32 %v379_v11, %v3467_v40  ;;  %v382_v0 = vmul.f32 %v379_v11, %v3468_v7  ;;  %v384_v57 = vmul.f32 %v379_v11, %v3469_v62  ;;  %v386_v55 = vmul.f32 %v379_v11, %v3470_v58 }
  0xad   :  { %v388_v54 = vmul.f32 %v379_v11, %v3471_v60  ;;  %v391_v56 = vmul.f32 %v390_v50, %v3472_v3  ;;  %v393_v59 = vmul.f32 %v390_v50, %v3473_v2  ;;  %v395_v53 = vmul.f32 %v390_v50, %v3474_v43 }
  0xae   :  { %v397_v44 = vmul.f32 %v390_v50, %v3475_v9  ;;  %v399_v39 = vmul.f32 %v390_v50, %v3476_v51  ;;  %v402_v40 = vmul.f32 %v401_v38, %v3477_v10  ;;  %v404_v7 = vmul.f32 %v401_v38, %v3478_v42 }
  0xaf   :  { %v392_v6 = vadd.f32 %v391_v56, %v380_v45  ;;  %v394_v62 = vadd.f32 %v393_v59, %v382_v0  ;;  %v396_v48 = vadd.f32 %v395_v53, %v384_v57  ;;  %v406_v58 = vmul.f32 %v401_v38, %v1991_v12 }
  0xb0   :  { %v398_v11 = vadd.f32 %v397_v44, %v386_v55  ;;  %v400_v60 = vadd.f32 %v399_v39, %v388_v54  ;;  %v408_v3 = vmul.f32 %v401_v38, %v1994_v13  ;;  %v410_v2 = vmul.f32 %v401_v38, %v1997_v14 }
  0xb1   :  { %v403_v43 = vadd.f32 %v402_v40, %v392_v6  ;;  %v405_v61 = vadd.f32 %v404_v7, %v394_v62  ;;  %v407_v9 = vadd.f32 %v406_v58, %v396_v48  ;;  %v413_v50 = vmul.f32 %v412_v41, %v2004_v15 }
  0xb2   :  { %v409_v51 = vadd.f32 %v408_v3, %v398_v11  ;;  %v411_v10 = vadd.f32 %v410_v2, %v400_v60  ;;  %v415_v42 = vmul.f32 %v412_v41, %v2007_v16  ;;  %v417_v59 = vmul.f32 %v412_v41, %v2010_v17 }
  0xb3   :  { %v414_v53 = vadd.f32 %v413_v50, %v403_v43  ;;  %v419_v45 = vmul.f32 %v412_v41, %v2013_v18  ;;  %v421_v39 = vmul.f32 %v412_v41, %v2020_v19  ;;  %v424_v44 = vmul.f32 %v423_v49, %v2023_v20 }
  0xb4   :  { %v416_v0 = vadd.f32 %v415_v42, %v405_v61  ;;  %v418_v38 = vadd.f32 %v417_v59, %v407_v9  ;;  %v426_v6 = vmul.f32 %v423_v49, %v2026_v21  ;;  %v428_v48 = vmul.f32 %v423_v49, %v2029_v22 }
  0xb5   :  { %v420_v40 = vadd.f32 %v419_v45, %v409_v51  ;;  %v422_v7 = vadd.f32 %v421_v39, %v411_v10  ;;  %v425_v62 = vadd.f32 %v424_v44, %v414_v53  ;;  %v430_v57 = vmul.f32 %v423_v49, %v2036_v23 }
  0xb6   :  { %v427_v58 = vadd.f32 %v426_v6, %v416_v0  ;;  %v429_v55 = vadd.f32 %v428_v48, %v418_v38  ;;  %v432_v43 = vmul.f32 %v423_v49, %v2039_v24  ;;  %v435_v60 = vmul.f32 %v434_v4, %v2042_v25 }
  0xb7   :  { %v431_v41 = vadd.f32 %v430_v57, %v420_v40  ;;  %v437_v54 = vmul.f32 %v434_v4, %v2045_v26  ;;  %v439_v42 = vmul.f32 %v434_v4, %v2052_v27  ;;  %v441_v9 = vmul.f32 %v434_v4, %v2055_v28  ;;  %v3479_v40 = vld [vmem:[#allocation52_spill] sm:$0xff] }
  0xb8   :  { %v433_v61 = vadd.f32 %v432_v43, %v422_v7  ;;  %v436_v3 = vadd.f32 %v435_v60, %v425_v62  ;;  %v443_v10 = vmul.f32 %v434_v4, %v2058_v29  ;;  %v446_v51 = vmul.f32 %v2349_v63, %v2061_v30 }
  0xb9   :  { %v438_v56 = vadd.f32 %v437_v54, %v427_v58  ;;  %v440_v2 = vadd.f32 %v439_v42, %v429_v55  ;;  %v442_v11 = vadd.f32 %v441_v9, %v431_v41  ;;  %v448_v49 = vmul.f32 %v2349_v63, %v2068_v31  ;;  %v3480_v55 = vld [vmem:[#allocation53_spill] sm:$0xff] }
  0xba   :  { %v444_v50 = vadd.f32 %v443_v10, %v433_v61  ;;  %v447_v59 = vadd.f32 %v446_v51, %v436_v3  ;;  %v450_v53 = vmul.f32 %v2349_v63, %v2071_v32  ;;  %v452_v45 = vmul.f32 %v2349_v63, %v2074_v33  ;;  %v3481_v3 = vld [vmem:[#allocation89_spill] sm:$0xff]  ;;  %v3482_v51 = vld [vmem:[#allocation54_spill] sm:$0xff] }
  0xbb   :  { %v449_v39 = vadd.f32 %v448_v49, %v438_v56  ;;  %v454_v4 = vmul.f32 %v2349_v63, %v2077_v34  ;;  %v457_v44 = vmul.f32 %v2353_v8, %v2084_v35  ;;  %v459_v0 = vmul.f32 %v2353_v8, %v2087_v36  ;;  %v3483_v56 = vld [vmem:[#allocation55_spill] sm:$0xff]  ;;  %v3494_v36 = vld [vmem:[#allocation66_spill] sm:$0xff] }
  0xbc   :  { %v451_v38 = vadd.f32 %v450_v53, %v440_v2  ;;  %v453_v6 = vadd.f32 %v452_v45, %v442_v11  ;;  %v461_v48 = vmul.f32 %v2353_v8, %v2090_v37  ;;  %v463_v7 = vmul.f32 %v2353_v8, %v3479_v40  ;;  %v3484_v11 = vld [vmem:[#allocation56_spill] sm:$0xff]  ;;  %v3487_v45 = vld [vmem:[#allocation59_spill] sm:$0xff] }
  0xbd   :  { %v455_v62 = vadd.f32 %v454_v4, %v444_v50  ;;  %v458_v57 = vadd.f32 %v457_v44, %v447_v59  ;;  %v460_v58 = vadd.f32 %v459_v0, %v449_v39  ;;  %v465_v63 = vmul.f32 %v2353_v8, %v3480_v55  ;;  %v3486_v59 = vld [vmem:[#allocation58_spill] sm:$0xff]  ;;  %v3488_v4 = vld [vmem:[#allocation60_spill] sm:$0xff]  ;;  %v3489_v0 = vld [vmem:[#allocation61_spill] sm:$0xff] }
  0xbe   :  { %v462_v43 = vadd.f32 %v461_v48, %v451_v38  ;;  %v464_v60 = vadd.f32 %v463_v7, %v453_v6  ;;  %v467_v41 = vmul.f32 %v2333_v47, %v2335_v52  ;;  %v478_v54 = vmul.f32 %v2329_v1, %v2337_v5  ;;  %v3485_v52 = vld [vmem:[#allocation57_spill] sm:$0xff] }
  0xbf   :  { %v466_v42 = vadd.f32 %v465_v63, %v455_v62  ;;  %v489_v9 = vmul.f32 %v2331_v46, %v2337_v5  ;;  %v500_v61 = vmul.f32 %v2333_v47, %v2337_v5  ;;  %v511_v10 = vmul.f32 %v2329_v1, %v3481_v3  ;;  %v3490_v62 = vld [vmem:[#allocation62_spill] sm:$0xff] }
  0xc0   :  { %v468_v8 = vmul.f32 %v467_v41, %v3482_v51  ;;  %v470_v2 = vmul.f32 %v467_v41, %v3483_v56  ;;  %v472_v49 = vmul.f32 %v467_v41, %v3484_v11  ;;  %v474_v50 = vmul.f32 %v467_v41, %v3485_v52  ;;  %v3491_v56 = vld [vmem:[#allocation63_spill] sm:$0xff]  ;;  %v3492_v11 = vld [vmem:[#allocation64_spill] sm:$0xff] }
  0xc1   :  { %v476_v53 = vmul.f32 %v467_v41, %v3486_v59  ;;  %v479_v39 = vmul.f32 %v478_v54, %v3487_v45  ;;  %v481_v44 = vmul.f32 %v478_v54, %v3488_v4  ;;  %v483_v38 = vmul.f32 %v478_v54, %v3489_v0  ;;  %v3493_v59 = vld [vmem:[#allocation65_spill] sm:$0xff] }
  0xc2   :  { %v469_v5 = vadd.f32 %v468_v8, %v458_v57  ;;  %v471_v6 = vadd.f32 %v470_v2, %v460_v58  ;;  %v473_v48 = vadd.f32 %v472_v49, %v462_v43  ;;  %v475_v1 = vadd.f32 %v474_v50, %v464_v60  ;;  %v3495_v57 = vld [vmem:[#allocation67_spill] sm:$0xff]  ;;  %v3497_v2 = vld [vmem:[#allocation69_spill] sm:$0xff] }
  0xc3   :  { %v477_v7 = vadd.f32 %v476_v53, %v466_v42  ;;  %v485_v63 = vmul.f32 %v478_v54, %v3490_v62  ;;  %v487_v51 = vmul.f32 %v478_v54, %v3491_v56  ;;  %v490_v55 = vmul.f32 %v489_v9, %v3492_v11  ;;  %v3496_v42 = vld [vmem:[#allocation68_spill] sm:$0xff]  ;;  %v3498_v53 = vld [vmem:[#allocation70_spill] sm:$0xff] }
  0xc4   :  { %v480_v52 = vadd.f32 %v479_v39, %v469_v5  ;;  %v482_v40 = vadd.f32 %v481_v44, %v471_v6  ;;  %v484_v41 = vadd.f32 %v483_v38, %v473_v48  ;;  %v492_v45 = vmul.f32 %v489_v9, %v3493_v59  ;;  %v3499_v44 = vld [vmem:[#allocation71_spill] sm:$0xff]  ;;  %v3500_v48 = vld [vmem:[#allocation72_spill] sm:$0xff] }
  0xc5   :  { %v486_v37 = vadd.f32 %v485_v63, %v475_v1  ;;  %v488_v4 = vadd.f32 %v487_v51, %v477_v7  ;;  %v494_v0 = vmul.f32 %v489_v9, %v3494_v36  ;;  %v496_v58 = vmul.f32 %v489_v9, %v3495_v57  ;;  %v3501_v1 = vld [vmem:[#allocation73_spill] sm:$0xff] }
  0xc6   :  { %v491_v43 = vadd.f32 %v490_v55, %v480_v52  ;;  %v493_v60 = vadd.f32 %v492_v45, %v482_v40  ;;  %v498_v8 = vmul.f32 %v489_v9, %v3496_v42  ;;  %v501_v49 = vmul.f32 %v500_v61, %v3497_v2  ;;  %v3502_v55 = vld [vmem:[#allocation74_spill] sm:$0xff]  ;;  %v3503_v52 = vld [vmem:[#allocation75_spill] sm:$0xff]  ;;  %v3527_v42 = vld [vmem:[#allocation48_spill] sm:$0xff] }
  0xc7   :  { %v495_v54 = vadd.f32 %v494_v0, %v484_v41  ;;  %v497_v50 = vadd.f32 %v496_v58, %v486_v37  ;;  %v503_v39 = vmul.f32 %v500_v61, %v3498_v53  ;;  %v505_v38 = vmul.f32 %v500_v61, %v3499_v44  ;;  %v3504_v0 = vld [vmem:[#allocation76_spill] sm:$0xff]  ;;  %v3505_v41 = vld [vmem:[#allocation77_spill] sm:$0xff] }
  0xc8   :  { %v499_v5 = vadd.f32 %v498_v8, %v488_v4  ;;  %v502_v6 = vadd.f32 %v501_v49, %v491_v43  ;;  %v507_v51 = vmul.f32 %v500_v61, %v3500_v48  ;;  %v509_v7 = vmul.f32 %v500_v61, %v3501_v1  ;;  %v3506_v4 = vld [vmem:[#allocation78_spill] sm:$0xff]  ;;  %v3526_v1 = vld [vmem:[#allocation47_spill] sm:$0xff]  ;;  %v3528_v36 = vld [vmem:[#allocation49_spill] sm:$0xff] }
  0xc9   :  { %v504_v63 = vadd.f32 %v503_v39, %v493_v60  ;;  %v506_v57 = vadd.f32 %v505_v38, %v495_v54  ;;  %v512_v40 = vmul.f32 %v511_v10, %v3502_v55  ;;  %v514_v9 = vmul.f32 %v511_v10, %v3503_v52  ;;  %v3507_v39 = vld [vmem:[#allocation79_spill] sm:$0xff]  ;;  %v3508_v38 = vld [vmem:[#allocation80_spill] sm:$0xff]  ;;  %v3525_v52 = vld [vmem:[#allocation46_spill] sm:$0xff] }
  0xca   :  { %v508_v45 = vadd.f32 %v507_v51, %v497_v50  ;;  %v510_v2 = vadd.f32 %v509_v7, %v499_v5  ;;  %v516_v37 = vmul.f32 %v511_v10, %v3504_v0  ;;  %v518_v58 = vmul.f32 %v511_v10, %v3505_v41  ;;  %v3509_v51 = vld [vmem:[#allocation81_spill] sm:$0xff]  ;;  %v3510_v41 = vld [vmem:[#allocation82_spill] sm:$0xff] }
  0xcb   :  { %v513_v53 = vadd.f32 %v512_v40, %v502_v6  ;;  %v515_v44 = vadd.f32 %v514_v9, %v504_v63  ;;  %v520_v43 = vmul.f32 %v511_v10, %v3506_v4  ;;  %v522_v8 = vmul.f32 %v2331_v46, %v3481_v3  ;;  %v3511_v63 = vld [vmem:[#allocation83_spill] sm:$0xff]  ;;  %v3512_v10 = vld [vmem:[#allocation84_spill] sm:$0xff]  ;;  %v3513_v4 = vld [vmem:[#allocation85_spill] sm:$0xff] }
  0xcc   :  { %v517_v61 = vadd.f32 %v516_v37, %v506_v57  ;;  %v519_v60 = vadd.f32 %v518_v58, %v508_v45  ;;  %v533_v49 = vmul.f32 %v2333_v47, %v3481_v3  ;;  %v3514_v58 = vld [vmem:[#allocation86_spill] sm:$0xff] }
  0xcd   :  { %v521_v54 = vadd.f32 %v520_v43, %v510_v2  ;;  %v523_v50 = vmul.f32 %v522_v8, %v3507_v39  ;;  %v525_v5 = vmul.f32 %v522_v8, %v3508_v38  ;;  %v527_v7 = vmul.f32 %v522_v8, %v3509_v51  ;;  %v3515_v43 = vld [vmem:[#allocation87_spill] sm:$0xff]  ;;  %v3516_v38 = vld [vmem:[#allocation88_spill] sm:$0xff] }
  0xce   :  { %v529_v6 = vmul.f32 %v522_v8, %v3510_v41  ;;  %v531_v40 = vmul.f32 %v522_v8, %v3511_v63  ;;  %v534_v9 = vmul.f32 %v533_v49, %v3512_v10  ;;  %v536_v46 = vmul.f32 %v533_v49, %v3513_v4  ;;  %v2454_v51 = vld [vmem:[#allocation6 + $0x6] sm:$0x1]  ;;  %v2456_v41 = vld [vmem:[#allocation6 + $0x7] sm:$0x1]  ;;  %v2458_v8 = vld [vmem:[#allocation6 + $0x8] sm:$0x1] }
  0xcf   :  { %v524_v57 = vadd.f32 %v523_v50, %v513_v53  ;;  %v526_v45 = vadd.f32 %v525_v5, %v515_v44  ;;  %v528_v37 = vadd.f32 %v527_v7, %v517_v61  ;;  %v538_v47 = vmul.f32 %v533_v49, %v3514_v58 }
  0xd0   :  { %v530_v3 = vadd.f32 %v529_v6, %v519_v60  ;;  %v532_v2 = vadd.f32 %v531_v40, %v521_v54  ;;  %v540_v39 = vmul.f32 %v533_v49, %v3515_v43  ;;  %v542_v0 = vmul.f32 %v533_v49, %v3516_v38  ;;  %v3518_v40 = vld [vmem:[#allocation38_spill] sm:$0xff]  ;;  %v3524_v43 = vld [vmem:[#allocation45_spill] sm:$0xff] }
  0xd1   :  { %v535_v10 = vadd.f32 %v534_v9, %v524_v57  ;;  %v537_v63 = vadd.f32 %v536_v46, %v526_v45  ;;  %v2460_v4 = vadd.f32 %v538_v47, %v528_v37  ;;  %v3519_v46 = vld [vmem:[#allocation39_spill] sm:$0xff]  ;;  %v3520_v57 = vld [vmem:[#allocation40_spill] sm:$0xff]  ;;  %v3521_v37 = vld [vmem:[#allocation41_spill] sm:$0xff] }
  0xd2   :  { %v2462_v53 = vadd.f32 %v540_v39, %v530_v3  ;;  %v2464_v44 = vadd.f32 %v542_v0, %v532_v2  ;;  %v3517_v39 = vld [vmem:[#allocation37_spill] sm:$0xff]  ;;  %v3522_v3 = vld [vmem:[#allocation42_spill] sm:$0xff]  ;;  %v3523_v2 = vld [vmem:[#allocation43_spill] sm:$0xff] }
  0xd3   :  { %v550_v61 = vmul.f32 %v2454_v51, %v535_v10  ;;  %v561_v60 = vmul.f32 %v2456_v41, %v535_v10  ;;  %v572_v49 = vmul.f32 %v2458_v8, %v535_v10  ;;  %v583_v54 = vmul.f32 %v2454_v51, %v537_v63 }
  0xd4   :  { %v594_v50 = vmul.f32 %v2456_v41, %v537_v63  ;;  %v605_v5 = vmul.f32 %v2458_v8, %v537_v63  ;;  %v2474_v7 = vmul.f32 %v2454_v51, %v2460_v4  ;;  %v2478_v0 = vmul.f32 %v2456_v41, %v2460_v4 }
  0xd5   :  { %v551_v6 = vmul.f32 %v550_v61, %v3517_v39  ;;  %v553_v9 = vmul.f32 %v550_v61, %v3518_v40  ;;  %v555_v10 = vmul.f32 %v550_v61, %v3519_v46  ;;  %v557_v45 = vmul.f32 %v550_v61, %v3520_v57 }
  0xd6   :  { %v559_v47 = vmul.f32 %v550_v61, %v3521_v37  ;;  %v562_v63 = vmul.f32 %v561_v60, %v3522_v3  ;;  %v564_v38 = vmul.f32 %v561_v60, %v3523_v2  ;;  %v566_v58 = vmul.f32 %v561_v60, %v3524_v43 }
  0xd7   :  { %v568_v55 = vmul.f32 %v561_v60, %v3525_v52  ;;  %v570_v48 = vmul.f32 %v561_v60, %v3526_v1  ;;  %v573_v39 = vmul.f32 %v572_v49, %v3527_v42  ;;  %v575_v40 = vmul.f32 %v572_v49, %v3528_v36 }
  0xd8   :  { %v563_v59 = vadd.f32 %v562_v63, %v551_v6  ;;  %v565_v46 = vadd.f32 %v564_v38, %v553_v9  ;;  %v567_v11 = vadd.f32 %v566_v58, %v555_v10  ;;  %v577_v57 = vmul.f32 %v572_v49, %v1991_v12 }
  0xd9   :  { %v569_v61 = vadd.f32 %v568_v55, %v557_v45  ;;  %v571_v37 = vadd.f32 %v570_v48, %v559_v47  ;;  %v579_v3 = vmul.f32 %v572_v49, %v1994_v13  ;;  %v581_v2 = vmul.f32 %v572_v49, %v1997_v14 }
  0xda   :  { %v574_v43 = vadd.f32 %v573_v39, %v563_v59  ;;  %v576_v56 = vadd.f32 %v575_v40, %v565_v46  ;;  %v578_v52 = vadd.f32 %v577_v57, %v567_v11  ;;  %v584_v60 = vmul.f32 %v583_v54, %v2004_v15 }
  0xdb   :  { %v580_v1 = vadd.f32 %v579_v3, %v569_v61  ;;  %v582_v42 = vadd.f32 %v581_v2, %v571_v37  ;;  %v586_v36 = vmul.f32 %v583_v54, %v2007_v16  ;;  %v588_v38 = vmul.f32 %v583_v54, %v2010_v17 }
  0xdc   :  { %v585_v58 = vadd.f32 %v584_v60, %v574_v43  ;;  %v590_v6 = vmul.f32 %v583_v54, %v2013_v18  ;;  %v592_v48 = vmul.f32 %v583_v54, %v2020_v19  ;;  %v595_v55 = vmul.f32 %v594_v50, %v2023_v20 }
  0xdd   :  { %v587_v9 = vadd.f32 %v586_v36, %v576_v56  ;;  %v589_v49 = vadd.f32 %v588_v38, %v578_v52  ;;  %v597_v59 = vmul.f32 %v594_v50, %v2026_v21  ;;  %v599_v11 = vmul.f32 %v594_v50, %v2029_v22 }
  0xde   :  { %v591_v39 = vadd.f32 %v590_v6, %v580_v1  ;;  %v593_v40 = vadd.f32 %v592_v48, %v582_v42  ;;  %v596_v46 = vadd.f32 %v595_v55, %v585_v58  ;;  %v601_v10 = vmul.f32 %v594_v50, %v2036_v23 }
  0xdf   :  { %v598_v57 = vadd.f32 %v597_v59, %v587_v9  ;;  %v600_v45 = vadd.f32 %v599_v11, %v589_v49  ;;  %v603_v43 = vmul.f32 %v594_v50, %v2039_v24  ;;  %v606_v37 = vmul.f32 %v605_v5, %v2042_v25  ;;  %v3529_v9 = vld [vmem:[#allocation50_spill] sm:$0xff] }
  0xe0   :  { %v602_v54 = vadd.f32 %v601_v10, %v591_v39  ;;  %v608_v47 = vmul.f32 %v605_v5, %v2045_v26  ;;  %v610_v36 = vmul.f32 %v605_v5, %v2052_v27  ;;  %v612_v56 = vmul.f32 %v605_v5, %v2055_v28  ;;  %v3530_v39 = vld [vmem:[#allocation51_spill] sm:$0xff] }
  0xe1   :  { %v604_v52 = vadd.f32 %v603_v43, %v593_v40  ;;  %v607_v3 = vadd.f32 %v606_v37, %v596_v46  ;;  %v614_v42 = vmul.f32 %v605_v5, %v2058_v29  ;;  %v617_v1 = vmul.f32 %v2474_v7, %v2061_v30  ;;  %v3531_v46 = vld [vmem:[#allocation52_spill] sm:$0xff]  ;;  %v3532_v37 = vld [vmem:[#allocation53_spill] sm:$0xff] }
  0xe2   :  { %v609_v63 = vadd.f32 %v608_v47, %v598_v57  ;;  %v611_v2 = vadd.f32 %v610_v36, %v600_v45  ;;  %v613_v61 = vadd.f32 %v612_v56, %v602_v54  ;;  %v619_v50 = vmul.f32 %v2474_v7, %v2068_v31 }
  0xe3   :  { %v615_v60 = vadd.f32 %v614_v42, %v604_v52  ;;  %v618_v38 = vadd.f32 %v617_v1, %v607_v3  ;;  %v621_v58 = vmul.f32 %v2474_v7, %v2071_v32  ;;  %v623_v6 = vmul.f32 %v2474_v7, %v2074_v33 }
  0xe4   :  { %v620_v48 = vadd.f32 %v619_v50, %v609_v63  ;;  %v625_v5 = vmul.f32 %v2474_v7, %v2077_v34  ;;  %v628_v55 = vmul.f32 %v2478_v0, %v2084_v35  ;;  %v630_v49 = vmul.f32 %v2478_v0, %v3529_v9  ;;  %v3533_v63 = vld [vmem:[#allocation54_spill] sm:$0xff]  ;;  %v3535_v50 = vld [vmem:[#allocation56_spill] sm:$0xff] }
  0xe5   :  { %v622_v59 = vadd.f32 %v621_v58, %v611_v2  ;;  %v624_v11 = vadd.f32 %v623_v6, %v613_v61  ;;  %v632_v40 = vmul.f32 %v2478_v0, %v3530_v39  ;;  %v634_v10 = vmul.f32 %v2478_v0, %v3531_v46  ;;  %v3534_v2 = vld [vmem:[#allocation55_spill] sm:$0xff]  ;;  %v3537_v58 = vld [vmem:[#allocation58_spill] sm:$0xff] }
  0xe6   :  { %v626_v57 = vadd.f32 %v625_v5, %v615_v60  ;;  %v629_v45 = vadd.f32 %v628_v55, %v618_v38  ;;  %v631_v43 = vadd.f32 %v630_v49, %v620_v48  ;;  %v636_v7 = vmul.f32 %v2478_v0, %v3532_v37  ;;  %v3538_v48 = vld [vmem:[#allocation59_spill] sm:$0xff]  ;;  %v3539_v55 = vld [vmem:[#allocation60_spill] sm:$0xff]  ;;  %v3544_v9 = vld [vmem:[#allocation66_spill] sm:$0xff] }
  0xe7   :  { %v633_v54 = vadd.f32 %v632_v40, %v622_v59  ;;  %v635_v47 = vadd.f32 %v634_v10, %v624_v11  ;;  %v638_v36 = vmul.f32 %v2458_v8, %v2460_v4  ;;  %v649_v56 = vmul.f32 %v2454_v51, %v2462_v53  ;;  %v3536_v4 = vld [vmem:[#allocation57_spill] sm:$0xff] }
  0xe8   :  { %v637_v52 = vadd.f32 %v636_v7, %v626_v57  ;;  %v660_v3 = vmul.f32 %v2456_v41, %v2462_v53  ;;  %v671_v42 = vmul.f32 %v2458_v8, %v2462_v53  ;;  %v682_v1 = vmul.f32 %v2454_v51, %v2464_v44  ;;  %v3540_v59 = vld [vmem:[#allocation61_spill] sm:$0xff] }
  0xe9   :  { %v639_v0 = vmul.f32 %v638_v36, %v3533_v63  ;;  %v641_v61 = vmul.f32 %v638_v36, %v3534_v2  ;;  %v643_v60 = vmul.f32 %v638_v36, %v3535_v50  ;;  %v645_v38 = vmul.f32 %v638_v36, %v3536_v4  ;;  %v3541_v2 = vld [vmem:[#allocation63_spill] sm:$0xff]  ;;  %v3542_v50 = vld [vmem:[#allocation64_spill] sm:$0xff] }
  0xea   :  { %v647_v6 = vmul.f32 %v638_v36, %v3537_v58  ;;  %v650_v5 = vmul.f32 %v649_v56, %v3538_v48  ;;  %v652_v49 = vmul.f32 %v649_v56, %v3539_v55  ;;  %v654_v11 = vmul.f32 %v649_v56, %v3540_v59  ;;  %v3543_v58 = vld [vmem:[#allocation65_spill] sm:$0xff] }
  0xeb   :  { %v640_v53 = vadd.f32 %v639_v0, %v629_v45  ;;  %v642_v40 = vadd.f32 %v641_v61, %v631_v43  ;;  %v644_v10 = vadd.f32 %v643_v60, %v633_v54  ;;  %v646_v51 = vadd.f32 %v645_v38, %v635_v47  ;;  %v3545_v45 = vld [vmem:[#allocation67_spill] sm:$0xff]  ;;  %v3547_v61 = vld [vmem:[#allocation69_spill] sm:$0xff] }
  0xec   :  { %v648_v57 = vadd.f32 %v647_v6, %v637_v52  ;;  %v656_v7 = vmul.f32 %v649_v56, %v3490_v62  ;;  %v658_v63 = vmul.f32 %v649_v56, %v3541_v2  ;;  %v661_v37 = vmul.f32 %v660_v3, %v3542_v50  ;;  %v3546_v52 = vld [vmem:[#allocation68_spill] sm:$0xff]  ;;  %v3548_v6 = vld [vmem:[#allocation70_spill] sm:$0xff] }
  0xed   :  { %v651_v4 = vadd.f32 %v650_v5, %v640_v53  ;;  %v653_v46 = vadd.f32 %v652_v49, %v642_v40  ;;  %v655_v36 = vadd.f32 %v654_v11, %v644_v10  ;;  %v663_v48 = vmul.f32 %v660_v3, %v3543_v58  ;;  %v3549_v49 = vld [vmem:[#allocation71_spill] sm:$0xff]  ;;  %v3550_v10 = vld [vmem:[#allocation72_spill] sm:$0xff] }
  0xee   :  { %v657_v39 = vadd.f32 %v656_v7, %v646_v51  ;;  %v659_v55 = vadd.f32 %v658_v63, %v648_v57  ;;  %v665_v59 = vmul.f32 %v660_v3, %v3544_v9  ;;  %v667_v43 = vmul.f32 %v660_v3, %v3545_v45  ;;  %v3551_v51 = vld [vmem:[#allocation73_spill] sm:$0xff] }
  0xef   :  { %v662_v54 = vadd.f32 %v661_v37, %v651_v4  ;;  %v664_v47 = vadd.f32 %v663_v48, %v653_v46  ;;  %v669_v0 = vmul.f32 %v660_v3, %v3546_v52  ;;  %v672_v60 = vmul.f32 %v671_v42, %v3547_v61  ;;  %v3552_v37 = vld [vmem:[#allocation74_spill] sm:$0xff]  ;;  %v3553_v4 = vld [vmem:[#allocation75_spill] sm:$0xff]  ;;  %v3577_v52 = vld [vmem:[#allocation48_spill] sm:$0xff] }
  0xf0   :  { %v666_v56 = vadd.f32 %v665_v59, %v655_v36  ;;  %v668_v38 = vadd.f32 %v667_v43, %v657_v39  ;;  %v674_v5 = vmul.f32 %v671_v42, %v3548_v6  ;;  %v676_v11 = vmul.f32 %v671_v42, %v3549_v49  ;;  %v3554_v59 = vld [vmem:[#allocation76_spill] sm:$0xff]  ;;  %v3555_v36 = vld [vmem:[#allocation77_spill] sm:$0xff] }
  0xf1   :  { %v670_v53 = vadd.f32 %v669_v0, %v659_v55  ;;  %v673_v40 = vadd.f32 %v672_v60, %v662_v54  ;;  %v678_v63 = vmul.f32 %v671_v42, %v3550_v10  ;;  %v680_v57 = vmul.f32 %v671_v42, %v3551_v51  ;;  %v3556_v55 = vld [vmem:[#allocation78_spill] sm:$0xff]  ;;  %v3576_v51 = vld [vmem:[#allocation47_spill] sm:$0xff]  ;;  %v3578_v9 = vld [vmem:[#allocation49_spill] sm:$0xff] }
  0xf2   :  { %v675_v7 = vadd.f32 %v674_v5, %v664_v47  ;;  %v677_v45 = vadd.f32 %v676_v11, %v666_v56  ;;  %v683_v46 = vmul.f32 %v682_v1, %v3552_v37  ;;  %v685_v3 = vmul.f32 %v682_v1, %v3553_v4  ;;  %v3557_v5 = vld [vmem:[#allocation79_spill] sm:$0xff]  ;;  %v3558_v11 = vld [vmem:[#allocation80_spill] sm:$0xff]  ;;  %v3575_v4 = vld [vmem:[#allocation46_spill] sm:$0xff] }
  0xf3   :  { %v679_v48 = vadd.f32 %v678_v63, %v668_v38  ;;  %v681_v61 = vadd.f32 %v680_v57, %v670_v53  ;;  %v687_v39 = vmul.f32 %v682_v1, %v3554_v59  ;;  %v689_v43 = vmul.f32 %v682_v1, %v3555_v36  ;;  %v3559_v63 = vld [vmem:[#allocation81_spill] sm:$0xff]  ;;  %v3560_v36 = vld [vmem:[#allocation82_spill] sm:$0xff] }
  0xf4   :  { %v684_v6 = vadd.f32 %v683_v46, %v673_v40  ;;  %v686_v49 = vadd.f32 %v685_v3, %v675_v7  ;;  %v691_v54 = vmul.f32 %v682_v1, %v3556_v55  ;;  %v693_v0 = vmul.f32 %v2456_v41, %v2464_v44  ;;  %v3561_v7 = vld [vmem:[#allocation83_spill] sm:$0xff]  ;;  %v3562_v1 = vld [vmem:[#allocation84_spill] sm:$0xff]  ;;  %v3563_v55 = vld [vmem:[#allocation85_spill] sm:$0xff] }
  0xf5   :  { %v688_v42 = vadd.f32 %v687_v39, %v677_v45  ;;  %v690_v47 = vadd.f32 %v689_v43, %v679_v48  ;;  %v704_v60 = vmul.f32 %v2458_v8, %v2464_v44  ;;  %v3564_v43 = vld [vmem:[#allocation86_spill] sm:$0xff] }
  0xf6   :  { %v692_v56 = vadd.f32 %v691_v54, %v681_v61  ;;  %v694_v38 = vmul.f32 %v693_v0, %v3557_v5  ;;  %v696_v53 = vmul.f32 %v693_v0, %v3558_v11  ;;  %v698_v57 = vmul.f32 %v693_v0, %v3559_v63  ;;  %v3565_v54 = vld [vmem:[#allocation87_spill] sm:$0xff]  ;;  %v3566_v11 = vld [vmem:[#allocation88_spill] sm:$0xff] }
  0xf7   :  { %v700_v40 = vmul.f32 %v693_v0, %v3560_v36  ;;  %v702_v46 = vmul.f32 %v693_v0, %v3561_v7  ;;  %v705_v3 = vmul.f32 %v704_v60, %v3562_v1  ;;  %v707_v41 = vmul.f32 %v704_v60, %v3563_v55  ;;  %v2579_v63 = vld [vmem:[#allocation6 + $0x9] sm:$0x1]  ;;  %v2581_v36 = vld [vmem:[#allocation6 + $0xa] sm:$0x1]  ;;  %v2583_v0 = vld [vmem:[#allocation6 + $0xb] sm:$0x1] }
  0xf8   :  { %v695_v45 = vadd.f32 %v694_v38, %v684_v6  ;;  %v697_v48 = vadd.f32 %v696_v53, %v686_v49  ;;  %v699_v39 = vadd.f32 %v698_v57, %v688_v42  ;;  %v709_v8 = vmul.f32 %v704_v60, %v3564_v43 }
  0xf9   :  { %v701_v44 = vadd.f32 %v700_v40, %v690_v47  ;;  %v703_v61 = vadd.f32 %v702_v46, %v692_v56  ;;  %v711_v5 = vmul.f32 %v704_v60, %v3565_v54  ;;  %v713_v59 = vmul.f32 %v704_v60, %v3566_v11  ;;  %v3568_v46 = vld [vmem:[#allocation38_spill] sm:$0xff]  ;;  %v3574_v54 = vld [vmem:[#allocation45_spill] sm:$0xff] }
  0xfa   :  { %v706_v1 = vadd.f32 %v705_v3, %v695_v45  ;;  %v708_v7 = vadd.f32 %v707_v41, %v697_v48  ;;  %v2585_v55 = vadd.f32 %v709_v8, %v699_v39  ;;  %v3569_v41 = vld [vmem:[#allocation39_spill] sm:$0xff]  ;;  %v3570_v45 = vld [vmem:[#allocation40_spill] sm:$0xff]  ;;  %v3571_v39 = vld [vmem:[#allocation41_spill] sm:$0xff] }
  0xfb   :  { %v2587_v6 = vadd.f32 %v711_v5, %v701_v44  ;;  %v2589_v49 = vadd.f32 %v713_v59, %v703_v61  ;;  %v3567_v5 = vld [vmem:[#allocation37_spill] sm:$0xff]  ;;  %v3572_v44 = vld [vmem:[#allocation42_spill] sm:$0xff]  ;;  %v3573_v61 = vld [vmem:[#allocation43_spill] sm:$0xff] }
  0xfc   :  { %v721_v42 = vmul.f32 %v2579_v63, %v706_v1  ;;  %v732_v47 = vmul.f32 %v2581_v36, %v706_v1  ;;  %v743_v60 = vmul.f32 %v2583_v0, %v706_v1  ;;  %v754_v56 = vmul.f32 %v2579_v63, %v708_v7 }
  0xfd   :  { %v765_v38 = vmul.f32 %v2581_v36, %v708_v7  ;;  %v776_v53 = vmul.f32 %v2583_v0, %v708_v7  ;;  %v2599_v57 = vmul.f32 %v2579_v63, %v2585_v55  ;;  %v2603_v59 = vmul.f32 %v2581_v36, %v2585_v55 }
  0xfe   :  { %v722_v40 = vmul.f32 %v721_v42, %v3567_v5  ;;  %v724_v3 = vmul.f32 %v721_v42, %v3568_v46  ;;  %v726_v1 = vmul.f32 %v721_v42, %v3569_v41  ;;  %v728_v48 = vmul.f32 %v721_v42, %v3570_v45 }
  0xff   :  { %v730_v8 = vmul.f32 %v721_v42, %v3571_v39  ;;  %v733_v7 = vmul.f32 %v732_v47, %v3572_v44  ;;  %v735_v11 = vmul.f32 %v732_v47, %v3573_v61  ;;  %v737_v43 = vmul.f32 %v732_v47, %v3574_v54 }
 0x100   :  { %v739_v37 = vmul.f32 %v732_v47, %v3575_v4  ;;  %v741_v10 = vmul.f32 %v732_v47, %v3576_v51  ;;  %v744_v5 = vmul.f32 %v743_v60, %v3577_v52  ;;  %v746_v46 = vmul.f32 %v743_v60, %v3578_v9 }
 0x101   :  { %v734_v58 = vadd.f32 %v733_v7, %v722_v40  ;;  %v736_v41 = vadd.f32 %v735_v11, %v724_v3  ;;  %v738_v50 = vadd.f32 %v737_v43, %v726_v1  ;;  %v748_v45 = vmul.f32 %v743_v60, %v1991_v12 }
 0x102   :  { %v740_v42 = vadd.f32 %v739_v37, %v728_v48  ;;  %v742_v39 = vadd.f32 %v741_v10, %v730_v8  ;;  %v750_v44 = vmul.f32 %v743_v60, %v1994_v13  ;;  %v752_v61 = vmul.f32 %v743_v60, %v1997_v14 }
 0x103   :  { %v745_v54 = vadd.f32 %v744_v5, %v734_v58  ;;  %v747_v2 = vadd.f32 %v746_v46, %v736_v41  ;;  %v749_v4 = vadd.f32 %v748_v45, %v738_v50  ;;  %v755_v47 = vmul.f32 %v754_v56, %v2004_v15 }
 0x104   :  { %v751_v51 = vadd.f32 %v750_v44, %v740_v42  ;;  %v753_v52 = vadd.f32 %v752_v61, %v742_v39  ;;  %v757_v9 = vmul.f32 %v754_v56, %v2007_v16  ;;  %v759_v11 = vmul.f32 %v754_v56, %v2010_v17 }
 0x105   :  { %v756_v43 = vadd.f32 %v755_v47, %v745_v54  ;;  %v761_v40 = vmul.f32 %v754_v56, %v2013_v18  ;;  %v763_v10 = vmul.f32 %v754_v56, %v2020_v19  ;;  %v766_v37 = vmul.f32 %v765_v38, %v2023_v20 }
 0x106   :  { %v758_v3 = vadd.f32 %v757_v9, %v747_v2  ;;  %v760_v60 = vadd.f32 %v759_v11, %v749_v4  ;;  %v768_v58 = vmul.f32 %v765_v38, %v2026_v21  ;;  %v770_v50 = vmul.f32 %v765_v38, %v2029_v22 }
 0x107   :  { %v762_v5 = vadd.f32 %v761_v40, %v751_v51  ;;  %v764_v46 = vadd.f32 %v763_v10, %v753_v52  ;;  %v767_v41 = vadd.f32 %v766_v37, %v756_v43  ;;  %v772_v1 = vmul.f32 %v765_v38, %v2036_v23 }
 0x108   :  { %v769_v45 = vadd.f32 %v768_v58, %v758_v3  ;;  %v771_v48 = vadd.f32 %v770_v50, %v760_v60  ;;  %v774_v54 = vmul.f32 %v765_v38, %v2039_v24  ;;  %v777_v39 = vmul.f32 %v776_v53, %v2042_v25  ;;  %v3579_v3 = vld [vmem:[#allocation50_spill] sm:$0xff] }
 0x109   :  { %v773_v56 = vadd.f32 %v772_v1, %v762_v5  ;;  %v779_v8 = vmul.f32 %v776_v53, %v2045_v26  ;;  %v781_v9 = vmul.f32 %v776_v53, %v2052_v27  ;;  %v783_v2 = vmul.f32 %v776_v53, %v2055_v28  ;;  %v3580_v5 = vld [vmem:[#allocation51_spill] sm:$0xff] }
 0x10a   :  { %v775_v4 = vadd.f32 %v774_v54, %v764_v46  ;;  %v778_v44 = vadd.f32 %v777_v39, %v767_v41  ;;  %v785_v52 = vmul.f32 %v776_v53, %v2058_v29  ;;  %v788_v51 = vmul.f32 %v2599_v57, %v2061_v30  ;;  %v3581_v41 = vld [vmem:[#allocation52_spill] sm:$0xff]  ;;  %v3582_v39 = vld [vmem:[#allocation53_spill] sm:$0xff] }
 0x10b   :  { %v780_v7 = vadd.f32 %v779_v8, %v769_v45  ;;  %v782_v61 = vadd.f32 %v781_v9, %v771_v48  ;;  %v784_v42 = vadd.f32 %v783_v2, %v773_v56  ;;  %v790_v38 = vmul.f32 %v2599_v57, %v2068_v31 }
 0x10c   :  { %v786_v47 = vadd.f32 %v785_v52, %v775_v4  ;;  %v789_v11 = vadd.f32 %v788_v51, %v778_v44  ;;  %v792_v43 = vmul.f32 %v2599_v57, %v2071_v32  ;;  %v794_v40 = vmul.f32 %v2599_v57, %v2074_v33 }
 0x10d   :  { %v791_v10 = vadd.f32 %v790_v38, %v780_v7  ;;  %v796_v53 = vmul.f32 %v2599_v57, %v2077_v34  ;;  %v799_v37 = vmul.f32 %v2603_v59, %v2084_v35  ;;  %v801_v60 = vmul.f32 %v2603_v59, %v3579_v3  ;;  %v3583_v7 = vld [vmem:[#allocation54_spill] sm:$0xff]  ;;  %v3585_v38 = vld [vmem:[#allocation56_spill] sm:$0xff] }
 0x10e   :  { %v793_v58 = vadd.f32 %v792_v43, %v782_v61  ;;  %v795_v50 = vadd.f32 %v794_v40, %v784_v42  ;;  %v803_v46 = vmul.f32 %v2603_v59, %v3580_v5  ;;  %v805_v1 = vmul.f32 %v2603_v59, %v3581_v41  ;;  %v3584_v61 = vld [vmem:[#allocation55_spill] sm:$0xff]  ;;  %v3587_v43 = vld [vmem:[#allocation58_spill] sm:$0xff] }
 0x10f   :  { %v797_v45 = vadd.f32 %v796_v53, %v786_v47  ;;  %v800_v48 = vadd.f32 %v799_v37, %v789_v11  ;;  %v802_v54 = vadd.f32 %v801_v60, %v791_v10  ;;  %v807_v57 = vmul.f32 %v2603_v59, %v3582_v39  ;;  %v3588_v10 = vld [vmem:[#allocation59_spill] sm:$0xff]  ;;  %v3589_v37 = vld [vmem:[#allocation60_spill] sm:$0xff]  ;;  %v3594_v3 = vld [vmem:[#allocation66_spill] sm:$0xff] }
 0x110   :  { %v804_v56 = vadd.f32 %v803_v46, %v793_v58  ;;  %v806_v8 = vadd.f32 %v805_v1, %v795_v50  ;;  %v809_v9 = vmul.f32 %v2583_v0, %v2585_v55  ;;  %v820_v2 = vmul.f32 %v2579_v63, %v2587_v6  ;;  %v3586_v55 = vld [vmem:[#allocation57_spill] sm:$0xff] }
 0x111   :  { %v808_v4 = vadd.f32 %v807_v57, %v797_v45  ;;  %v831_v44 = vmul.f32 %v2581_v36, %v2587_v6  ;;  %v842_v52 = vmul.f32 %v2583_v0, %v2587_v6  ;;  %v853_v51 = vmul.f32 %v2579_v63, %v2589_v49  ;;  %v3590_v58 = vld [vmem:[#allocation61_spill] sm:$0xff] }
 0x112   :  { %v810_v59 = vmul.f32 %v809_v9, %v3583_v7  ;;  %v812_v42 = vmul.f32 %v809_v9, %v3584_v61  ;;  %v814_v47 = vmul.f32 %v809_v9, %v3585_v38  ;;  %v816_v11 = vmul.f32 %v809_v9, %v3586_v55  ;;  %v3591_v61 = vld [vmem:[#allocation63_spill] sm:$0xff]  ;;  %v3592_v38 = vld [vmem:[#allocation64_spill] sm:$0xff] }
 0x113   :  { %v818_v40 = vmul.f32 %v809_v9, %v3587_v43  ;;  %v821_v53 = vmul.f32 %v820_v2, %v3588_v10  ;;  %v823_v60 = vmul.f32 %v820_v2, %v3589_v37  ;;  %v825_v50 = vmul.f32 %v820_v2, %v3590_v58  ;;  %v3593_v43 = vld [vmem:[#allocation65_spill] sm:$0xff] }
 0x114   :  { %v811_v6 = vadd.f32 %v810_v59, %v800_v48  ;;  %v813_v46 = vadd.f32 %v812_v42, %v802_v54  ;;  %v815_v1 = vadd.f32 %v814_v47, %v804_v56  ;;  %v817_v63 = vadd.f32 %v816_v11, %v806_v8  ;;  %v3595_v48 = vld [vmem:[#allocation67_spill] sm:$0xff]  ;;  %v3597_v42 = vld [vmem:[#allocation69_spill] sm:$0xff] }
 0x115   :  { %v819_v45 = vadd.f32 %v818_v40, %v808_v4  ;;  %v827_v57 = vmul.f32 %v820_v2, %v3490_v62  ;;  %v829_v7 = vmul.f32 %v820_v2, %v3591_v61  ;;  %v832_v39 = vmul.f32 %v831_v44, %v3592_v38  ;;  %v3596_v4 = vld [vmem:[#allocation68_spill] sm:$0xff]  ;;  %v3598_v40 = vld [vmem:[#allocation70_spill] sm:$0xff] }
 0x116   :  { %v822_v55 = vadd.f32 %v821_v53, %v811_v6  ;;  %v824_v41 = vadd.f32 %v823_v60, %v813_v46  ;;  %v826_v9 = vadd.f32 %v825_v50, %v815_v1  ;;  %v834_v10 = vmul.f32 %v831_v44, %v3593_v43  ;;  %v3599_v60 = vld [vmem:[#allocation71_spill] sm:$0xff]  ;;  %v3600_v1 = vld [vmem:[#allocation72_spill] sm:$0xff] }
 0x117   :  { %v828_v5 = vadd.f32 %v827_v57, %v817_v63  ;;  %v830_v37 = vadd.f32 %v829_v7, %v819_v45  ;;  %v836_v58 = vmul.f32 %v831_v44, %v3594_v3  ;;  %v838_v54 = vmul.f32 %v831_v44, %v3595_v48  ;;  %v3601_v63 = vld [vmem:[#allocation73_spill] sm:$0xff] }
 0x118   :  { %v833_v56 = vadd.f32 %v832_v39, %v822_v55  ;;  %v835_v8 = vadd.f32 %v834_v10, %v824_v41  ;;  %v840_v59 = vmul.f32 %v831_v44, %v3596_v4  ;;  %v843_v47 = vmul.f32 %v842_v52, %v3597_v42  ;;  %v3602_v39 = vld [vmem:[#allocation74_spill] sm:$0xff]  ;;  %v3603_v55 = vld [vmem:[#allocation75_spill] sm:$0xff]  ;;  %v3627_v4 = vld [vmem:[#allocation48_spill] sm:$0xff] }
 0x119   :  { %v837_v2 = vadd.f32 %v836_v58, %v826_v9  ;;  %v839_v11 = vadd.f32 %v838_v54, %v828_v5  ;;  %v845_v53 = vmul.f32 %v842_v52, %v3598_v40  ;;  %v847_v50 = vmul.f32 %v842_v52, %v3599_v60  ;;  %v3604_v58 = vld [vmem:[#allocation76_spill] sm:$0xff]  ;;  %v3605_v9 = vld [vmem:[#allocation77_spill] sm:$0xff] }
 0x11a   :  { %v841_v6 = vadd.f32 %v840_v59, %v830_v37  ;;  %v844_v46 = vadd.f32 %v843_v47, %v833_v56  ;;  %v849_v7 = vmul.f32 %v842_v52, %v3600_v1  ;;  %v851_v45 = vmul.f32 %v842_v52, %v3601_v63  ;;  %v3606_v37 = vld [vmem:[#allocation78_spill] sm:$0xff]  ;;  %v3626_v63 = vld [vmem:[#allocation47_spill] sm:$0xff]  ;;  %v3628_v3 = vld [vmem:[#allocation49_spill] sm:$0xff] }
 0x11b   :  { %v846_v57 = vadd.f32 %v845_v53, %v835_v8  ;;  %v848_v48 = vadd.f32 %v847_v50, %v837_v2  ;;  %v854_v41 = vmul.f32 %v853_v51, %v3602_v39  ;;  %v856_v44 = vmul.f32 %v853_v51, %v3603_v55  ;;  %v3607_v53 = vld [vmem:[#allocation79_spill] sm:$0xff]  ;;  %v3608_v50 = vld [vmem:[#allocation80_spill] sm:$0xff]  ;;  %v3625_v55 = vld [vmem:[#allocation46_spill] sm:$0xff] }
 0x11c   :  { %v850_v10 = vadd.f32 %v849_v7, %v839_v11  ;;  %v852_v42 = vadd.f32 %v851_v45, %v841_v6  ;;  %v858_v5 = vmul.f32 %v853_v51, %v3604_v58  ;;  %v860_v54 = vmul.f32 %v853_v51, %v3605_v9  ;;  %v3609_v7 = vld [vmem:[#allocation81_spill] sm:$0xff]  ;;  %v3610_v9 = vld [vmem:[#allocation82_spill] sm:$0xff] }
 0x11d   :  { %v855_v40 = vadd.f32 %v854_v41, %v844_v46  ;;  %v857_v60 = vadd.f32 %v856_v44, %v846_v57  ;;  %v862_v56 = vmul.f32 %v853_v51, %v3606_v37  ;;  %v864_v59 = vmul.f32 %v2581_v36, %v2589_v49  ;;  %v3611_v57 = vld [vmem:[#allocation83_spill] sm:$0xff]  ;;  %v3612_v51 = vld [vmem:[#allocation84_spill] sm:$0xff]  ;;  %v3613_v37 = vld [vmem:[#allocation85_spill] sm:$0xff] }
 0x11e   :  { %v859_v52 = vadd.f32 %v858_v5, %v848_v48  ;;  %v861_v8 = vadd.f32 %v860_v54, %v850_v10  ;;  %v875_v47 = vmul.f32 %v2583_v0, %v2589_v49  ;;  %v3614_v54 = vld [vmem:[#allocation86_spill] sm:$0xff] }
 0x11f   :  { %v863_v2 = vadd.f32 %v862_v56, %v852_v42  ;;  %v865_v11 = vmul.f32 %v864_v59, %v3607_v53  ;;  %v867_v6 = vmul.f32 %v864_v59, %v3608_v50  ;;  %v869_v45 = vmul.f32 %v864_v59, %v3609_v7  ;;  %v3615_v56 = vld [vmem:[#allocation87_spill] sm:$0xff]  ;;  %v3616_v50 = vld [vmem:[#allocation88_spill] sm:$0xff] }
 0x120   :  { %v871_v46 = vmul.f32 %v864_v59, %v3610_v9  ;;  %v873_v41 = vmul.f32 %v864_v59, %v3611_v57  ;;  %v876_v44 = vmul.f32 %v875_v47, %v3612_v51  ;;  %v878_v36 = vmul.f32 %v875_v47, %v3613_v37  ;;  %v2704_v7 = vld [vmem:[#allocation6 + $0xc] sm:$0x1]  ;;  %v2706_v9 = vld [vmem:[#allocation6 + $0xd] sm:$0x1]  ;;  %v2708_v59 = vld [vmem:[#allocation6 + $0xe] sm:$0x1] }
 0x121   :  { %v866_v48 = vadd.f32 %v865_v11, %v855_v40  ;;  %v868_v10 = vadd.f32 %v867_v6, %v857_v60  ;;  %v870_v5 = vadd.f32 %v869_v45, %v859_v52  ;;  %v880_v0 = vmul.f32 %v875_v47, %v3614_v54 }
 0x122   :  { %v872_v49 = vadd.f32 %v871_v46, %v861_v8  ;;  %v874_v42 = vadd.f32 %v873_v41, %v863_v2  ;;  %v882_v53 = vmul.f32 %v875_v47, %v3615_v56  ;;  %v884_v58 = vmul.f32 %v875_v47, %v3616_v50  ;;  %v3618_v41 = vld [vmem:[#allocation38_spill] sm:$0xff]  ;;  %v3624_v56 = vld [vmem:[#allocation45_spill] sm:$0xff] }
 0x123   :  { %v877_v51 = vadd.f32 %v876_v44, %v866_v48  ;;  %v879_v57 = vadd.f32 %v878_v36, %v868_v10  ;;  %v2710_v37 = vadd.f32 %v880_v0, %v870_v5  ;;  %v3619_v36 = vld [vmem:[#allocation39_spill] sm:$0xff]  ;;  %v3620_v48 = vld [vmem:[#allocation40_spill] sm:$0xff]  ;;  %v3621_v5 = vld [vmem:[#allocation41_spill] sm:$0xff] }
 0x124   :  { %v2712_v40 = vadd.f32 %v882_v53, %v872_v49  ;;  %v2714_v60 = vadd.f32 %v884_v58, %v874_v42  ;;  %v3617_v53 = vld [vmem:[#allocation37_spill] sm:$0xff]  ;;  %v3622_v49 = vld [vmem:[#allocation42_spill] sm:$0xff]  ;;  %v3623_v42 = vld [vmem:[#allocation43_spill] sm:$0xff] }
 0x125   :  { %v892_v52 = vmul.f32 %v2704_v7, %v877_v51  ;;  %v903_v8 = vmul.f32 %v2706_v9, %v877_v51  ;;  %v914_v47 = vmul.f32 %v2708_v59, %v877_v51  ;;  %v925_v2 = vmul.f32 %v2704_v7, %v879_v57 }
 0x126   :  { %v936_v11 = vmul.f32 %v2706_v9, %v879_v57  ;;  %v947_v6 = vmul.f32 %v2708_v59, %v879_v57  ;;  %v2724_v45 = vmul.f32 %v2704_v7, %v2710_v37  ;;  %v2728_v58 = vmul.f32 %v2706_v9, %v2710_v37 }
 0x127   :  { %v893_v46 = vmul.f32 %v892_v52, %v3617_v53  ;;  %v895_v44 = vmul.f32 %v892_v52, %v3618_v41  ;;  %v897_v51 = vmul.f32 %v892_v52, %v3619_v36  ;;  %v899_v10 = vmul.f32 %v892_v52, %v3620_v48 }
 0x128   :  { %v901_v0 = vmul.f32 %v892_v52, %v3621_v5  ;;  %v904_v57 = vmul.f32 %v903_v8, %v3622_v49  ;;  %v906_v50 = vmul.f32 %v903_v8, %v3623_v42  ;;  %v908_v54 = vmul.f32 %v903_v8, %v3624_v56 }
 0x129   :  { %v910_v39 = vmul.f32 %v903_v8, %v3625_v55  ;;  %v912_v1 = vmul.f32 %v903_v8, %v3626_v63  ;;  %v915_v53 = vmul.f32 %v914_v47, %v3627_v4  ;;  %v917_v41 = vmul.f32 %v914_v47, %v3628_v3 }
 0x12a   :  { %v905_v43 = vadd.f32 %v904_v57, %v893_v46  ;;  %v907_v36 = vadd.f32 %v906_v50, %v895_v44  ;;  %v909_v38 = vadd.f32 %v908_v54, %v897_v51  ;;  %v919_v48 = vmul.f32 %v914_v47, %v1991_v12 }
 0x12b   :  { %v911_v52 = vadd.f32 %v910_v39, %v899_v10  ;;  %v913_v5 = vadd.f32 %v912_v1, %v901_v0  ;;  %v921_v49 = vmul.f32 %v914_v47, %v1994_v13  ;;  %v923_v42 = vmul.f32 %v914_v47, %v1997_v14 }
 0x12c   :  { %v916_v56 = vadd.f32 %v915_v53, %v905_v43  ;;  %v918_v61 = vadd.f32 %v917_v41, %v907_v36  ;;  %v920_v55 = vadd.f32 %v919_v48, %v909_v38  ;;  %v926_v8 = vmul.f32 %v925_v2, %v2004_v15 }
 0x12d   :  { %v922_v63 = vadd.f32 %v921_v49, %v911_v52  ;;  %v924_v4 = vadd.f32 %v923_v42, %v913_v5  ;;  %v928_v3 = vmul.f32 %v925_v2, %v2007_v16  ;;  %v930_v50 = vmul.f32 %v925_v2, %v2010_v17 }
 0x12e   :  { %v927_v54 = vadd.f32 %v926_v8, %v916_v56  ;;  %v932_v46 = vmul.f32 %v925_v2, %v2013_v18  ;;  %v934_v1 = vmul.f32 %v925_v2, %v2020_v19  ;;  %v937_v39 = vmul.f32 %v936_v11, %v2023_v20 }
 0x12f   :  { %v929_v44 = vadd.f32 %v928_v3, %v918_v61  ;;  %v931_v47 = vadd.f32 %v930_v50, %v920_v55  ;;  %v939_v43 = vmul.f32 %v936_v11, %v2026_v21  ;;  %v941_v38 = vmul.f32 %v936_v11, %v2029_v22 }
 0x130   :  { %v933_v53 = vadd.f32 %v932_v46, %v922_v63  ;;  %v935_v41 = vadd.f32 %v934_v1, %v924_v4  ;;  %v938_v36 = vadd.f32 %v937_v39, %v927_v54  ;;  %v943_v51 = vmul.f32 %v936_v11, %v2036_v23 }
 0x131   :  { %v940_v48 = vadd.f32 %v939_v43, %v929_v44  ;;  %v942_v10 = vadd.f32 %v941_v38, %v931_v47  ;;  %v945_v56 = vmul.f32 %v936_v11, %v2039_v24  ;;  %v948_v5 = vmul.f32 %v947_v6, %v2042_v25  ;;  %v3629_v44 = vld [vmem:[#allocation50_spill] sm:$0xff] }
 0x132   :  { %v944_v2 = vadd.f32 %v943_v51, %v933_v53  ;;  %v950_v0 = vmul.f32 %v947_v6, %v2045_v26  ;;  %v952_v3 = vmul.f32 %v947_v6, %v2052_v27  ;;  %v954_v61 = vmul.f32 %v947_v6, %v2055_v28  ;;  %v3630_v53 = vld [vmem:[#allocation51_spill] sm:$0xff] }
 0x133   :  { %v946_v55 = vadd.f32 %v945_v56, %v935_v41  ;;  %v949_v49 = vadd.f32 %v948_v5, %v938_v36  ;;  %v956_v4 = vmul.f32 %v947_v6, %v2058_v29  ;;  %v959_v63 = vmul.f32 %v2724_v45, %v2061_v30  ;;  %v3631_v36 = vld [vmem:[#allocation52_spill] sm:$0xff]  ;;  %v3632_v5 = vld [vmem:[#allocation53_spill] sm:$0xff] }
 0x134   :  { %v951_v57 = vadd.f32 %v950_v0, %v940_v48  ;;  %v953_v42 = vadd.f32 %v952_v3, %v942_v10  ;;  %v955_v52 = vadd.f32 %v954_v61, %v944_v2  ;;  %v961_v11 = vmul.f32 %v2724_v45, %v2068_v31 }
 0x135   :  { %v957_v8 = vadd.f32 %v956_v4, %v946_v55  ;;  %v960_v50 = vadd.f32 %v959_v63, %v949_v49  ;;  %v963_v54 = vmul.f32 %v2724_v45, %v2071_v32  ;;  %v965_v46 = vmul.f32 %v2724_v45, %v2074_v33 }
 0x136   :  { %v962_v1 = vadd.f32 %v961_v11, %v951_v57  ;;  %v967_v6 = vmul.f32 %v2724_v45, %v2077_v34  ;;  %v970_v39 = vmul.f32 %v2728_v58, %v2084_v35  ;;  %v972_v47 = vmul.f32 %v2728_v58, %v3629_v44  ;;  %v3633_v57 = vld [vmem:[#allocation54_spill] sm:$0xff]  ;;  %v3635_v11 = vld [vmem:[#allocation56_spill] sm:$0xff] }
 0x137   :  { %v964_v43 = vadd.f32 %v963_v54, %v953_v42  ;;  %v966_v38 = vadd.f32 %v965_v46, %v955_v52  ;;  %v974_v41 = vmul.f32 %v2728_v58, %v3630_v53  ;;  %v976_v51 = vmul.f32 %v2728_v58, %v3631_v36  ;;  %v3634_v42 = vld [vmem:[#allocation55_spill] sm:$0xff]  ;;  %v3637_v54 = vld [vmem:[#allocation58_spill] sm:$0xff] }
 0x138   :  { %v968_v48 = vadd.f32 %v967_v6, %v957_v8  ;;  %v971_v10 = vadd.f32 %v970_v39, %v960_v50  ;;  %v973_v56 = vadd.f32 %v972_v47, %v962_v1  ;;  %v978_v45 = vmul.f32 %v2728_v58, %v3632_v5  ;;  %v3638_v1 = vld [vmem:[#allocation59_spill] sm:$0xff]  ;;  %v3639_v39 = vld [vmem:[#allocation60_spill] sm:$0xff]  ;;  %v3644_v44 = vld [vmem:[#allocation66_spill] sm:$0xff] }
 0x139   :  { %v975_v2 = vadd.f32 %v974_v41, %v964_v43  ;;  %v977_v0 = vadd.f32 %v976_v51, %v966_v38  ;;  %v980_v3 = vmul.f32 %v2708_v59, %v2710_v37  ;;  %v991_v61 = vmul.f32 %v2704_v7, %v2712_v40  ;;  %v3636_v37 = vld [vmem:[#allocation57_spill] sm:$0xff] }
 0x13a   :  { %v979_v55 = vadd.f32 %v978_v45, %v968_v48  ;;  %v1002_v49 = vmul.f32 %v2706_v9, %v2712_v40  ;;  %v1013_v4 = vmul.f32 %v2708_v59, %v2712_v40  ;;  %v1024_v63 = vmul.f32 %v2704_v7, %v2714_v60  ;;  %v3640_v43 = vld [vmem:[#allocation61_spill] sm:$0xff] }
 0x13b   :  { %v981_v58 = vmul.f32 %v980_v3, %v3633_v57  ;;  %v983_v52 = vmul.f32 %v980_v3, %v3634_v42  ;;  %v985_v8 = vmul.f32 %v980_v3, %v3635_v11  ;;  %v987_v50 = vmul.f32 %v980_v3, %v3636_v37  ;;  %v3641_v42 = vld [vmem:[#allocation63_spill] sm:$0xff]  ;;  %v3642_v11 = vld [vmem:[#allocation64_spill] sm:$0xff] }
 0x13c   :  { %v989_v46 = vmul.f32 %v980_v3, %v3637_v54  ;;  %v992_v6 = vmul.f32 %v991_v61, %v3638_v1  ;;  %v994_v47 = vmul.f32 %v991_v61, %v3639_v39  ;;  %v996_v38 = vmul.f32 %v991_v61, %v3640_v43  ;;  %v3643_v54 = vld [vmem:[#allocation65_spill] sm:$0xff] }
 0x13d   :  { %v982_v40 = vadd.f32 %v981_v58, %v971_v10  ;;  %v984_v41 = vadd.f32 %v983_v52, %v973_v56  ;;  %v986_v51 = vadd.f32 %v985_v8, %v975_v2  ;;  %v988_v7 = vadd.f32 %v987_v50, %v977_v0  ;;  %v3645_v10 = vld [vmem:[#allocation67_spill] sm:$0xff]  ;;  %v3647_v52 = vld [vmem:[#allocation69_spill] sm:$0xff] }
 0x13e   :  { %v990_v48 = vadd.f32 %v989_v46, %v979_v55  ;;  %v998_v45 = vmul.f32 %v991_v61, %v3490_v62  ;;  %v1000_v57 = vmul.f32 %v991_v61, %v3641_v42  ;;  %v1003_v5 = vmul.f32 %v1002_v49, %v3642_v11  ;;  %v3646_v55 = vld [vmem:[#allocation68_spill] sm:$0xff]  ;;  %v3648_v46 = vld [vmem:[#allocation70_spill] sm:$0xff] }
 0x13f   :  { %v993_v37 = vadd.f32 %v992_v6, %v982_v40  ;;  %v995_v36 = vadd.f32 %v994_v47, %v984_v41  ;;  %v997_v3 = vadd.f32 %v996_v38, %v986_v51  ;;  %v1005_v1 = vmul.f32 %v1002_v49, %v3643_v54  ;;  %v3649_v47 = vld [vmem:[#allocation71_spill] sm:$0xff]  ;;  %v3650_v51 = vld [vmem:[#allocation72_spill] sm:$0xff] }
 0x140   :  { %v999_v53 = vadd.f32 %v998_v45, %v988_v7  ;;  %v1001_v39 = vadd.f32 %v1000_v57, %v990_v48  ;;  %v1007_v43 = vmul.f32 %v1002_v49, %v3644_v44  ;;  %v1009_v56 = vmul.f32 %v1002_v49, %v3645_v10  ;;  %v3651_v7 = vld [vmem:[#allocation73_spill] sm:$0xff] }
 0x141   :  { %v1004_v2 = vadd.f32 %v1003_v5, %v993_v37  ;;  %v1006_v0 = vadd.f32 %v1005_v1, %v995_v36  ;;  %v1011_v58 = vmul.f32 %v1002_v49, %v3646_v55  ;;  %v1014_v8 = vmul.f32 %v1013_v4, %v3647_v52  ;;  %v3652_v5 = vld [vmem:[#allocation74_spill] sm:$0xff]  ;;  %v3653_v37 = vld [vmem:[#allocation75_spill] sm:$0xff]  ;;  %v3677_v55 = vld [vmem:[#allocation48_spill] sm:$0xff] }
 0x142   :  { %v1008_v61 = vadd.f32 %v1007_v43, %v997_v3  ;;  %v1010_v50 = vadd.f32 %v1009_v56, %v999_v53  ;;  %v1016_v6 = vmul.f32 %v1013_v4, %v3648_v46  ;;  %v1018_v38 = vmul.f32 %v1013_v4, %v3649_v47  ;;  %v3654_v43 = vld [vmem:[#allocation76_spill] sm:$0xff]  ;;  %v3655_v3 = vld [vmem:[#allocation77_spill] sm:$0xff] }
 0x143   :  { %v1012_v40 = vadd.f32 %v1011_v58, %v1001_v39  ;;  %v1015_v41 = vadd.f32 %v1014_v8, %v1004_v2  ;;  %v1020_v57 = vmul.f32 %v1013_v4, %v3650_v51  ;;  %v1022_v48 = vmul.f32 %v1013_v4, %v3651_v7  ;;  %v3656_v39 = vld [vmem:[#allocation78_spill] sm:$0xff]  ;;  %v3676_v7 = vld [vmem:[#allocation47_spill] sm:$0xff]  ;;  %v3678_v44 = vld [vmem:[#allocation49_spill] sm:$0xff] }
 0x144   :  { %v1017_v45 = vadd.f32 %v1016_v6, %v1006_v0  ;;  %v1019_v10 = vadd.f32 %v1018_v38, %v1008_v61  ;;  %v1025_v36 = vmul.f32 %v1024_v63, %v3652_v5  ;;  %v1027_v49 = vmul.f32 %v1024_v63, %v3653_v37  ;;  %v3657_v6 = vld [vmem:[#allocation79_spill] sm:$0xff]  ;;  %v3658_v38 = vld [vmem:[#allocation80_spill] sm:$0xff]  ;;  %v3675_v37 = vld [vmem:[#allocation46_spill] sm:$0xff] }
 0x145   :  { %v1021_v1 = vadd.f32 %v1020_v57, %v1010_v50  ;;  %v1023_v52 = vadd.f32 %v1022_v48, %v1012_v40  ;;  %v1029_v53 = vmul.f32 %v1024_v63, %v3654_v43  ;;  %v1031_v56 = vmul.f32 %v1024_v63, %v3655_v3  ;;  %v3659_v57 = vld [vmem:[#allocation81_spill] sm:$0xff]  ;;  %v3660_v3 = vld [vmem:[#allocation82_spill] sm:$0xff] }
 0x146   :  { %v1026_v46 = vadd.f32 %v1025_v36, %v1015_v41  ;;  %v1028_v47 = vadd.f32 %v1027_v49, %v1017_v45  ;;  %v1033_v2 = vmul.f32 %v1024_v63, %v3656_v39  ;;  %v1035_v58 = vmul.f32 %v2706_v9, %v2714_v60  ;;  %v3661_v45 = vld [vmem:[#allocation83_spill] sm:$0xff]  ;;  %v3662_v63 = vld [vmem:[#allocation84_spill] sm:$0xff]  ;;  %v3663_v39 = vld [vmem:[#allocation85_spill] sm:$0xff] }
 0x147   :  { %v1030_v4 = vadd.f32 %v1029_v53, %v1019_v10  ;;  %v1032_v0 = vadd.f32 %v1031_v56, %v1021_v1  ;;  %v1046_v8 = vmul.f32 %v2708_v59, %v2714_v60  ;;  %v3664_v56 = vld [vmem:[#allocation86_spill] sm:$0xff] }
 0x148   :  { %v1034_v61 = vadd.f32 %v1033_v2, %v1023_v52  ;;  %v1036_v50 = vmul.f32 %v1035_v58, %v3657_v6  ;;  %v1038_v40 = vmul.f32 %v1035_v58, %v3658_v38  ;;  %v1040_v48 = vmul.f32 %v1035_v58, %v3659_v57  ;;  %v3665_v2 = vld [vmem:[#allocation87_spill] sm:$0xff]  ;;  %v3666_v38 = vld [vmem:[#allocation88_spill] sm:$0xff] }
 0x149   :  { %v1042_v41 = vmul.f32 %v1035_v58, %v3660_v3  ;;  %v1044_v36 = vmul.f32 %v1035_v58, %v3661_v45  ;;  %v1047_v49 = vmul.f32 %v1046_v8, %v3662_v63  ;;  %v1049_v9 = vmul.f32 %v1046_v8, %v3663_v39  ;;  %v2829_v57 = vld [vmem:[#allocation6 + $0xf] sm:$0x1]  ;;  %v2831_v3 = vld [vmem:[#allocation6 + $0x10] sm:$0x1]  ;;  %v2833_v58 = vld [vmem:[#allocation6 + $0x11] sm:$0x1] }
 0x14a   :  { %v1037_v10 = vadd.f32 %v1036_v50, %v1026_v46  ;;  %v1039_v1 = vadd.f32 %v1038_v40, %v1028_v47  ;;  %v1041_v53 = vadd.f32 %v1040_v48, %v1030_v4  ;;  %v1051_v59 = vmul.f32 %v1046_v8, %v3664_v56 }
 0x14b   :  { %v1043_v60 = vadd.f32 %v1042_v41, %v1032_v0  ;;  %v1045_v52 = vadd.f32 %v1044_v36, %v1034_v61  ;;  %v1053_v6 = vmul.f32 %v1046_v8, %v3665_v2  ;;  %v1055_v43 = vmul.f32 %v1046_v8, %v3666_v38  ;;  %v3668_v36 = vld [vmem:[#allocation38_spill] sm:$0xff]  ;;  %v3674_v2 = vld [vmem:[#allocation45_spill] sm:$0xff] }
 0x14c   :  { %v1048_v63 = vadd.f32 %v1047_v49, %v1037_v10  ;;  %v1050_v45 = vadd.f32 %v1049_v9, %v1039_v1  ;;  %v2835_v39 = vadd.f32 %v1051_v59, %v1041_v53  ;;  %v3669_v9 = vld [vmem:[#allocation39_spill] sm:$0xff]  ;;  %v3670_v10 = vld [vmem:[#allocation40_spill] sm:$0xff]  ;;  %v3671_v53 = vld [vmem:[#allocation41_spill] sm:$0xff] }
 0x14d   :  { %v2837_v46 = vadd.f32 %v1053_v6, %v1043_v60  ;;  %v2839_v47 = vadd.f32 %v1055_v43, %v1045_v52  ;;  %v3667_v6 = vld [vmem:[#allocation37_spill] sm:$0xff]  ;;  %v3672_v60 = vld [vmem:[#allocation42_spill] sm:$0xff]  ;;  %v3673_v52 = vld [vmem:[#allocation43_spill] sm:$0xff] }
 0x14e   :  { %v1063_v4 = vmul.f32 %v2829_v57, %v1048_v63  ;;  %v1074_v0 = vmul.f32 %v2831_v3, %v1048_v63  ;;  %v1085_v8 = vmul.f32 %v2833_v58, %v1048_v63  ;;  %v1096_v61 = vmul.f32 %v2829_v57, %v1050_v45 }
 0x14f   :  { %v1107_v50 = vmul.f32 %v2831_v3, %v1050_v45  ;;  %v1118_v40 = vmul.f32 %v2833_v58, %v1050_v45  ;;  %v2849_v48 = vmul.f32 %v2829_v57, %v2835_v39  ;;  %v2853_v43 = vmul.f32 %v2831_v3, %v2835_v39 }
 0x150   :  { %v1064_v41 = vmul.f32 %v1063_v4, %v3667_v6  ;;  %v1066_v49 = vmul.f32 %v1063_v4, %v3668_v36  ;;  %v1068_v63 = vmul.f32 %v1063_v4, %v3669_v9  ;;  %v1070_v1 = vmul.f32 %v1063_v4, %v3670_v10 }
 0x151   :  { %v1072_v59 = vmul.f32 %v1063_v4, %v3671_v53  ;;  %v1075_v45 = vmul.f32 %v1074_v0, %v3672_v60  ;;  %v1077_v38 = vmul.f32 %v1074_v0, %v3673_v52  ;;  %v1079_v56 = vmul.f32 %v1074_v0, %v3674_v2 }
 0x152   :  { %v1081_v5 = vmul.f32 %v1074_v0, %v3675_v37  ;;  %v1083_v51 = vmul.f32 %v1074_v0, %v3676_v7  ;;  %v1086_v6 = vmul.f32 %v1085_v8, %v3677_v55  ;;  %v1088_v36 = vmul.f32 %v1085_v8, %v3678_v44 }
 0x153   :  { %v1076_v54 = vadd.f32 %v1075_v45, %v1064_v41  ;;  %v1078_v9 = vadd.f32 %v1077_v38, %v1066_v49  ;;  %v1080_v11 = vadd.f32 %v1079_v56, %v1068_v63  ;;  %v1090_v10 = vmul.f32 %v1085_v8, %v1991_v12 }
 0x154   :  { %v1082_v4 = vadd.f32 %v1081_v5, %v1070_v1  ;;  %v1084_v53 = vadd.f32 %v1083_v51, %v1072_v59  ;;  %v1092_v60 = vmul.f32 %v1085_v8, %v1994_v13  ;;  %v1094_v52 = vmul.f32 %v1085_v8, %v1997_v14 }
 0x155   :  { %v1087_v2 = vadd.f32 %v1086_v6, %v1076_v54  ;;  %v1089_v42 = vadd.f32 %v1088_v36, %v1078_v9  ;;  %v1091_v37 = vadd.f32 %v1090_v10, %v1080_v11  ;;  %v1097_v0 = vmul.f32 %v1096_v61, %v2004_v15 }
 0x156   :  { %v1093_v7 = vadd.f32 %v1092_v60, %v1082_v4  ;;  %v1095_v55 = vadd.f32 %v1094_v52, %v1084_v53  ;;  %v1099_v44 = vmul.f32 %v1096_v61, %v2007_v16  ;;  %v1101_v38 = vmul.f32 %v1096_v61, %v2010_v17 }
 0x157   :  { %v1098_v56 = vadd.f32 %v1097_v0, %v1087_v2  ;;  %v1103_v41 = vmul.f32 %v1096_v61, %v2013_v18  ;;  %v1105_v51 = vmul.f32 %v1096_v61, %v2020_v19  ;;  %v1108_v5 = vmul.f32 %v1107_v50, %v2023_v20 }
 0x158   :  { %v1100_v49 = vadd.f32 %v1099_v44, %v1089_v42  ;;  %v1102_v8 = vadd.f32 %v1101_v38, %v1091_v37  ;;  %v1110_v54 = vmul.f32 %v1107_v50, %v2026_v21  ;;  %v1112_v11 = vmul.f32 %v1107_v50, %v2029_v22 }
 0x159   :  { %v1104_v6 = vadd.f32 %v1103_v41, %v1093_v7  ;;  %v1106_v36 = vadd.f32 %v1105_v51, %v1095_v55  ;;  %v1109_v9 = vadd.f32 %v1108_v5, %v1098_v56  ;;  %v1114_v63 = vmul.f32 %v1107_v50, %v2036_v23 }
 0x15a   :  { %v1111_v10 = vadd.f32 %v1110_v54, %v1100_v49  ;;  %v1113_v1 = vadd.f32 %v1112_v11, %v1102_v8  ;;  %v1116_v2 = vmul.f32 %v1107_v50, %v2039_v24  ;;  %v1119_v53 = vmul.f32 %v1118_v40, %v2042_v25  ;;  %v3679_v49 = vld [vmem:[#allocation50_spill] sm:$0xff] }
 0x15b   :  { %v1115_v61 = vadd.f32 %v1114_v63, %v1104_v6  ;;  %v1121_v59 = vmul.f32 %v1118_v40, %v2045_v26  ;;  %v1123_v44 = vmul.f32 %v1118_v40, %v2052_v27  ;;  %v1125_v42 = vmul.f32 %v1118_v40, %v2055_v28  ;;  %v3680_v6 = vld [vmem:[#allocation51_spill] sm:$0xff] }
 0x15c   :  { %v1117_v37 = vadd.f32 %v1116_v2, %v1106_v36  ;;  %v1120_v60 = vadd.f32 %v1119_v53, %v1109_v9  ;;  %v1127_v55 = vmul.f32 %v1118_v40, %v2058_v29  ;;  %v1130_v7 = vmul.f32 %v2849_v48, %v2061_v30  ;;  %v3681_v9 = vld [vmem:[#allocation52_spill] sm:$0xff]  ;;  %v3682_v53 = vld [vmem:[#allocation53_spill] sm:$0xff] }
 0x15d   :  { %v1122_v45 = vadd.f32 %v1121_v59, %v1111_v10  ;;  %v1124_v52 = vadd.f32 %v1123_v44, %v1113_v1  ;;  %v1126_v4 = vadd.f32 %v1125_v42, %v1115_v61  ;;  %v1132_v50 = vmul.f32 %v2849_v48, %v2068_v31 }
 0x15e   :  { %v1128_v0 = vadd.f32 %v1127_v55, %v1117_v37  ;;  %v1131_v38 = vadd.f32 %v1130_v7, %v1120_v60  ;;  %v1134_v56 = vmul.f32 %v2849_v48, %v2071_v32  ;;  %v1136_v41 = vmul.f32 %v2849_v48, %v2074_v33 }
 0x15f   :  { %v1133_v51 = vadd.f32 %v1132_v50, %v1122_v45  ;;  %v1138_v40 = vmul.f32 %v2849_v48, %v2077_v34  ;;  %v1141_v5 = vmul.f32 %v2853_v43, %v2084_v35  ;;  %v1143_v8 = vmul.f32 %v2853_v43, %v3679_v49  ;;  %v3683_v45 = vld [vmem:[#allocation54_spill] sm:$0xff]  ;;  %v3685_v50 = vld [vmem:[#allocation56_spill] sm:$0xff] }
 0x160   :  { %v1135_v54 = vadd.f32 %v1134_v56, %v1124_v52  ;;  %v1137_v11 = vadd.f32 %v1136_v41, %v1126_v4  ;;  %v1145_v36 = vmul.f32 %v2853_v43, %v3680_v6  ;;  %v1147_v63 = vmul.f32 %v2853_v43, %v3681_v9  ;;  %v3684_v52 = vld [vmem:[#allocation55_spill] sm:$0xff]  ;;  %v3687_v56 = vld [vmem:[#allocation58_spill] sm:$0xff] }
 0x161   :  { %v1139_v10 = vadd.f32 %v1138_v40, %v1128_v0  ;;  %v1142_v1 = vadd.f32 %v1141_v5, %v1131_v38  ;;  %v1144_v2 = vadd.f32 %v1143_v8, %v1133_v51  ;;  %v1149_v48 = vmul.f32 %v2853_v43, %v3682_v53  ;;  %v3688_v51 = vld [vmem:[#allocation59_spill] sm:$0xff]  ;;  %v3689_v5 = vld [vmem:[#allocation60_spill] sm:$0xff]  ;;  %v3694_v49 = vld [vmem:[#allocation66_spill] sm:$0xff] }
 0x162   :  { %v1146_v61 = vadd.f32 %v1145_v36, %v1135_v54  ;;  %v1148_v59 = vadd.f32 %v1147_v63, %v1137_v11  ;;  %v1151_v44 = vmul.f32 %v2833_v58, %v2835_v39  ;;  %v1162_v42 = vmul.f32 %v2829_v57, %v2837_v46  ;;  %v3686_v39 = vld [vmem:[#allocation57_spill] sm:$0xff] }
 0x163   :  { %v1150_v37 = vadd.f32 %v1149_v48, %v1139_v10  ;;  %v1173_v60 = vmul.f32 %v2831_v3, %v2837_v46  ;;  %v1184_v55 = vmul.f32 %v2833_v58, %v2837_v46  ;;  %v1195_v7 = vmul.f32 %v2829_v57, %v2839_v47  ;;  %v3690_v54 = vld [vmem:[#allocation61_spill] sm:$0xff] }
 0x164   :  { %v1152_v43 = vmul.f32 %v1151_v44, %v3683_v45  ;;  %v1154_v4 = vmul.f32 %v1151_v44, %v3684_v52  ;;  %v1156_v0 = vmul.f32 %v1151_v44, %v3685_v50  ;;  %v1158_v38 = vmul.f32 %v1151_v44, %v3686_v39  ;;  %v3691_v52 = vld [vmem:[#allocation63_spill] sm:$0xff]  ;;  %v3692_v50 = vld [vmem:[#allocation64_spill] sm:$0xff] }
 0x165   :  { %v1160_v41 = vmul.f32 %v1151_v44, %v3687_v56  ;;  %v1163_v40 = vmul.f32 %v1162_v42, %v3688_v51  ;;  %v1165_v8 = vmul.f32 %v1162_v42, %v3689_v5  ;;  %v1167_v11 = vmul.f32 %v1162_v42, %v3690_v54  ;;  %v3693_v56 = vld [vmem:[#allocation65_spill] sm:$0xff] }
 0x166   :  { %v1153_v46 = vadd.f32 %v1152_v43, %v1142_v1  ;;  %v1155_v36 = vadd.f32 %v1154_v4, %v1144_v2  ;;  %v1157_v63 = vadd.f32 %v1156_v0, %v1146_v61  ;;  %v1159_v57 = vadd.f32 %v1158_v38, %v1148_v59  ;;  %v3695_v1 = vld [vmem:[#allocation67_spill] sm:$0xff]  ;;  %v3697_v4 = vld [vmem:[#allocation69_spill] sm:$0xff] }
 0x167   :  { %v1161_v10 = vadd.f32 %v1160_v41, %v1150_v37  ;;  %v1169_v48 = vmul.f32 %v1162_v42, %v3490_v62  ;;  %v1171_v45 = vmul.f32 %v1162_v42, %v3691_v52  ;;  %v1174_v53 = vmul.f32 %v1173_v60, %v3692_v50  ;;  %v3696_v37 = vld [vmem:[#allocation68_spill] sm:$0xff]  ;;  %v3698_v41 = vld [vmem:[#allocation70_spill] sm:$0xff] }
 0x168   :  { %v1164_v39 = vadd.f32 %v1163_v40, %v1153_v46  ;;  %v1166_v9 = vadd.f32 %v1165_v8, %v1155_v36  ;;  %v1168_v44 = vadd.f32 %v1167_v11, %v1157_v63  ;;  %v1176_v51 = vmul.f32 %v1173_v60, %v3693_v56  ;;  %v3699_v8 = vld [vmem:[#allocation71_spill] sm:$0xff]  ;;  %v3700_v63 = vld [vmem:[#allocation72_spill] sm:$0xff] }
 0x169   :  { %v1170_v6 = vadd.f32 %v1169_v48, %v1159_v57  ;;  %v1172_v5 = vadd.f32 %v1171_v45, %v1161_v10  ;;  %v1178_v54 = vmul.f32 %v1173_v60, %v3694_v49  ;;  %v1180_v2 = vmul.f32 %v1173_v60, %v3695_v1  ;;  %v3701_v57 = vld [vmem:[#allocation73_spill] sm:$0xff] }
 0x16a   :  { %v1175_v61 = vadd.f32 %v1174_v53, %v1164_v39  ;;  %v1177_v59 = vadd.f32 %v1176_v51, %v1166_v9  ;;  %v1182_v43 = vmul.f32 %v1173_v60, %v3696_v37  ;;  %v1185_v0 = vmul.f32 %v1184_v55, %v3697_v4  ;;  %v3702_v53 = vld [vmem:[#allocation74_spill] sm:$0xff]  ;;  %v3703_v39 = vld [vmem:[#allocation75_spill] sm:$0xff]  ;;  %v3727_v37 = vld [vmem:[#allocation48_spill] sm:$0xff] }
 0x16b   :  { %v1179_v42 = vadd.f32 %v1178_v54, %v1168_v44  ;;  %v1181_v38 = vadd.f32 %v1180_v2, %v1170_v6  ;;  %v1187_v40 = vmul.f32 %v1184_v55, %v3698_v41  ;;  %v1189_v11 = vmul.f32 %v1184_v55, %v3699_v8  ;;  %v3704_v54 = vld [vmem:[#allocation76_spill] sm:$0xff]  ;;  %v3705_v44 = vld [vmem:[#allocation77_spill] sm:$0xff] }
 0x16c   :  { %v1183_v46 = vadd.f32 %v1182_v43, %v1172_v5  ;;  %v1186_v36 = vadd.f32 %v1185_v0, %v1175_v61  ;;  %v1191_v45 = vmul.f32 %v1184_v55, %v3700_v63  ;;  %v1193_v10 = vmul.f32 %v1184_v55, %v3701_v57  ;;  %v3706_v5 = vld [vmem:[#allocation78_spill] sm:$0xff]  ;;  %v3726_v57 = vld [vmem:[#allocation47_spill] sm:$0xff]  ;;  %v3728_v49 = vld [vmem:[#allocation49_spill] sm:$0xff] }
 0x16d   :  { %v1188_v48 = vadd.f32 %v1187_v40, %v1177_v59  ;;  %v1190_v1 = vadd.f32 %v1189_v11, %v1179_v42  ;;  %v1196_v9 = vmul.f32 %v1195_v7, %v3702_v53  ;;  %v1198_v60 = vmul.f32 %v1195_v7, %v3703_v39  ;;  %v3707_v40 = vld [vmem:[#allocation79_spill] sm:$0xff]  ;;  %v3708_v11 = vld [vmem:[#allocation80_spill] sm:$0xff]  ;;  %v3725_v39 = vld [vmem:[#allocation46_spill] sm:$0xff] }
 0x16e   :  { %v1192_v51 = vadd.f32 %v1191_v45, %v1181_v38  ;;  %v1194_v4 = vadd.f32 %v1193_v10, %v1183_v46  ;;  %v1200_v6 = vmul.f32 %v1195_v7, %v3704_v54  ;;  %v1202_v2 = vmul.f32 %v1195_v7, %v3705_v44  ;;  %v3709_v45 = vld [vmem:[#allocation81_spill] sm:$0xff]  ;;  %v3710_v44 = vld [vmem:[#allocation82_spill] sm:$0xff] }
 0x16f   :  { %v1197_v41 = vadd.f32 %v1196_v9, %v1186_v36  ;;  %v1199_v8 = vadd.f32 %v1198_v60, %v1188_v48  ;;  %v1204_v61 = vmul.f32 %v1195_v7, %v3706_v5  ;;  %v1206_v43 = vmul.f32 %v2831_v3, %v2839_v47  ;;  %v3711_v48 = vld [vmem:[#allocation83_spill] sm:$0xff]  ;;  %v3712_v7 = vld [vmem:[#allocation84_spill] sm:$0xff]  ;;  %v3713_v5 = vld [vmem:[#allocation85_spill] sm:$0xff] }
 0x170   :  { %v1201_v55 = vadd.f32 %v1200_v6, %v1190_v1  ;;  %v1203_v59 = vadd.f32 %v1202_v2, %v1192_v51  ;;  %v1217_v0 = vmul.f32 %v2833_v58, %v2839_v47  ;;  %v3714_v2 = vld [vmem:[#allocation86_spill] sm:$0xff] }
 0x171   :  { %v1205_v42 = vadd.f32 %v1204_v61, %v1194_v4  ;;  %v1207_v38 = vmul.f32 %v1206_v43, %v3707_v40  ;;  %v1209_v46 = vmul.f32 %v1206_v43, %v3708_v11  ;;  %v1211_v10 = vmul.f32 %v1206_v43, %v3709_v45  ;;  %v3715_v61 = vld [vmem:[#allocation87_spill] sm:$0xff]  ;;  %v3716_v11 = vld [vmem:[#allocation88_spill] sm:$0xff]  ;;  %v2954_v45 = vld [vmem:[#allocation6 + $0x12] sm:$0x1] }
 0x172   :  { %v1213_v36 = vmul.f32 %v1206_v43, %v3710_v44  ;;  %v1215_v9 = vmul.f32 %v1206_v43, %v3711_v48  ;;  %v1218_v60 = vmul.f32 %v1217_v0, %v3712_v7  ;;  %v1220_v3 = vmul.f32 %v1217_v0, %v3713_v5  ;;  %v2956_v44 = vld [vmem:[#allocation6 + $0x13] sm:$0x1]  ;;  %v2958_v43 = vld [vmem:[#allocation6 + $0x14] sm:$0x1] }
 0x173   :  { %v1208_v1 = vadd.f32 %v1207_v38, %v1197_v41  ;;  %v1210_v51 = vadd.f32 %v1209_v46, %v1199_v8  ;;  %v1212_v6 = vadd.f32 %v1211_v10, %v1201_v55  ;;  %v1222_v58 = vmul.f32 %v1217_v0, %v3714_v2 }
 0x174   :  { %v1214_v47 = vadd.f32 %v1213_v36, %v1203_v59  ;;  %v1216_v4 = vadd.f32 %v1215_v9, %v1205_v42  ;;  %v1224_v40 = vmul.f32 %v1217_v0, %v3715_v61  ;;  %v1226_v54 = vmul.f32 %v1217_v0, %v3716_v11  ;;  %v3718_v9 = vld [vmem:[#allocation38_spill] sm:$0xff]  ;;  %v3724_v61 = vld [vmem:[#allocation45_spill] sm:$0xff] }
 0x175   :  { %v1219_v7 = vadd.f32 %v1218_v60, %v1208_v1  ;;  %v1221_v48 = vadd.f32 %v1220_v3, %v1210_v51  ;;  %v2960_v5 = vadd.f32 %v1222_v58, %v1212_v6  ;;  %v3719_v3 = vld [vmem:[#allocation39_spill] sm:$0xff]  ;;  %v3720_v1 = vld [vmem:[#allocation40_spill] sm:$0xff]  ;;  %v3721_v6 = vld [vmem:[#allocation41_spill] sm:$0xff] }
 0x176   :  { %v2962_v41 = vadd.f32 %v1224_v40, %v1214_v47  ;;  %v2964_v8 = vadd.f32 %v1226_v54, %v1216_v4  ;;  %v3717_v40 = vld [vmem:[#allocation37_spill] sm:$0xff]  ;;  %v3722_v47 = vld [vmem:[#allocation42_spill] sm:$0xff]  ;;  %v3723_v4 = vld [vmem:[#allocation43_spill] sm:$0xff] }
 0x177   :  { %v1234_v55 = vmul.f32 %v2954_v45, %v1219_v7  ;;  %v1245_v59 = vmul.f32 %v2956_v44, %v1219_v7  ;;  %v1256_v0 = vmul.f32 %v2958_v43, %v1219_v7  ;;  %v1267_v42 = vmul.f32 %v2954_v45, %v1221_v48 }
 0x178   :  { %v1278_v38 = vmul.f32 %v2956_v44, %v1221_v48  ;;  %v1289_v46 = vmul.f32 %v2958_v43, %v1221_v48  ;;  %v2974_v10 = vmul.f32 %v2954_v45, %v2960_v5  ;;  %v2978_v54 = vmul.f32 %v2956_v44, %v2960_v5 }
 0x179   :  { %v1235_v36 = vmul.f32 %v1234_v55, %v3717_v40  ;;  %v1237_v60 = vmul.f32 %v1234_v55, %v3718_v9  ;;  %v1239_v7 = vmul.f32 %v1234_v55, %v3719_v3  ;;  %v1241_v51 = vmul.f32 %v1234_v55, %v3720_v1 }
 0x17a   :  { %v1243_v58 = vmul.f32 %v1234_v55, %v3721_v6  ;;  %v1246_v48 = vmul.f32 %v1245_v59, %v3722_v47  ;;  %v1248_v11 = vmul.f32 %v1245_v59, %v3723_v4  ;;  %v1250_v2 = vmul.f32 %v1245_v59, %v3724_v61 }
 0x17b   :  { %v1252_v53 = vmul.f32 %v1245_v59, %v3725_v39  ;;  %v1254_v63 = vmul.f32 %v1245_v59, %v3726_v57  ;;  %v1257_v40 = vmul.f32 %v1256_v0, %v3727_v37  ;;  %v1259_v9 = vmul.f32 %v1256_v0, %v3728_v49 }
 0x17c   :  { %v1247_v56 = vadd.f32 %v1246_v48, %v1235_v36  ;;  %v1249_v3 = vadd.f32 %v1248_v11, %v1237_v60  ;;  %v1251_v50 = vadd.f32 %v1250_v2, %v1239_v7  ;;  %v1261_v1 = vmul.f32 %v1256_v0, %v1991_v12 }
 0x17d   :  { %v1253_v55 = vadd.f32 %v1252_v53, %v1241_v51  ;;  %v1255_v6 = vadd.f32 %v1254_v63, %v1243_v58  ;;  %v1263_v47 = vmul.f32 %v1256_v0, %v1994_v13  ;;  %v1265_v4 = vmul.f32 %v1256_v0, %v1997_v14 }
 0x17e   :  { %v1258_v61 = vadd.f32 %v1257_v40, %v1247_v56  ;;  %v1260_v52 = vadd.f32 %v1259_v9, %v1249_v3  ;;  %v1262_v39 = vadd.f32 %v1261_v1, %v1251_v50  ;;  %v1268_v59 = vmul.f32 %v1267_v42, %v2004_v15 }
 0x17f   :  { %v1264_v57 = vadd.f32 %v1263_v47, %v1253_v55  ;;  %v1266_v37 = vadd.f32 %v1265_v4, %v1255_v6  ;;  %v1270_v49 = vmul.f32 %v1267_v42, %v2007_v16  ;;  %v1272_v11 = vmul.f32 %v1267_v42, %v2010_v17 }
 0x180   :  { %v1269_v2 = vadd.f32 %v1268_v59, %v1258_v61  ;;  %v1274_v36 = vmul.f32 %v1267_v42, %v2013_v18  ;;  %v1276_v63 = vmul.f32 %v1267_v42, %v2020_v19  ;;  %v1279_v53 = vmul.f32 %v1278_v38, %v2023_v20 }
 0x181   :  { %v1271_v60 = vadd.f32 %v1270_v49, %v1260_v52  ;;  %v1273_v0 = vadd.f32 %v1272_v11, %v1262_v39  ;;  %v1281_v56 = vmul.f32 %v1278_v38, %v2026_v21  ;;  %v1283_v50 = vmul.f32 %v1278_v38, %v2029_v22 }
 0x182   :  { %v1275_v40 = vadd.f32 %v1274_v36, %v1264_v57  ;;  %v1277_v9 = vadd.f32 %v1276_v63, %v1266_v37  ;;  %v1280_v3 = vadd.f32 %v1279_v53, %v1269_v2  ;;  %v1285_v7 = vmul.f32 %v1278_v38, %v2036_v23 }
 0x183   :  { %v1282_v1 = vadd.f32 %v1281_v56, %v1271_v60  ;;  %v1284_v51 = vadd.f32 %v1283_v50, %v1273_v0  ;;  %v1287_v61 = vmul.f32 %v1278_v38, %v2039_v24  ;;  %v1290_v6 = vmul.f32 %v1289_v46, %v2042_v25  ;;  %v3729_v60 = vld [vmem:[#allocation50_spill] sm:$0xff] }
 0x184   :  { %v1286_v42 = vadd.f32 %v1285_v7, %v1275_v40  ;;  %v1292_v58 = vmul.f32 %v1289_v46, %v2045_v26  ;;  %v1294_v49 = vmul.f32 %v1289_v46, %v2052_v27  ;;  %v1296_v52 = vmul.f32 %v1289_v46, %v2055_v28  ;;  %v3730_v40 = vld [vmem:[#allocation51_spill] sm:$0xff] }
 0x185   :  { %v1288_v39 = vadd.f32 %v1287_v61, %v1277_v9  ;;  %v1291_v47 = vadd.f32 %v1290_v6, %v1280_v3  ;;  %v1298_v37 = vmul.f32 %v1289_v46, %v2058_v29  ;;  %v1301_v57 = vmul.f32 %v2974_v10, %v2061_v30  ;;  %v3731_v3 = vld [vmem:[#allocation52_spill] sm:$0xff]  ;;  %v3732_v6 = vld [vmem:[#allocation53_spill] sm:$0xff] }
 0x186   :  { %v1293_v48 = vadd.f32 %v1292_v58, %v1282_v1  ;;  %v1295_v4 = vadd.f32 %v1294_v49, %v1284_v51  ;;  %v1297_v55 = vadd.f32 %v1296_v52, %v1286_v42  ;;  %v1303_v38 = vmul.f32 %v2974_v10, %v2068_v31 }
 0x187   :  { %v1299_v59 = vadd.f32 %v1298_v37, %v1288_v39  ;;  %v1302_v11 = vadd.f32 %v1301_v57, %v1291_v47  ;;  %v1305_v2 = vmul.f32 %v2974_v10, %v2071_v32  ;;  %v1307_v36 = vmul.f32 %v2974_v10, %v2074_v33 }
 0x188   :  { %v1304_v63 = vadd.f32 %v1303_v38, %v1293_v48  ;;  %v1309_v46 = vmul.f32 %v2974_v10, %v2077_v34  ;;  %v1312_v53 = vmul.f32 %v2978_v54, %v2084_v35  ;;  %v1314_v0 = vmul.f32 %v2978_v54, %v3729_v60  ;;  %v3733_v48 = vld [vmem:[#allocation54_spill] sm:$0xff]  ;;  %v3735_v38 = vld [vmem:[#allocation56_spill] sm:$0xff] }
 0x189   :  { %v1306_v56 = vadd.f32 %v1305_v2, %v1295_v4  ;;  %v1308_v50 = vadd.f32 %v1307_v36, %v1297_v55  ;;  %v1316_v9 = vmul.f32 %v2978_v54, %v3730_v40  ;;  %v1318_v7 = vmul.f32 %v2978_v54, %v3731_v3  ;;  %v3734_v4 = vld [vmem:[#allocation55_spill] sm:$0xff]  ;;  %v3737_v2 = vld [vmem:[#allocation58_spill] sm:$0xff] }
 0x18a   :  { %v1310_v1 = vadd.f32 %v1309_v46, %v1299_v59  ;;  %v1313_v51 = vadd.f32 %v1312_v53, %v1302_v11  ;;  %v1315_v61 = vadd.f32 %v1314_v0, %v1304_v63  ;;  %v1320_v10 = vmul.f32 %v2978_v54, %v3732_v6  ;;  %v3738_v63 = vld [vmem:[#allocation59_spill] sm:$0xff]  ;;  %v3739_v53 = vld [vmem:[#allocation60_spill] sm:$0xff]  ;;  %v3744_v60 = vld [vmem:[#allocation66_spill] sm:$0xff] }
 0x18b   :  { %v1317_v42 = vadd.f32 %v1316_v9, %v1306_v56  ;;  %v1319_v58 = vadd.f32 %v1318_v7, %v1308_v50  ;;  %v1322_v49 = vmul.f32 %v2958_v43, %v2960_v5  ;;  %v1333_v52 = vmul.f32 %v2954_v45, %v2962_v41  ;;  %v3736_v5 = vld [vmem:[#allocation57_spill] sm:$0xff] }
 0x18c   :  { %v1321_v39 = vadd.f32 %v1320_v10, %v1310_v1  ;;  %v1344_v47 = vmul.f32 %v2956_v44, %v2962_v41  ;;  %v1355_v37 = vmul.f32 %v2958_v43, %v2962_v41  ;;  %v1366_v57 = vmul.f32 %v2954_v45, %v2964_v8  ;;  %v3740_v56 = vld [vmem:[#allocation61_spill] sm:$0xff] }
 0x18d   :  { %v1323_v54 = vmul.f32 %v1322_v49, %v3733_v48  ;;  %v1325_v55 = vmul.f32 %v1322_v49, %v3734_v4  ;;  %v1327_v59 = vmul.f32 %v1322_v49, %v3735_v38  ;;  %v1329_v11 = vmul.f32 %v1322_v49, %v3736_v5  ;;  %v3741_v4 = vld [vmem:[#allocation63_spill] sm:$0xff]  ;;  %v3742_v38 = vld [vmem:[#allocation64_spill] sm:$0xff] }
 0x18e   :  { %v1331_v36 = vmul.f32 %v1322_v49, %v3737_v2  ;;  %v1334_v46 = vmul.f32 %v1333_v52, %v3738_v63  ;;  %v1336_v0 = vmul.f32 %v1333_v52, %v3739_v53  ;;  %v1338_v50 = vmul.f32 %v1333_v52, %v3740_v56  ;;  %v3743_v2 = vld [vmem:[#allocation65_spill] sm:$0xff] }
 0x18f   :  { %v1324_v41 = vadd.f32 %v1323_v54, %v1313_v51  ;;  %v1326_v9 = vadd.f32 %v1325_v55, %v1315_v61  ;;  %v1328_v7 = vadd.f32 %v1327_v59, %v1317_v42  ;;  %v1330_v45 = vadd.f32 %v1329_v11, %v1319_v58  ;;  %v3745_v51 = vld [vmem:[#allocation67_spill] sm:$0xff]  ;;  %v3747_v55 = vld [vmem:[#allocation69_spill] sm:$0xff] }
 0x190   :  { %v1332_v1 = vadd.f32 %v1331_v36, %v1321_v39  ;;  %v1340_v10 = vmul.f32 %v1333_v52, %v3490_v62  ;;  %v1342_v48 = vmul.f32 %v1333_v52, %v3741_v4  ;;  %v1345_v6 = vmul.f32 %v1344_v47, %v3742_v38  ;;  %v3746_v39 = vld [vmem:[#allocation68_spill] sm:$0xff]  ;;  %v3748_v36 = vld [vmem:[#allocation70_spill] sm:$0xff] }
 0x191   :  { %v1335_v5 = vadd.f32 %v1334_v46, %v1324_v41  ;;  %v1337_v3 = vadd.f32 %v1336_v0, %v1326_v9  ;;  %v1339_v49 = vadd.f32 %v1338_v50, %v1328_v7  ;;  %v1347_v63 = vmul.f32 %v1344_v47, %v3743_v2  ;;  %v3749_v0 = vld [vmem:[#allocation71_spill] sm:$0xff]  ;;  %v3750_v7 = vld [vmem:[#allocation72_spill] sm:$0xff] }
 0x192   :  { %v1341_v40 = vadd.f32 %v1340_v10, %v1330_v45  ;;  %v1343_v53 = vadd.f32 %v1342_v48, %v1332_v1  ;;  %v1349_v56 = vmul.f32 %v1344_v47, %v3744_v60  ;;  %v1351_v61 = vmul.f32 %v1344_v47, %v3745_v51  ;;  %v3751_v45 = vld [vmem:[#allocation73_spill] sm:$0xff] }
 0x193   :  { %v1346_v42 = vadd.f32 %v1345_v6, %v1335_v5  ;;  %v1348_v58 = vadd.f32 %v1347_v63, %v1337_v3  ;;  %v1353_v54 = vmul.f32 %v1344_v47, %v3746_v39  ;;  %v1356_v59 = vmul.f32 %v1355_v37, %v3747_v55  ;;  %v3752_v6 = vld [vmem:[#allocation74_spill] sm:$0xff]  ;;  %v3753_v5 = vld [vmem:[#allocation75_spill] sm:$0xff]  ;;  %v3777_v39 = vld [vmem:[#allocation48_spill] sm:$0xff] }
 0x194   :  { %v1350_v52 = vadd.f32 %v1349_v56, %v1339_v49  ;;  %v1352_v11 = vadd.f32 %v1351_v61, %v1341_v40  ;;  %v1358_v46 = vmul.f32 %v1355_v37, %v3748_v36  ;;  %v1360_v50 = vmul.f32 %v1355_v37, %v3749_v0  ;;  %v3754_v56 = vld [vmem:[#allocation76_spill] sm:$0xff]  ;;  %v3776_v36 = vld [vmem:[#allocation47_spill] sm:$0xff]  ;;  %v3778_v60 = vld [vmem:[#allocation49_spill] sm:$0xff] }
 0x195   :  { %v1354_v41 = vadd.f32 %v1353_v54, %v1343_v53  ;;  %v1357_v9 = vadd.f32 %v1356_v59, %v1346_v42  ;;  %v1362_v48 = vmul.f32 %v1355_v37, %v3750_v7  ;;  %v1364_v1 = vmul.f32 %v1355_v37, %v3751_v45  ;;  %v3755_v53 = vld [vmem:[#allocation77_spill] sm:$0xff]  ;;  %v3756_v59 = vld [vmem:[#allocation78_spill] sm:$0xff] }
 0x196   :  { %v1359_v10 = vadd.f32 %v1358_v46, %v1348_v58  ;;  %v1361_v51 = vadd.f32 %v1360_v50, %v1350_v52  ;;  %v1367_v3 = vmul.f32 %v1366_v57, %v3752_v6  ;;  %v1369_v47 = vmul.f32 %v1366_v57, %v3753_v5  ;;  %v3757_v6 = vld [vmem:[#allocation79_spill] sm:$0xff]  ;;  %v3775_v7 = vld [vmem:[#allocation46_spill] sm:$0xff] }
 0x197   :  { %v1363_v40 = vadd.f32 %v1362_v48, %v1352_v11  ;;  %v1365_v63 = vadd.f32 %v1364_v1, %v1354_v41  ;;  %v1371_v49 = vmul.f32 %v1366_v57, %v3754_v56  ;;  %v1373_v61 = vmul.f32 %v1366_v57, %v3755_v53  ;;  %v3758_v41 = vld [vmem:[#allocation80_spill] sm:$0xff]  ;;  %v3759_v1 = vld [vmem:[#allocation81_spill] sm:$0xff]  ;;  %v3760_v53 = vld [vmem:[#allocation82_spill] sm:$0xff] }
 0x198   :  { %v1368_v42 = vadd.f32 %v1367_v3, %v1357_v9  ;;  %v1370_v54 = vadd.f32 %v1369_v47, %v1359_v10  ;;  %v1375_v37 = vmul.f32 %v1366_v57, %v3756_v59  ;;  %v1377_v58 = vmul.f32 %v2956_v44, %v2964_v8  ;;  %v3761_v10 = vld [vmem:[#allocation83_spill] sm:$0xff]  ;;  %v3762_v57 = vld [vmem:[#allocation84_spill] sm:$0xff]  ;;  %v3763_v59 = vld [vmem:[#allocation85_spill] sm:$0xff] }
 0x199   :  { %v1372_v52 = vadd.f32 %v1371_v49, %v1361_v51  ;;  %v1374_v46 = vadd.f32 %v1373_v61, %v1363_v40  ;;  %v1388_v50 = vmul.f32 %v2958_v43, %v2964_v8  ;;  %v3764_v8 = vld [vmem:[#allocation86_spill] sm:$0xff] }
 0x19a   :  { %v1376_v5 = vadd.f32 %v1375_v37, %v1365_v63  ;;  %v1378_v11 = vmul.f32 %v1377_v58, %v3757_v6  ;;  %v1380_v48 = vmul.f32 %v1377_v58, %v3758_v41  ;;  %v1382_v56 = vmul.f32 %v1377_v58, %v3759_v1  ;;  %v3765_v37 = vld [vmem:[#allocation87_spill] sm:$0xff]  ;;  %v3766_v1 = vld [vmem:[#allocation88_spill] sm:$0xff] }
 0x19b   :  { %v1384_v9 = vmul.f32 %v1377_v58, %v3760_v53  ;;  %v1386_v3 = vmul.f32 %v1377_v58, %v3761_v10  ;;  %v1389_v47 = vmul.f32 %v1388_v50, %v3762_v57  ;;  %v1391_v44 = vmul.f32 %v1388_v50, %v3763_v59  ;;  %v3083_v53 = vld [vmem:[#allocation6 + $0x15] sm:$0x1]  ;;  %v3085_v58 = vld [vmem:[#allocation6 + $0x16] sm:$0x1]  ;;  %v3087_v57 = vld [vmem:[#allocation6 + $0x17] sm:$0x1] }
 0x19c   :  { %v1379_v51 = vadd.f32 %v1378_v11, %v1368_v42  ;;  %v1381_v40 = vadd.f32 %v1380_v48, %v1370_v54  ;;  %v1383_v43 = vadd.f32 %v1382_v56, %v1372_v52  ;;  %v1393_v63 = vmul.f32 %v1388_v50, %v3764_v8  ;;  %v3774_v10 = vld [vmem:[#allocation45_spill] sm:$0xff] }
 0x19d   :  { %v1385_v49 = vadd.f32 %v1384_v9, %v1374_v46  ;;  %v1387_v61 = vadd.f32 %v1386_v3, %v1376_v5  ;;  %v1395_v41 = vmul.f32 %v1388_v50, %v3765_v37  ;;  %v1397_v6 = vmul.f32 %v1388_v50, %v3766_v1  ;;  %v3771_v5 = vld [vmem:[#allocation41_spill] sm:$0xff]  ;;  %v3772_v1 = vld [vmem:[#allocation42_spill] sm:$0xff]  ;;  %v3773_v37 = vld [vmem:[#allocation43_spill] sm:$0xff] }
 0x19e   :  { %v1390_v59 = vadd.f32 %v1389_v47, %v1379_v51  ;;  %v1392_v42 = vadd.f32 %v1391_v44, %v1381_v40  ;;  %v3089_v11 = vadd.f32 %v1393_v63, %v1383_v43  ;;  %v3767_v44 = vld [vmem:[#allocation37_spill] sm:$0xff]  ;;  %v3768_v40 = vld [vmem:[#allocation38_spill] sm:$0xff]  ;;  %v3769_v63 = vld [vmem:[#allocation39_spill] sm:$0xff] }
 0x19f   :  { %v3091_v54 = vadd.f32 %v1395_v41, %v1385_v49  ;;  %v3093_v56 = vadd.f32 %v1397_v6, %v1387_v61  ;;  %v3770_v49 = vld [vmem:[#allocation40_spill] sm:$0xff] }
 0x1a0   :  { %v1405_v46 = vmul.f32 %v3083_v53, %v1390_v59  ;;  %v1416_v50 = vmul.f32 %v3085_v58, %v1390_v59  ;;  %v1427_v48 = vmul.f32 %v3087_v57, %v1390_v59  ;;  %v1438_v9 = vmul.f32 %v3083_v53, %v1392_v42 }
 0x1a1   :  { %v1449_v3 = vmul.f32 %v3085_v58, %v1392_v42  ;;  %v1460_v47 = vmul.f32 %v3087_v57, %v1392_v42  ;;  %v3105_v41 = vmul.f32 %v3083_v53, %v3089_v11  ;;  %v3109_v6 = vmul.f32 %v3085_v58, %v3089_v11 }
 0x1a2   :  { %v1406_v51 = vmul.f32 %v1405_v46, %v3767_v44  ;;  %v1408_v43 = vmul.f32 %v1405_v46, %v3768_v40  ;;  %v1410_v59 = vmul.f32 %v1405_v46, %v3769_v63  ;;  %v1412_v61 = vmul.f32 %v1405_v46, %v3770_v49 }
 0x1a3   :  { %v1414_v52 = vmul.f32 %v1405_v46, %v3771_v5  ;;  %v1417_v42 = vmul.f32 %v1416_v50, %v3772_v1  ;;  %v1419_v8 = vmul.f32 %v1416_v50, %v3773_v37  ;;  %v1421_v45 = vmul.f32 %v1416_v50, %v3774_v10 }
 0x1a4   :  { %v1423_v0 = vmul.f32 %v1416_v50, %v3775_v7  ;;  %v1425_v55 = vmul.f32 %v1416_v50, %v3776_v36  ;;  %v1428_v44 = vmul.f32 %v1427_v48, %v3777_v39  ;;  %v1430_v40 = vmul.f32 %v1427_v48, %v3778_v60 }
 0x1a5   :  { %v1418_v2 = vadd.f32 %v1417_v42, %v1406_v51  ;;  %v1420_v63 = vadd.f32 %v1419_v8, %v1408_v43  ;;  %v1422_v38 = vadd.f32 %v1421_v45, %v1410_v59  ;;  %v1432_v49 = vmul.f32 %v1427_v48, %v1991_v12 }
 0x1a6   :  { %v1424_v5 = vadd.f32 %v1423_v0, %v1412_v61  ;;  %v1426_v46 = vadd.f32 %v1425_v55, %v1414_v52  ;;  %v1434_v1 = vmul.f32 %v1427_v48, %v1994_v13  ;;  %v1436_v37 = vmul.f32 %v1427_v48, %v1997_v14 }
 0x1a7   :  { %v1429_v10 = vadd.f32 %v1428_v44, %v1418_v2  ;;  %v1431_v4 = vadd.f32 %v1430_v40, %v1420_v63  ;;  %v1433_v7 = vadd.f32 %v1432_v49, %v1422_v38  ;;  %v1439_v36 = vmul.f32 %v1438_v9, %v2004_v15  ;;  %v3780_v49 = vld [vmem:[#allocation51_spill] sm:$0xff] }
 0x1a8   :  { %v1435_v50 = vadd.f32 %v1434_v1, %v1424_v5  ;;  %v1437_v39 = vadd.f32 %v1436_v37, %v1426_v46  ;;  %v1441_v60 = vmul.f32 %v1438_v9, %v2007_v16  ;;  %v1443_v8 = vmul.f32 %v1438_v9, %v2010_v17  ;;  %v3781_v46 = vld [vmem:[#allocation52_spill] sm:$0xff] }
 0x1a9   :  { %v1440_v45 = vadd.f32 %v1439_v36, %v1429_v10  ;;  %v1445_v12 = vmul.f32 %v1438_v9, %v2013_v18  ;;  %v1447_v55 = vmul.f32 %v1438_v9, %v2020_v19  ;;  %v1450_v13 = vmul.f32 %v1449_v3, %v2023_v20  ;;  %v3782_v10 = vld [vmem:[#allocation53_spill] sm:$0xff] }
 0x1aa   :  { %v1442_v0 = vadd.f32 %v1441_v60, %v1431_v4  ;;  %v1444_v14 = vadd.f32 %v1443_v8, %v1433_v7  ;;  %v1452_v2 = vmul.f32 %v1449_v3, %v2026_v21  ;;  %v1454_v38 = vmul.f32 %v1449_v3, %v2029_v22 }
 0x1ab   :  { %v1446_v15 = vadd.f32 %v1445_v12, %v1435_v50  ;;  %v1448_v52 = vadd.f32 %v1447_v55, %v1437_v39  ;;  %v1451_v48 = vadd.f32 %v1450_v13, %v1440_v45  ;;  %v1456_v16 = vmul.f32 %v1449_v3, %v2036_v23  ;;  %v3783_v45 = vld [vmem:[#allocation54_spill] sm:$0xff]  ;;  %v3784_v12 = vld [vmem:[#allocation55_spill] sm:$0xff]  ;;  %v3785_v13 = vld [vmem:[#allocation56_spill] sm:$0xff] }
 0x1ac   :  { %v1453_v51 = vadd.f32 %v1452_v2, %v1442_v0  ;;  %v1455_v17 = vadd.f32 %v1454_v38, %v1444_v14  ;;  %v1458_v43 = vmul.f32 %v1449_v3, %v2039_v24  ;;  %v1461_v18 = vmul.f32 %v1460_v47, %v2042_v25  ;;  %v3787_v2 = vld [vmem:[#allocation58_spill] sm:$0xff] }
 0x1ad   :  { %v1457_v19 = vadd.f32 %v1456_v16, %v1446_v15  ;;  %v1463_v20 = vmul.f32 %v1460_v47, %v2045_v26  ;;  %v1465_v4 = vmul.f32 %v1460_v47, %v2052_v27  ;;  %v1467_v21 = vmul.f32 %v1460_v47, %v2055_v28  ;;  %v3788_v15 = vld [vmem:[#allocation59_spill] sm:$0xff] }
 0x1ae   :  { %v1459_v9 = vadd.f32 %v1458_v43, %v1448_v52  ;;  %v1462_v22 = vadd.f32 %v1461_v18, %v1451_v48  ;;  %v1469_v59 = vmul.f32 %v1460_v47, %v2058_v29  ;;  %v1472_v23 = vmul.f32 %v3105_v41, %v2061_v30  ;;  %v3779_v47 = vld [vmem:[#allocation50_spill] sm:$0xff]  ;;  %v3789_v48 = vld [vmem:[#allocation60_spill] sm:$0xff] }
 0x1af   :  { %v1464_v61 = vadd.f32 %v1463_v20, %v1453_v51  ;;  %v1466_v42 = vadd.f32 %v1465_v4, %v1455_v17  ;;  %v1468_v44 = vadd.f32 %v1467_v21, %v1457_v19  ;;  %v1474_v24 = vmul.f32 %v3105_v41, %v2068_v31  ;;  %v3790_v51 = vld [vmem:[#allocation61_spill] sm:$0xff]  ;;  %v3791_v4 = vld [vmem:[#allocation63_spill] sm:$0xff] }
 0x1b0   :  { %v1470_v25 = vadd.f32 %v1469_v59, %v1459_v9  ;;  %v1473_v3 = vadd.f32 %v1472_v23, %v1462_v22  ;;  %v1476_v26 = vmul.f32 %v3105_v41, %v2071_v32  ;;  %v1478_v27 = vmul.f32 %v3105_v41, %v2074_v33  ;;  %v3792_v9 = vld [vmem:[#allocation64_spill] sm:$0xff] }
 0x1b1   :  { %v1475_v28 = vadd.f32 %v1474_v24, %v1464_v61  ;;  %v1480_v29 = vmul.f32 %v3105_v41, %v2077_v34  ;;  %v1483_v30 = vmul.f32 %v3109_v6, %v2084_v35  ;;  %v1485_v40 = vmul.f32 %v3109_v6, %v3779_v47 }
 0x1b2   :  { %v1477_v63 = vadd.f32 %v1476_v26, %v1466_v42  ;;  %v1479_v31 = vadd.f32 %v1478_v27, %v1468_v44  ;;  %v1487_v5 = vmul.f32 %v3109_v6, %v3780_v49  ;;  %v1489_v32 = vmul.f32 %v3109_v6, %v3781_v46  ;;  %v3793_v42 = vld [vmem:[#allocation65_spill] sm:$0xff]  ;;  %v3795_v27 = vld [vmem:[#allocation67_spill] sm:$0xff] }
 0x1b3   :  { %v1481_v1 = vadd.f32 %v1480_v29, %v1470_v25  ;;  %v1484_v33 = vadd.f32 %v1483_v30, %v1473_v3  ;;  %v1486_v37 = vadd.f32 %v1485_v40, %v1475_v28  ;;  %v1491_v34 = vmul.f32 %v3109_v6, %v3782_v10  ;;  %v3794_v3 = vld [vmem:[#allocation66_spill] sm:$0xff]  ;;  %v3797_v40 = vld [vmem:[#allocation69_spill] sm:$0xff]  ;;  %v3800_v10 = vld [vmem:[#allocation72_spill] sm:$0xff] }
 0x1b4   :  { %v1488_v41 = vadd.f32 %v1487_v5, %v1477_v63  ;;  %v1490_v7 = vadd.f32 %v1489_v32, %v1479_v31  ;;  %v1493_v35 = vmul.f32 %v3087_v57, %v3089_v11  ;;  %v1504_v36 = vmul.f32 %v3083_v53, %v3091_v54  ;;  %v3786_v11 = vld [vmem:[#allocation57_spill] sm:$0xff]  ;;  %v3798_v5 = vld [vmem:[#allocation70_spill] sm:$0xff]  ;;  %v3799_v32 = vld [vmem:[#allocation71_spill] sm:$0xff] }
 0x1b5   :  { %v1492_v50 = vadd.f32 %v1491_v34, %v1481_v1  ;;  %v1515_v39 = vmul.f32 %v3085_v58, %v3091_v54  ;;  %v1526_v60 = vmul.f32 %v3087_v57, %v3091_v54  ;;  %v1537_v8 = vmul.f32 %v3083_v53, %v3093_v56 }
 0x1b6   :  { %v1494_v6 = vmul.f32 %v1493_v35, %v3783_v45  ;;  %v1496_v55 = vmul.f32 %v1493_v35, %v3784_v12  ;;  %v1498_v0 = vmul.f32 %v1493_v35, %v3785_v13  ;;  %v1500_v14 = vmul.f32 %v1493_v35, %v3786_v11  ;;  %v3804_v13 = vld [vmem:[#allocation76_spill] sm:$0xff]  ;;  %v3805_v11 = vld [vmem:[#allocation77_spill] sm:$0xff] }
 0x1b7   :  { %v1502_v38 = vmul.f32 %v1493_v35, %v3787_v2  ;;  %v1505_v52 = vmul.f32 %v1504_v36, %v3788_v15  ;;  %v1507_v16 = vmul.f32 %v1504_v36, %v3789_v48  ;;  %v1509_v17 = vmul.f32 %v1504_v36, %v3790_v51  ;;  %v3806_v15 = vld [vmem:[#allocation78_spill] sm:$0xff] }
 0x1b8   :  { %v1495_v54 = vadd.f32 %v1494_v6, %v1484_v33  ;;  %v1497_v43 = vadd.f32 %v1496_v55, %v1486_v37  ;;  %v1499_v18 = vadd.f32 %v1498_v0, %v1488_v41  ;;  %v1501_v53 = vadd.f32 %v1500_v14, %v1490_v7  ;;  %v3801_v41 = vld [vmem:[#allocation73_spill] sm:$0xff] }
 0x1b9   :  { %v1503_v19 = vadd.f32 %v1502_v38, %v1492_v50  ;;  %v1511_v20 = vmul.f32 %v1504_v36, %v3490_v62  ;;  %v1513_v21 = vmul.f32 %v1504_v36, %v3791_v4  ;;  %v1516_v22 = vmul.f32 %v1515_v39, %v3792_v9  ;;  %v3796_v62 = vld [vmem:[#allocation68_spill] sm:$0xff]  ;;  %v3802_v50 = vld [vmem:[#allocation74_spill] sm:$0xff]  ;;  %v3811_v9 = vld [vmem:[#allocation83_spill] sm:$0xff] }
 0x1ba   :  { %v1506_v59 = vadd.f32 %v1505_v52, %v1495_v54  ;;  %v1508_v23 = vadd.f32 %v1507_v16, %v1497_v43  ;;  %v1510_v61 = vadd.f32 %v1509_v17, %v1499_v18  ;;  %v1518_v44 = vmul.f32 %v1515_v39, %v3793_v42  ;;  %v3807_v43 = vld [vmem:[#allocation79_spill] sm:$0xff] }
 0x1bb   :  { %v1512_v24 = vadd.f32 %v1511_v20, %v1501_v53  ;;  %v1514_v25 = vadd.f32 %v1513_v21, %v1503_v19  ;;  %v1520_v26 = vmul.f32 %v1515_v39, %v3794_v3  ;;  %v1522_v28 = vmul.f32 %v1515_v39, %v3795_v27  ;;  %v3808_v53 = vld [vmem:[#allocation80_spill] sm:$0xff]  ;;  %v3809_v20 = vld [vmem:[#allocation81_spill] sm:$0xff]  ;;  %v3810_v21 = vld [vmem:[#allocation82_spill] sm:$0xff] }
 0x1bc   :  { %v1517_v29 = vadd.f32 %v1516_v22, %v1506_v59  ;;  %v1519_v30 = vadd.f32 %v1518_v44, %v1508_v23  ;;  %v1524_v47 = vmul.f32 %v1515_v39, %v3796_v62  ;;  %v1527_v63 = vmul.f32 %v1526_v60, %v3797_v40  ;;  %v3803_v39 = vld [vmem:[#allocation75_spill] sm:$0xff]  ;;  %v3812_v22 = vld [vmem:[#allocation84_spill] sm:$0xff]  ;;  %v3813_v23 = vld [vmem:[#allocation85_spill] sm:$0xff] }
 0x1bd   :  { %v1521_v31 = vadd.f32 %v1520_v26, %v1510_v61  ;;  %v1523_v49 = vadd.f32 %v1522_v28, %v1512_v24  ;;  %v1529_v46 = vmul.f32 %v1526_v60, %v3798_v5  ;;  %v1531_v1 = vmul.f32 %v1526_v60, %v3799_v32  ;;  %v3814_v44 = vld [vmem:[#allocation86_spill] sm:$0xff]  ;;  %v3815_v26 = vld [vmem:[#allocation87_spill] sm:$0xff]  ;;  %v3816_v28 = vld [vmem:[#allocation88_spill] sm:$0xff] }
 0x1be   :  { %v1525_v33 = vadd.f32 %v1524_v47, %v1514_v25  ;;  %v1528_v37 = vadd.f32 %v1527_v63, %v1517_v29  ;;  %v1533_v34 = vmul.f32 %v1526_v60, %v3800_v10  ;;  %v1535_v7 = vmul.f32 %v1526_v60, %v3801_v41 }
 0x1bf   :  { %v1530_v35 = vadd.f32 %v1529_v46, %v1519_v30  ;;  %v1532_v36 = vadd.f32 %v1531_v1, %v1521_v31  ;;  %v1538_v45 = vmul.f32 %v1537_v8, %v3802_v50  ;;  %v1540_v6 = vmul.f32 %v1537_v8, %v3803_v39 }
 0x1c0   :  { %v1534_v12 = vadd.f32 %v1533_v34, %v1523_v49  ;;  %v1536_v55 = vadd.f32 %v1535_v7, %v1525_v33  ;;  %v1542_v0 = vmul.f32 %v1537_v8, %v3804_v13  ;;  %v1544_v14 = vmul.f32 %v1537_v8, %v3805_v11 }
 0x1c1   :  { %v1539_v2 = vadd.f32 %v1538_v45, %v1528_v37  ;;  %v1541_v38 = vadd.f32 %v1540_v6, %v1530_v35  ;;  %v1546_v52 = vmul.f32 %v1537_v8, %v3806_v15  ;;  %v1548_v60 = vmul.f32 %v3085_v58, %v3093_v56 }
 0x1c2   :  { %v1543_v48 = vadd.f32 %v1542_v0, %v1532_v36  ;;  %v1545_v16 = vadd.f32 %v1544_v14, %v1534_v12  ;;  %v1559_v51 = vmul.f32 %v3087_v57, %v3093_v56  ;;  %v1576_v17 = vstv %s3182_s15 }
 0x1c3   :  { %v1547_v54 = vadd.f32 %v1546_v52, %v1536_v55  ;;  %v1549_v18 = vmul.f32 %v1548_v60, %v3807_v43  ;;  %v1551_v19 = vmul.f32 %v1548_v60, %v3808_v53  ;;  %v1553_v4 = vmul.f32 %v1548_v60, %v3809_v20 }
 0x1c4   :  { %v1555_v8 = vmul.f32 %v1548_v60, %v3810_v21  ;;  %v1557_v58 = vmul.f32 %v1548_v60, %v3811_v9  ;;  %v1560_v59 = vmul.f32 %v1559_v51, %v3812_v22  ;;  %v1562_v61 = vmul.f32 %v1559_v51, %v3813_v23 }
 0x1c5   :  { %v1550_v57 = vadd.f32 %v1549_v18, %v1539_v2  ;;  %v1552_v56 = vadd.f32 %v1551_v19, %v1541_v38  ;;  %v1554_v42 = vadd.f32 %v1553_v4, %v1543_v48  ;;  %v1564_v24 = vmul.f32 %v1559_v51, %v3814_v44 }
 0x1c6   :  { %v1556_v25 = vadd.f32 %v1555_v8, %v1545_v16  ;;  %v1558_v3 = vadd.f32 %v1557_v58, %v1547_v54  ;;  %v1566_v27 = vmul.f32 %v1559_v51, %v3815_v26  ;;  %v1568_v29 = vmul.f32 %v1559_v51, %v3816_v28 }
 0x1c7   :  { %v1561_v30 = vadd.f32 %v1560_v59, %v1550_v57  ;;  %v1563_v62 = vadd.f32 %v1562_v61, %v1552_v56  ;;  %v1565_v47 = vadd.f32 %v1564_v24, %v1554_v42  ;;  %v1579_v63 = vstv %s3195_s20 }
 0x1c8   :  { %v1567_v40 = vadd.f32 %v1566_v27, %v1556_v25  ;;  %v1569_v31 = vadd.f32 %v1568_v29, %v1558_v3  ;;  %v3817_v49 = vstv %s3062_s13  ;;  %v3818_v46 = vstv %s3064_s14 }
 0x1c9   :  { %v1571_v5 = vmul.f32 %v3817_v49, %v1561_v30  ;;  %v1574_v32 = vmul.f32 %v3818_v46, %v1563_v62  ;;  %v1577_v1 = vmul.f32 %v1576_v17, %v1565_v47  ;;  %v1582_v33 = vstv %s3202_s21 }
 0x1ca   :  { %v1580_v10 = vmul.f32 %v1579_v63, %v1567_v40  ;;  %v1583_v41 = vmul.f32 %v1582_v33, %v1569_v31 }
 0x1cb   :  { %v1575_v37 = vadd.f32 %v1574_v32, %v1571_v5 }
 0x1cd   :  { %v1578_v34 = vadd.f32 %v1577_v1, %v1575_v37 }
 0x1cf   :  { %v1581_v7 = vadd.f32 %v1580_v10, %v1578_v34 }
 0x1d1   :  { %v1584_v35 = vadd.f32 %v1583_v41, %v1581_v7 }
 0x1d3   :  { %1585 = vst [vmem:[#allocation9] sm:$0x1] %v1584_v35 }
 0x1d4   :  { %1757 = shalt.err (!%p1754_p11)
}
 0x1d5   :  { %s3819_s30 = sld [smem:[#allocation90_spill]] }
 0x1db   :  { %s1758_s6 = scalar_lea.hbm %s3819_s30, 16 }
 0x1dc   :  { %p1759_p12 = scmp.ne.s32.totalorder %s3819_s30, %s1758_s6  ;;  %p1762_p13 = scmp.lt.u32.totalorder %s1758_s6, %s3819_s30 }
 0x1de   :  { %p1764_p0 = pnand %p1762_p13, %p1759_p12 }
 0x1e0   :  { %1767 = shalt.err (!%p1764_p0)
}
 0x1e1   :  { %1595 = dma.vmem_to_hbm [thread:$0]  %s1593_s3, 16, %s3819_s30, [#allocation8]  }
 0x1e2   :  { %1772 = dma.done.wait [#allocation8], 16  }
 0x1e3   :  { %1773 = vsyncadd [#allocation8], 4294967280 }
 0x1e4   :  { %1599 = vsyncpa [#allocation7], 1 }
 0x1e5   :  { %1600 = vsyncpa [#allocation8], 1 }

</bundles_post_ra>
